<compile_context>
chip_gen: v7x
topology: tpu7x:2x2x1
jax: 0.10.0
libtpu: 0.0.40
codegen_flags: <defaults>
</compile_context>

<pallas_src>
import jax
import jax.numpy as jnp
from jax.experimental import pallas as pl
from jax.experimental.pallas import tpu as pltpu

# ---------------------------------------------------------------------------
# Model hyper-parameters (small shapes consistent with the module's forward)
# ---------------------------------------------------------------------------
VOCAB_SIZE = 50
EMBEDDING_DIM = 32
HIDDEN_SIZE = 32
NUM_LAYERS = 2
BIDIRECTIONAL = True
SEQ_LEN = 8

_VMEM = pl.BlockSpec(memory_space=pltpu.MemorySpace.VMEM)
_SMEM = pl.BlockSpec(memory_space=pltpu.MemorySpace.SMEM)


# ---------------------------------------------------------------------------
# Fused gate math (gates already lane-concatenated as [r | z | n])
# ---------------------------------------------------------------------------
def _gru_gate_math(gx, gh, h):
    """gx, gh: (1, 3H) f32 pre-activations (input / recurrent, biases added);
    h: (1, H) f32 previous state.  Matches PyTorch nn.GRU:
      r = sigmoid(gx_r + gh_r); z = sigmoid(gx_z + gh_z)
      n = tanh(gx_n + r * gh_n)          (gh_n already contains b_hn)
      h' = (1 - z) * n + z * h
    One EUP sigmoid over [r|z] (2H lanes) + one tanh over n."""
    H = h.shape[-1]
    rz = jax.nn.sigmoid(gx[:, :2 * H] + gh[:, :2 * H])
    r = rz[:, :H]
    z = rz[:, H:]
    n = jnp.tanh(gx[:, 2 * H:] + r * gh[:, 2 * H:])
    return (1.0 - z) * n + z * h


# ---------------------------------------------------------------------------
# Fused Pallas kernel: embedding gather + 2-layer bi-GRU + decoder
# ---------------------------------------------------------------------------
def fused_net_kernel(words_ref, emb_ref, h0_ref,
                     wih0_ref, whh0_ref, bih0_ref, bhh0_ref,
                     wih1_ref, whh1_ref, bih1_ref, bhh1_ref,
                     wdec_ref, bdec_ref,
                     score_ref,
                     x_scr, y0f_scr, y0b_scr):
    """Argument layout (H = hidden, E = embed dim, T = seq len):
    words_ref: (T,)      int32  SMEM token ids
    emb_ref:   (V, E)    f32    embedding table
    h0_ref:    (4, 1, H) f32    initial hidden, index = layer*2 + direction
    wih0_ref:  (E, 6H)   bf16   layer-0 W_ih^T, cols = [fwd r|z|n | bwd r|z|n]
    whh0_ref:  (2H, 6H)  bf16   layer-0 block-diag W_hh^T (rows = [h_f | h_b])
    bih0_ref:  (1, 6H) / bhh0_ref: (1, 6H)  f32
    wih1_ref:  (2, 2H, 3H) bf16 layer-1 W_ih^T per direction, cols = [r|z|n]
    whh1_ref:  (2, H, 3H)  bf16 ; bih1/bhh1: (2, 1, 3H) f32
    wdec_ref:  (1, 2H) f32 ; bdec_ref: (1, 1) f32
    score_ref: (1, 1)  f32 output
    x_scr:     (T, E)  f32 VMEM scratch (embedded sequence)
    y0f_scr / y0b_scr: (T, H) f32 VMEM scratch (layer-0 outputs per direction)
    """
    T = SEQ_LEN
    H = HIDDEN_SIZE

    # ---------------- embedding gather (unrolled dynamic-row reads) ---------
    for t in range(T):
        idx = words_ref[t]
        x_scr[t:t + 1, :] = emb_ref[pl.ds(idx, 1), :]
    x_bf = x_scr[...].astype(jnp.bfloat16)                       # (T, E)

    # ---------------- layer 0: both directions in one recurrence ------------
    # Single fused input projection: both directions x 3 gates in one matmul.
    gx0 = jnp.dot(x_bf, wih0_ref[...],
                  preferred_element_type=jnp.float32) + bih0_ref[...]   # (T, 6H)

    whh0 = whh0_ref[...]                                          # (2H, 6H) bf16
    bhh0 = bhh0_ref[...]                                          # (1, 6H)  f32
    h_cat = jnp.concatenate([h0_ref[0], h0_ref[1]], axis=-1)      # (1, 2H) [h_f|h_b]

    for s in range(T):                                            # unrolled
        sf, sb = s, T - 1 - s                                     # fwd / bwd time
        h_f_prev = h_cat[:, 0:H]
        h_b_prev = h_cat[:, H:2 * H]
        # One MXU pass yields all 6 gate recurrent pre-activations.
        gh = jnp.dot(h_cat.astype(jnp.bfloat16), whh0,
                     preferred_element_type=jnp.float32) + bhh0   # (1, 6H)
        h_f = _gru_gate_math(gx0[sf:sf + 1, 0:3 * H], gh[:, 0:3 * H], h_f_prev)
        h_b = _gru_gate_math(gx0[sb:sb + 1, 3 * H:6 * H], gh[:, 3 * H:6 * H],
                             h_b_prev)
        # Layer-0 outputs land in VMEM scratch (no sublane-packing concats).
        y0f_scr[sf:sf + 1, :] = h_f
        y0b_scr[sb:sb + 1, :] = h_b
        h_cat = jnp.concatenate([h_f, h_b], axis=-1)

    # TODO(synk): inter-layer dropout(p=0.5) skipped (eval-mode semantics).

    # ---------------- layer 1: forward direction (full recurrence) ----------
    x1_bf = jnp.concatenate([y0f_scr[...], y0b_scr[...]],
                            axis=-1).astype(jnp.bfloat16)          # (T, 2H)
    gx1 = jnp.dot(x1_bf, wih1_ref[0],
                  preferred_element_type=jnp.float32) + bih1_ref[0]  # (T, 3H)
    whh1_f = whh1_ref[0]                                           # (H, 3H)
    bhh1_f = bhh1_ref[0]                                           # (1, 3H)
    h = h0_ref[2]                                                  # (1, H)
    for t in range(T):                                             # unrolled
        gh = jnp.dot(h.astype(jnp.bfloat16), whh1_f,
                     preferred_element_type=jnp.float32) + bhh1_f  # (1, 3H)
        h = _gru_gate_math(gx1[t:t + 1, :], gh, h)
    hf_last = h                                                    # fwd @ t=T-1

    # ---------------- layer 1: backward direction (single live step) --------
    # The decoder only consumes output[-1]; the backward state at t=T-1 is the
    # FIRST backward step, so the remaining T-1 steps are dead code.
    x_last = x1_bf[T - 1:T, :]                                     # (1, 2H)
    gx1b = jnp.dot(x_last, wih1_ref[1],
                   preferred_element_type=jnp.float32) + bih1_ref[1]
    hb0 = h0_ref[3]
    ghb = jnp.dot(hb0.astype(jnp.bfloat16), whh1_ref[1],
                  preferred_element_type=jnp.float32) + bhh1_ref[1]
    hb_last = _gru_gate_math(gx1b, ghb, hb0)

    # ---------------- decoder (fused epilogue) -------------------------------
    out_last = jnp.concatenate([hf_last, hb_last], axis=-1)        # (1, 2H)
    score_ref[...] = (jnp.sum(out_last * wdec_ref[...], axis=-1,
                              keepdims=True) + bdec_ref[...])


# ---------------------------------------------------------------------------
# Parameter init (matches Net.init_params: xavier_normal weights, zero biases)
# ---------------------------------------------------------------------------
def xavier_normal(key, shape):
    fan_out, fan_in = shape[0], shape[1]
    std = (2.0 / (fan_in + fan_out)) ** 0.5
    return std * jax.random.normal(key, shape, dtype=jnp.float32)


def init_params(key):
    params = {}
    key, k_emb = jax.random.split(key)
    params["embedding"] = xavier_normal(k_emb, (VOCAB_SIZE, EMBEDDING_DIM))

    num_dirs = 2 if BIDIRECTIONAL else 1
    for layer in range(NUM_LAYERS):
        in_dim = EMBEDDING_DIM if layer == 0 else HIDDEN_SIZE * num_dirs
        for d in range(num_dirs):
            key, k1, k2 = jax.random.split(key, 3)
            params[(layer, d)] = {
                "w_ih": xavier_normal(k1, (3 * HIDDEN_SIZE, in_dim)),
                "w_hh": xavier_normal(k2, (3 * HIDDEN_SIZE, HIDDEN_SIZE)),
                "b_ih": jnp.zeros((3 * HIDDEN_SIZE,), jnp.float32),
                "b_hh": jnp.zeros((3 * HIDDEN_SIZE,), jnp.float32),
            }

    key, k_dec = jax.random.split(key)
    params["w_dec"] = xavier_normal(k_dec, (1, HIDDEN_SIZE * num_dirs))
    params["b_dec"] = jnp.zeros((1,), jnp.float32)
    return params


def pack_params(params):
    """One-time repack into kernel layout (PyTorch gate order r,z,n is kept):
    * layer 0: W_ih^T lane-concatenated over directions -> (E, 6H);
      W_hh^T as a block-diagonal (2H, 6H) slab so BOTH directions' 3 gates
      come out of ONE recurrent dot per time step; biases as (1, 6H).
    * layer 1: per-direction lane-concatenated gate slabs W_ih^T (2H, 3H),
      W_hh^T (H, 3H), biases (1, 3H), stacked over direction.
    Weights bf16 (MXU operands), biases f32.  Done once, not per call."""
    H = HIDDEN_SIZE

    wih0 = jnp.concatenate([params[(0, 0)]["w_ih"].T,
                            params[(0, 1)]["w_ih"].T], axis=-1)        # (E, 6H)
    bih0 = jnp.concatenate([params[(0, 0)]["b_ih"],
                            params[(0, 1)]["b_ih"]]).reshape(1, 6 * H)
    whh0 = jnp.zeros((2 * H, 6 * H), jnp.float32)
    whh0 = whh0.at[0:H, 0:3 * H].set(params[(0, 0)]["w_hh"].T)
    whh0 = whh0.at[H:2 * H, 3 * H:6 * H].set(params[(0, 1)]["w_hh"].T)
    bhh0 = jnp.concatenate([params[(0, 0)]["b_hh"],
                            params[(0, 1)]["b_hh"]]).reshape(1, 6 * H)

    wih1 = jnp.stack([params[(1, 0)]["w_ih"].T,
                      params[(1, 1)]["w_ih"].T])                       # (2, 2H, 3H)
    whh1 = jnp.stack([params[(1, 0)]["w_hh"].T,
                      params[(1, 1)]["w_hh"].T])                       # (2, H, 3H)
    bih1 = jnp.stack([params[(1, 0)]["b_ih"].reshape(1, 3 * H),
                      params[(1, 1)]["b_ih"].reshape(1, 3 * H)])
    bhh1 = jnp.stack([params[(1, 0)]["b_hh"].reshape(1, 3 * H),
                      params[(1, 1)]["b_hh"].reshape(1, 3 * H)])

    return {
        "embedding": params["embedding"].astype(jnp.float32),
        "wih0": wih0.astype(jnp.bfloat16),     # (E, 6H)
        "whh0": whh0.astype(jnp.bfloat16),     # (2H, 6H) block-diagonal
        "bih0": bih0.astype(jnp.float32),      # (1, 6H)
        "bhh0": bhh0.astype(jnp.float32),      # (1, 6H)
        "wih1": wih1.astype(jnp.bfloat16),     # (2, 2H, 3H)
        "whh1": whh1.astype(jnp.bfloat16),     # (2, H, 3H)
        "bih1": bih1.astype(jnp.float32),      # (2, 1, 3H)
        "bhh1": bhh1.astype(jnp.float32),      # (2, 1, 3H)
        "w_dec": params["w_dec"].reshape(1, 2 * H).astype(jnp.float32),
        "b_dec": params["b_dec"].reshape(1, 1).astype(jnp.float32),
    }


def init_hidden():
    num_dirs = 2 if BIDIRECTIONAL else 1
    return jnp.zeros((NUM_LAYERS * num_dirs, 1, HIDDEN_SIZE), jnp.float32)


# ---------------------------------------------------------------------------
# Forward pass (mirrors Net.forward for a word-index tensor input)
# ---------------------------------------------------------------------------
def net_forward(packed, words, hidden):
    """words: (T,) int32 token indices, hidden: (num_layers*2, 1, H) f32."""
    words = words.reshape(-1).astype(jnp.int32)

    score = pl.pallas_call(
        fused_net_kernel,
        out_shape=jax.ShapeDtypeStruct((1, 1), jnp.float32),
        in_specs=[_SMEM,                                  # words (token ids)
                  _VMEM, _VMEM,                           # embedding, h0
                  _VMEM, _VMEM, _VMEM, _VMEM,             # layer 0
                  _VMEM, _VMEM, _VMEM, _VMEM,             # layer 1
                  _VMEM, _VMEM],                          # decoder
        out_specs=_VMEM,
        scratch_shapes=[
            pltpu.VMEM((SEQ_LEN, EMBEDDING_DIM), jnp.float32),   # embedded x
            pltpu.VMEM((SEQ_LEN, HIDDEN_SIZE), jnp.float32),     # layer-0 fwd
            pltpu.VMEM((SEQ_LEN, HIDDEN_SIZE), jnp.float32),     # layer-0 bwd
        ],
    )(words, packed["embedding"], hidden.astype(jnp.float32),
      packed["wih0"], packed["whh0"], packed["bih0"], packed["bhh0"],
      packed["wih1"], packed["whh1"], packed["bih1"], packed["bhh1"],
      packed["w_dec"], packed["b_dec"])
    return score.reshape(1)                       # nn.Linear(..., 1) -> (1,)


# ---------------------------------------------------------------------------
if __name__ == "__main__":
    key = jax.random.PRNGKey(0)
    k_params, k_words = jax.random.split(key)

    params = init_params(k_params)
    packed = pack_params(params)
    words = jax.random.randint(k_words, (SEQ_LEN,), 0, VOCAB_SIZE,
                               dtype=jnp.int32)
    hidden = init_hidden()

    score = net_forward(packed, words, hidden)
    jax.block_until_ready(score)
    assert score.shape == (1,)
    assert bool(jnp.isfinite(score).all())
    print("KERNEL_OK")
</pallas_src>

<mosaic_0001>
module attributes {stable_mosaic.version = 11 : i64} {
  func.func @fused_net_kernel(%arg0: memref<8xi32, #tpu.memory_space<smem>>, %arg1: memref<50x32xf32, #tpu.memory_space<vmem>>, %arg2: memref<4x1x32xf32, #tpu.memory_space<vmem>>, %arg3: memref<32x192xbf16, #tpu.memory_space<vmem>>, %arg4: memref<64x192xbf16, #tpu.memory_space<vmem>>, %arg5: memref<1x192xf32, #tpu.memory_space<vmem>>, %arg6: memref<1x192xf32, #tpu.memory_space<vmem>>, %arg7: memref<2x64x96xbf16, #tpu.memory_space<vmem>>, %arg8: memref<2x32x96xbf16, #tpu.memory_space<vmem>>, %arg9: memref<2x1x96xf32, #tpu.memory_space<vmem>>, %arg10: memref<2x1x96xf32, #tpu.memory_space<vmem>>, %arg11: memref<1x64xf32, #tpu.memory_space<vmem>>, %arg12: memref<1x1xf32, #tpu.memory_space<vmem>>, %arg13: memref<1x1xf32, #tpu.memory_space<vmem>>, %arg14: memref<8x32xf32, #tpu.memory_space<vmem>>, %arg15: memref<8x32xf32, #tpu.memory_space<vmem>>, %arg16: memref<8x32xf32, #tpu.memory_space<vmem>>) attributes {dimension_semantics = [], scalar_prefetch = 0 : i64, scratch_operands = 3 : i64, tpu.core_type = #tpu.core_type<tc>} {
    %c0 = arith.constant 0 : index
    %0 = memref.load %arg0[%c0] : memref<8xi32, #tpu.memory_space<smem>>
    %1 = arith.index_cast %0 : i32 to index
    %c0_0 = arith.constant 0 : index
    %2 = vector.load %arg1[%1, %c0_0] : memref<50x32xf32, #tpu.memory_space<vmem>>, vector<1x32xf32>
    %c0_1 = arith.constant 0 : index
    %c0_2 = arith.constant 0 : index
    %3 = vector.load %arg14[%c0_1, %c0_2] : memref<8x32xf32, #tpu.memory_space<vmem>>, vector<1x32xf32>
    tpu.vector_store %arg14[%c0_1, %c0_2], %2 {strides = array<i32>} : memref<8x32xf32, #tpu.memory_space<vmem>>, vector<1x32xf32>,
    %c1 = arith.constant 1 : index
    %4 = memref.load %arg0[%c1] : memref<8xi32, #tpu.memory_space<smem>>
    %5 = arith.index_cast %4 : i32 to index
    %c0_3 = arith.constant 0 : index
    %6 = vector.load %arg1[%5, %c0_3] : memref<50x32xf32, #tpu.memory_space<vmem>>, vector<1x32xf32>
    %c1_4 = arith.constant 1 : index
    %c0_5 = arith.constant 0 : index
    %7 = vector.load %arg14[%c1_4, %c0_5] : memref<8x32xf32, #tpu.memory_space<vmem>>, vector<1x32xf32>
    tpu.vector_store %arg14[%c1_4, %c0_5], %6 {strides = array<i32>} : memref<8x32xf32, #tpu.memory_space<vmem>>, vector<1x32xf32>,
    %c2 = arith.constant 2 : index
    %8 = memref.load %arg0[%c2] : memref<8xi32, #tpu.memory_space<smem>>
    %9 = arith.index_cast %8 : i32 to index
    %c0_6 = arith.constant 0 : index
    %10 = vector.load %arg1[%9, %c0_6] : memref<50x32xf32, #tpu.memory_space<vmem>>, vector<1x32xf32>
    %c2_7 = arith.constant 2 : index
    %c0_8 = arith.constant 0 : index
    %11 = vector.load %arg14[%c2_7, %c0_8] : memref<8x32xf32, #tpu.memory_space<vmem>>, vector<1x32xf32>
    tpu.vector_store %arg14[%c2_7, %c0_8], %10 {strides = array<i32>} : memref<8x32xf32, #tpu.memory_space<vmem>>, vector<1x32xf32>,
    %c3 = arith.constant 3 : index
    %12 = memref.load %arg0[%c3] : memref<8xi32, #tpu.memory_space<smem>>
    %13 = arith.index_cast %12 : i32 to index
    %c0_9 = arith.constant 0 : index
    %14 = vector.load %arg1[%13, %c0_9] : memref<50x32xf32, #tpu.memory_space<vmem>>, vector<1x32xf32>
    %c3_10 = arith.constant 3 : index
    %c0_11 = arith.constant 0 : index
    %15 = vector.load %arg14[%c3_10, %c0_11] : memref<8x32xf32, #tpu.memory_space<vmem>>, vector<1x32xf32>
    tpu.vector_store %arg14[%c3_10, %c0_11], %14 {strides = array<i32>} : memref<8x32xf32, #tpu.memory_space<vmem>>, vector<1x32xf32>,
    %c4 = arith.constant 4 : index
    %16 = memref.load %arg0[%c4] : memref<8xi32, #tpu.memory_space<smem>>
    %17 = arith.index_cast %16 : i32 to index
    %c0_12 = arith.constant 0 : index
    %18 = vector.load %arg1[%17, %c0_12] : memref<50x32xf32, #tpu.memory_space<vmem>>, vector<1x32xf32>
    %c4_13 = arith.constant 4 : index
    %c0_14 = arith.constant 0 : index
    %19 = vector.load %arg14[%c4_13, %c0_14] : memref<8x32xf32, #tpu.memory_space<vmem>>, vector<1x32xf32>
    tpu.vector_store %arg14[%c4_13, %c0_14], %18 {strides = array<i32>} : memref<8x32xf32, #tpu.memory_space<vmem>>, vector<1x32xf32>,
    %c5 = arith.constant 5 : index
    %20 = memref.load %arg0[%c5] : memref<8xi32, #tpu.memory_space<smem>>
    %21 = arith.index_cast %20 : i32 to index
    %c0_15 = arith.constant 0 : index
    %22 = vector.load %arg1[%21, %c0_15] : memref<50x32xf32, #tpu.memory_space<vmem>>, vector<1x32xf32>
    %c5_16 = arith.constant 5 : index
    %c0_17 = arith.constant 0 : index
    %23 = vector.load %arg14[%c5_16, %c0_17] : memref<8x32xf32, #tpu.memory_space<vmem>>, vector<1x32xf32>
    tpu.vector_store %arg14[%c5_16, %c0_17], %22 {strides = array<i32>} : memref<8x32xf32, #tpu.memory_space<vmem>>, vector<1x32xf32>,
    %c6 = arith.constant 6 : index
    %24 = memref.load %arg0[%c6] : memref<8xi32, #tpu.memory_space<smem>>
    %25 = arith.index_cast %24 : i32 to index
    %c0_18 = arith.constant 0 : index
    %26 = vector.load %arg1[%25, %c0_18] : memref<50x32xf32, #tpu.memory_space<vmem>>, vector<1x32xf32>
    %c6_19 = arith.constant 6 : index
    %c0_20 = arith.constant 0 : index
    %27 = vector.load %arg14[%c6_19, %c0_20] : memref<8x32xf32, #tpu.memory_space<vmem>>, vector<1x32xf32>
    tpu.vector_store %arg14[%c6_19, %c0_20], %26 {strides = array<i32>} : memref<8x32xf32, #tpu.memory_space<vmem>>, vector<1x32xf32>,
    %c7 = arith.constant 7 : index
    %28 = memref.load %arg0[%c7] : memref<8xi32, #tpu.memory_space<smem>>
    %29 = arith.index_cast %28 : i32 to index
    %c0_21 = arith.constant 0 : index
    %30 = vector.load %arg1[%29, %c0_21] : memref<50x32xf32, #tpu.memory_space<vmem>>, vector<1x32xf32>
    %c7_22 = arith.constant 7 : index
    %c0_23 = arith.constant 0 : index
    %31 = vector.load %arg14[%c7_22, %c0_23] : memref<8x32xf32, #tpu.memory_space<vmem>>, vector<1x32xf32>
    tpu.vector_store %arg14[%c7_22, %c0_23], %30 {strides = array<i32>} : memref<8x32xf32, #tpu.memory_space<vmem>>, vector<1x32xf32>,
    %c0_24 = arith.constant 0 : index
    %c0_25 = arith.constant 0 : index
    %32 = vector.load %arg14[%c0_24, %c0_25] : memref<8x32xf32, #tpu.memory_space<vmem>>, vector<8x32xf32>
    %33 = arith.truncf %32 : vector<8x32xf32> to vector<8x32xbf16>
    %c0_26 = arith.constant 0 : index
    %c0_27 = arith.constant 0 : index
    %34 = vector.load %arg3[%c0_26, %c0_27] : memref<32x192xbf16, #tpu.memory_space<vmem>>, vector<32x192xbf16>
    %cst = arith.constant dense<0.000000e+00> : vector<8x192xf32>
    %35 = tpu.matmul %33, %34, %cst {dimension_numbers = #tpu.dot_dimension_numbers<[1], [0], [0], [1], [0, 0, 1, 1], [], []>} : vector<8x32xbf16>, vector<32x192xbf16>, vector<8x192xf32> -> vector<8x192xf32>
    %c0_28 = arith.constant 0 : index
    %c0_29 = arith.constant 0 : index
    %36 = vector.load %arg5[%c0_28, %c0_29] : memref<1x192xf32, #tpu.memory_space<vmem>>, vector<1x192xf32>
    %37 = vector.broadcast %36 : vector<1x192xf32> to vector<8x192xf32>
    %38 = arith.addf %35, %37 : vector<8x192xf32>
    %c0_30 = arith.constant 0 : index
    %c0_31 = arith.constant 0 : index
    %39 = vector.load %arg4[%c0_30, %c0_31] : memref<64x192xbf16, #tpu.memory_space<vmem>>, vector<64x192xbf16>
    %c0_32 = arith.constant 0 : index
    %c0_33 = arith.constant 0 : index
    %40 = vector.load %arg6[%c0_32, %c0_33] : memref<1x192xf32, #tpu.memory_space<vmem>>, vector<1x192xf32>
    %c0_34 = arith.constant 0 : index
    %c0_35 = arith.constant 0 : index
    %c0_36 = arith.constant 0 : index
    %41 = vector.load %arg2[%c0_34, %c0_35, %c0_36] : memref<4x1x32xf32, #tpu.memory_space<vmem>>, vector<1x1x32xf32>
    %42 = vector.shape_cast %41 : vector<1x1x32xf32> to vector<1x32xf32>
    %c1_37 = arith.constant 1 : index
    %c0_38 = arith.constant 0 : index
    %c0_39 = arith.constant 0 : index
    %43 = vector.load %arg2[%c1_37, %c0_38, %c0_39] : memref<4x1x32xf32, #tpu.memory_space<vmem>>, vector<1x1x32xf32>
    %44 = vector.shape_cast %43 : vector<1x1x32xf32> to vector<1x32xf32>
    %45 = tpu.concatenate %42, %44 in 1 : vector<1x32xf32>, vector<1x32xf32> -> vector<1x64xf32>
    %46 = vector.extract_strided_slice %45 {offsets = [0, 0], sizes = [1, 32], strides = [1, 1]} : vector<1x64xf32> to vector<1x32xf32>
    %47 = vector.extract_strided_slice %45 {offsets = [0, 32], sizes = [1, 32], strides = [1, 1]} : vector<1x64xf32> to vector<1x32xf32>
    %48 = arith.truncf %45 : vector<1x64xf32> to vector<1x64xbf16>
    %cst_40 = arith.constant dense<0.000000e+00> : vector<1x192xf32>
    %49 = tpu.matmul %48, %39, %cst_40 {dimension_numbers = #tpu.dot_dimension_numbers<[1], [0], [0], [1], [0, 0, 1, 1], [], []>} : vector<1x64xbf16>, vector<64x192xbf16>, vector<1x192xf32> -> vector<1x192xf32>
    %50 = arith.addf %49, %40 : vector<1x192xf32>
    %51 = vector.extract_strided_slice %38 {offsets = [0, 0], sizes = [1, 96], strides = [1, 1]} : vector<8x192xf32> to vector<1x96xf32>
    %52 = vector.extract_strided_slice %50 {offsets = [0, 0], sizes = [1, 96], strides = [1, 1]} : vector<1x192xf32> to vector<1x96xf32>
    %53 = vector.extract_strided_slice %51 {offsets = [0, 0], sizes = [1, 64], strides = [1, 1]} : vector<1x96xf32> to vector<1x64xf32>
    %54 = vector.extract_strided_slice %52 {offsets = [0, 0], sizes = [1, 64], strides = [1, 1]} : vector<1x96xf32> to vector<1x64xf32>
    %55 = arith.addf %53, %54 : vector<1x64xf32>
    %56 = arith.negf %55 : vector<1x64xf32>
    %57 = math.exp %56 : vector<1x64xf32>
    %cst_41 = arith.constant 1.000000e+00 : f32
    %58 = vector.broadcast %cst_41 : f32 to vector<1x64xf32>
    %59 = arith.addf %58, %57 : vector<1x64xf32>
    %60 = arith.divf %58, %59 : vector<1x64xf32>
    %61 = vector.extract_strided_slice %60 {offsets = [0, 0], sizes = [1, 32], strides = [1, 1]} : vector<1x64xf32> to vector<1x32xf32>
    %62 = vector.extract_strided_slice %60 {offsets = [0, 32], sizes = [1, 32], strides = [1, 1]} : vector<1x64xf32> to vector<1x32xf32>
    %63 = vector.extract_strided_slice %51 {offsets = [0, 64], sizes = [1, 32], strides = [1, 1]} : vector<1x96xf32> to vector<1x32xf32>
    %64 = vector.extract_strided_slice %52 {offsets = [0, 64], sizes = [1, 32], strides = [1, 1]} : vector<1x96xf32> to vector<1x32xf32>
    %65 = arith.mulf %61, %64 : vector<1x32xf32>
    %66 = arith.addf %63, %65 : vector<1x32xf32>
    %67 = math.tanh %66 : vector<1x32xf32>
    %cst_42 = arith.constant 1.000000e+00 : f32
    %68 = vector.broadcast %cst_42 : f32 to vector<1x32xf32>
    %69 = arith.subf %68, %62 : vector<1x32xf32>
    %70 = arith.mulf %69, %67 : vector<1x32xf32>
    %71 = arith.mulf %62, %46 : vector<1x32xf32>
    %72 = arith.addf %70, %71 : vector<1x32xf32>
    %73 = vector.extract_strided_slice %38 {offsets = [7, 96], sizes = [1, 96], strides = [1, 1]} : vector<8x192xf32> to vector<1x96xf32>
    %74 = vector.extract_strided_slice %50 {offsets = [0, 96], sizes = [1, 96], strides = [1, 1]} : vector<1x192xf32> to vector<1x96xf32>
    %75 = vector.extract_strided_slice %73 {offsets = [0, 0], sizes = [1, 64], strides = [1, 1]} : vector<1x96xf32> to vector<1x64xf32>
    %76 = vector.extract_strided_slice %74 {offsets = [0, 0], sizes = [1, 64], strides = [1, 1]} : vector<1x96xf32> to vector<1x64xf32>
    %77 = arith.addf %75, %76 : vector<1x64xf32>
    %78 = arith.negf %77 : vector<1x64xf32>
    %79 = math.exp %78 : vector<1x64xf32>
    %cst_43 = arith.constant 1.000000e+00 : f32
    %80 = vector.broadcast %cst_43 : f32 to vector<1x64xf32>
    %81 = arith.addf %80, %79 : vector<1x64xf32>
    %82 = arith.divf %80, %81 : vector<1x64xf32>
    %83 = vector.extract_strided_slice %82 {offsets = [0, 0], sizes = [1, 32], strides = [1, 1]} : vector<1x64xf32> to vector<1x32xf32>
    %84 = vector.extract_strided_slice %82 {offsets = [0, 32], sizes = [1, 32], strides = [1, 1]} : vector<1x64xf32> to vector<1x32xf32>
    %85 = vector.extract_strided_slice %73 {offsets = [0, 64], sizes = [1, 32], strides = [1, 1]} : vector<1x96xf32> to vector<1x32xf32>
    %86 = vector.extract_strided_slice %74 {offsets = [0, 64], sizes = [1, 32], strides = [1, 1]} : vector<1x96xf32> to vector<1x32xf32>
    %87 = arith.mulf %83, %86 : vector<1x32xf32>
    %88 = arith.addf %85, %87 : vector<1x32xf32>
    %89 = math.tanh %88 : vector<1x32xf32>
    %cst_44 = arith.constant 1.000000e+00 : f32
    %90 = vector.broadcast %cst_44 : f32 to vector<1x32xf32>
    %91 = arith.subf %90, %84 : vector<1x32xf32>
    %92 = arith.mulf %91, %89 : vector<1x32xf32>
    %93 = arith.mulf %84, %47 : vector<1x32xf32>
    %94 = arith.addf %92, %93 : vector<1x32xf32>
    %c0_45 = arith.constant 0 : index
    %c0_46 = arith.constant 0 : index
    %95 = vector.load %arg15[%c0_45, %c0_46] : memref<8x32xf32, #tpu.memory_space<vmem>>, vector<1x32xf32>
    tpu.vector_store %arg15[%c0_45, %c0_46], %72 {strides = array<i32>} : memref<8x32xf32, #tpu.memory_space<vmem>>, vector<1x32xf32>,
    %c7_47 = arith.constant 7 : index
    %c0_48 = arith.constant 0 : index
    %96 = vector.load %arg16[%c7_47, %c0_48] : memref<8x32xf32, #tpu.memory_space<vmem>>, vector<1x32xf32>
    tpu.vector_store %arg16[%c7_47, %c0_48], %94 {strides = array<i32>} : memref<8x32xf32, #tpu.memory_space<vmem>>, vector<1x32xf32>,
    %97 = tpu.concatenate %72, %94 in 1 : vector<1x32xf32>, vector<1x32xf32> -> vector<1x64xf32>
    %98 = vector.extract_strided_slice %97 {offsets = [0, 0], sizes = [1, 32], strides = [1, 1]} : vector<1x64xf32> to vector<1x32xf32>
    %99 = vector.extract_strided_slice %97 {offsets = [0, 32], sizes = [1, 32], strides = [1, 1]} : vector<1x64xf32> to vector<1x32xf32>
    %100 = arith.truncf %97 : vector<1x64xf32> to vector<1x64xbf16>
    %cst_49 = arith.constant dense<0.000000e+00> : vector<1x192xf32>
    %101 = tpu.matmul %100, %39, %cst_49 {dimension_numbers = #tpu.dot_dimension_numbers<[1], [0], [0], [1], [0, 0, 1, 1], [], []>} : vector<1x64xbf16>, vector<64x192xbf16>, vector<1x192xf32> -> vector<1x192xf32>
    %102 = arith.addf %101, %40 : vector<1x192xf32>
    %103 = vector.extract_strided_slice %38 {offsets = [1, 0], sizes = [1, 96], strides = [1, 1]} : vector<8x192xf32> to vector<1x96xf32>
    %104 = vector.extract_strided_slice %102 {offsets = [0, 0], sizes = [1, 96], strides = [1, 1]} : vector<1x192xf32> to vector<1x96xf32>
    %105 = vector.extract_strided_slice %103 {offsets = [0, 0], sizes = [1, 64], strides = [1, 1]} : vector<1x96xf32> to vector<1x64xf32>
    %106 = vector.extract_strided_slice %104 {offsets = [0, 0], sizes = [1, 64], strides = [1, 1]} : vector<1x96xf32> to vector<1x64xf32>
    %107 = arith.addf %105, %106 : vector<1x64xf32>
    %108 = arith.negf %107 : vector<1x64xf32>
    %109 = math.exp %108 : vector<1x64xf32>
    %cst_50 = arith.constant 1.000000e+00 : f32
    %110 = vector.broadcast %cst_50 : f32 to vector<1x64xf32>
    %111 = arith.addf %110, %109 : vector<1x64xf32>
    %112 = arith.divf %110, %111 : vector<1x64xf32>
    %113 = vector.extract_strided_slice %112 {offsets = [0, 0], sizes = [1, 32], strides = [1, 1]} : vector<1x64xf32> to vector<1x32xf32>
    %114 = vector.extract_strided_slice %112 {offsets = [0, 32], sizes = [1, 32], strides = [1, 1]} : vector<1x64xf32> to vector<1x32xf32>
    %115 = vector.extract_strided_slice %103 {offsets = [0, 64], sizes = [1, 32], strides = [1, 1]} : vector<1x96xf32> to vector<1x32xf32>
    %116 = vector.extract_strided_slice %104 {offsets = [0, 64], sizes = [1, 32], strides = [1, 1]} : vector<1x96xf32> to vector<1x32xf32>
    %117 = arith.mulf %113, %116 : vector<1x32xf32>
    %118 = arith.addf %115, %117 : vector<1x32xf32>
    %119 = math.tanh %118 : vector<1x32xf32>
    %cst_51 = arith.constant 1.000000e+00 : f32
    %120 = vector.broadcast %cst_51 : f32 to vector<1x32xf32>
    %121 = arith.subf %120, %114 : vector<1x32xf32>
    %122 = arith.mulf %121, %119 : vector<1x32xf32>
    %123 = arith.mulf %114, %98 : vector<1x32xf32>
    %124 = arith.addf %122, %123 : vector<1x32xf32>
    %125 = vector.extract_strided_slice %38 {offsets = [6, 96], sizes = [1, 96], strides = [1, 1]} : vector<8x192xf32> to vector<1x96xf32>
    %126 = vector.extract_strided_slice %102 {offsets = [0, 96], sizes = [1, 96], strides = [1, 1]} : vector<1x192xf32> to vector<1x96xf32>
    %127 = vector.extract_strided_slice %125 {offsets = [0, 0], sizes = [1, 64], strides = [1, 1]} : vector<1x96xf32> to vector<1x64xf32>
    %128 = vector.extract_strided_slice %126 {offsets = [0, 0], sizes = [1, 64], strides = [1, 1]} : vector<1x96xf32> to vector<1x64xf32>
    %129 = arith.addf %127, %128 : vector<1x64xf32>
    %130 = arith.negf %129 : vector<1x64xf32>
    %131 = math.exp %130 : vector<1x64xf32>
    %cst_52 = arith.constant 1.000000e+00 : f32
    %132 = vector.broadcast %cst_52 : f32 to vector<1x64xf32>
    %133 = arith.addf %132, %131 : vector<1x64xf32>
    %134 = arith.divf %132, %133 : vector<1x64xf32>
    %135 = vector.extract_strided_slice %134 {offsets = [0, 0], sizes = [1, 32], strides = [1, 1]} : vector<1x64xf32> to vector<1x32xf32>
    %136 = vector.extract_strided_slice %134 {offsets = [0, 32], sizes = [1, 32], strides = [1, 1]} : vector<1x64xf32> to vector<1x32xf32>
    %137 = vector.extract_strided_slice %125 {offsets = [0, 64], sizes = [1, 32], strides = [1, 1]} : vector<1x96xf32> to vector<1x32xf32>
    %138 = vector.extract_strided_slice %126 {offsets = [0, 64], sizes = [1, 32], strides = [1, 1]} : vector<1x96xf32> to vector<1x32xf32>
    %139 = arith.mulf %135, %138 : vector<1x32xf32>
    %140 = arith.addf %137, %139 : vector<1x32xf32>
    %141 = math.tanh %140 : vector<1x32xf32>
    %cst_53 = arith.constant 1.000000e+00 : f32
    %142 = vector.broadcast %cst_53 : f32 to vector<1x32xf32>
    %143 = arith.subf %142, %136 : vector<1x32xf32>
    %144 = arith.mulf %143, %141 : vector<1x32xf32>
    %145 = arith.mulf %136, %99 : vector<1x32xf32>
    %146 = arith.addf %144, %145 : vector<1x32xf32>
    %c1_54 = arith.constant 1 : index
    %c0_55 = arith.constant 0 : index
    %147 = vector.load %arg15[%c1_54, %c0_55] : memref<8x32xf32, #tpu.memory_space<vmem>>, vector<1x32xf32>
    tpu.vector_store %arg15[%c1_54, %c0_55], %124 {strides = array<i32>} : memref<8x32xf32, #tpu.memory_space<vmem>>, vector<1x32xf32>,
    %c6_56 = arith.constant 6 : index
    %c0_57 = arith.constant 0 : index
    %148 = vector.load %arg16[%c6_56, %c0_57] : memref<8x32xf32, #tpu.memory_space<vmem>>, vector<1x32xf32>
    tpu.vector_store %arg16[%c6_56, %c0_57], %146 {strides = array<i32>} : memref<8x32xf32, #tpu.memory_space<vmem>>, vector<1x32xf32>,
    %149 = tpu.concatenate %124, %146 in 1 : vector<1x32xf32>, vector<1x32xf32> -> vector<1x64xf32>
    %150 = vector.extract_strided_slice %149 {offsets = [0, 0], sizes = [1, 32], strides = [1, 1]} : vector<1x64xf32> to vector<1x32xf32>
    %151 = vector.extract_strided_slice %149 {offsets = [0, 32], sizes = [1, 32], strides = [1, 1]} : vector<1x64xf32> to vector<1x32xf32>
    %152 = arith.truncf %149 : vector<1x64xf32> to vector<1x64xbf16>
    %cst_58 = arith.constant dense<0.000000e+00> : vector<1x192xf32>
    %153 = tpu.matmul %152, %39, %cst_58 {dimension_numbers = #tpu.dot_dimension_numbers<[1], [0], [0], [1], [0, 0, 1, 1], [], []>} : vector<1x64xbf16>, vector<64x192xbf16>, vector<1x192xf32> -> vector<1x192xf32>
    %154 = arith.addf %153, %40 : vector<1x192xf32>
    %155 = vector.extract_strided_slice %38 {offsets = [2, 0], sizes = [1, 96], strides = [1, 1]} : vector<8x192xf32> to vector<1x96xf32>
    %156 = vector.extract_strided_slice %154 {offsets = [0, 0], sizes = [1, 96], strides = [1, 1]} : vector<1x192xf32> to vector<1x96xf32>
    %157 = vector.extract_strided_slice %155 {offsets = [0, 0], sizes = [1, 64], strides = [1, 1]} : vector<1x96xf32> to vector<1x64xf32>
    %158 = vector.extract_strided_slice %156 {offsets = [0, 0], sizes = [1, 64], strides = [1, 1]} : vector<1x96xf32> to vector<1x64xf32>
    %159 = arith.addf %157, %158 : vector<1x64xf32>
    %160 = arith.negf %159 : vector<1x64xf32>
    %161 = math.exp %160 : vector<1x64xf32>
    %cst_59 = arith.constant 1.000000e+00 : f32
    %162 = vector.broadcast %cst_59 : f32 to vector<1x64xf32>
    %163 = arith.addf %162, %161 : vector<1x64xf32>
    %164 = arith.divf %162, %163 : vector<1x64xf32>
    %165 = vector.extract_strided_slice %164 {offsets = [0, 0], sizes = [1, 32], strides = [1, 1]} : vector<1x64xf32> to vector<1x32xf32>
    %166 = vector.extract_strided_slice %164 {offsets = [0, 32], sizes = [1, 32], strides = [1, 1]} : vector<1x64xf32> to vector<1x32xf32>
    %167 = vector.extract_strided_slice %155 {offsets = [0, 64], sizes = [1, 32], strides = [1, 1]} : vector<1x96xf32> to vector<1x32xf32>
    %168 = vector.extract_strided_slice %156 {offsets = [0, 64], sizes = [1, 32], strides = [1, 1]} : vector<1x96xf32> to vector<1x32xf32>
    %169 = arith.mulf %165, %168 : vector<1x32xf32>
    %170 = arith.addf %167, %169 : vector<1x32xf32>
    %171 = math.tanh %170 : vector<1x32xf32>
    %cst_60 = arith.constant 1.000000e+00 : f32
    %172 = vector.broadcast %cst_60 : f32 to vector<1x32xf32>
    %173 = arith.subf %172, %166 : vector<1x32xf32>
    %174 = arith.mulf %173, %171 : vector<1x32xf32>
    %175 = arith.mulf %166, %150 : vector<1x32xf32>
    %176 = arith.addf %174, %175 : vector<1x32xf32>
    %177 = vector.extract_strided_slice %38 {offsets = [5, 96], sizes = [1, 96], strides = [1, 1]} : vector<8x192xf32> to vector<1x96xf32>
    %178 = vector.extract_strided_slice %154 {offsets = [0, 96], sizes = [1, 96], strides = [1, 1]} : vector<1x192xf32> to vector<1x96xf32>
    %179 = vector.extract_strided_slice %177 {offsets = [0, 0], sizes = [1, 64], strides = [1, 1]} : vector<1x96xf32> to vector<1x64xf32>
    %180 = vector.extract_strided_slice %178 {offsets = [0, 0], sizes = [1, 64], strides = [1, 1]} : vector<1x96xf32> to vector<1x64xf32>
    %181 = arith.addf %179, %180 : vector<1x64xf32>
    %182 = arith.negf %181 : vector<1x64xf32>
    %183 = math.exp %182 : vector<1x64xf32>
    %cst_61 = arith.constant 1.000000e+00 : f32
    %184 = vector.broadcast %cst_61 : f32 to vector<1x64xf32>
    %185 = arith.addf %184, %183 : vector<1x64xf32>
    %186 = arith.divf %184, %185 : vector<1x64xf32>
    %187 = vector.extract_strided_slice %186 {offsets = [0, 0], sizes = [1, 32], strides = [1, 1]} : vector<1x64xf32> to vector<1x32xf32>
    %188 = vector.extract_strided_slice %186 {offsets = [0, 32], sizes = [1, 32], strides = [1, 1]} : vector<1x64xf32> to vector<1x32xf32>
    %189 = vector.extract_strided_slice %177 {offsets = [0, 64], sizes = [1, 32], strides = [1, 1]} : vector<1x96xf32> to vector<1x32xf32>
    %190 = vector.extract_strided_slice %178 {offsets = [0, 64], sizes = [1, 32], strides = [1, 1]} : vector<1x96xf32> to vector<1x32xf32>
    %191 = arith.mulf %187, %190 : vector<1x32xf32>
    %192 = arith.addf %189, %191 : vector<1x32xf32>
    %193 = math.tanh %192 : vector<1x32xf32>
    %cst_62 = arith.constant 1.000000e+00 : f32
    %194 = vector.broadcast %cst_62 : f32 to vector<1x32xf32>
    %195 = arith.subf %194, %188 : vector<1x32xf32>
    %196 = arith.mulf %195, %193 : vector<1x32xf32>
    %197 = arith.mulf %188, %151 : vector<1x32xf32>
    %198 = arith.addf %196, %197 : vector<1x32xf32>
    %c2_63 = arith.constant 2 : index
    %c0_64 = arith.constant 0 : index
    %199 = vector.load %arg15[%c2_63, %c0_64] : memref<8x32xf32, #tpu.memory_space<vmem>>, vector<1x32xf32>
    tpu.vector_store %arg15[%c2_63, %c0_64], %176 {strides = array<i32>} : memref<8x32xf32, #tpu.memory_space<vmem>>, vector<1x32xf32>,
    %c5_65 = arith.constant 5 : index
    %c0_66 = arith.constant 0 : index
    %200 = vector.load %arg16[%c5_65, %c0_66] : memref<8x32xf32, #tpu.memory_space<vmem>>, vector<1x32xf32>
    tpu.vector_store %arg16[%c5_65, %c0_66], %198 {strides = array<i32>} : memref<8x32xf32, #tpu.memory_space<vmem>>, vector<1x32xf32>,
    %201 = tpu.concatenate %176, %198 in 1 : vector<1x32xf32>, vector<1x32xf32> -> vector<1x64xf32>
    %202 = vector.extract_strided_slice %201 {offsets = [0, 0], sizes = [1, 32], strides = [1, 1]} : vector<1x64xf32> to vector<1x32xf32>
    %203 = vector.extract_strided_slice %201 {offsets = [0, 32], sizes = [1, 32], strides = [1, 1]} : vector<1x64xf32> to vector<1x32xf32>
    %204 = arith.truncf %201 : vector<1x64xf32> to vector<1x64xbf16>
    %cst_67 = arith.constant dense<0.000000e+00> : vector<1x192xf32>
    %205 = tpu.matmul %204, %39, %cst_67 {dimension_numbers = #tpu.dot_dimension_numbers<[1], [0], [0], [1], [0, 0, 1, 1], [], []>} : vector<1x64xbf16>, vector<64x192xbf16>, vector<1x192xf32> -> vector<1x192xf32>
    %206 = arith.addf %205, %40 : vector<1x192xf32>
    %207 = vector.extract_strided_slice %38 {offsets = [3, 0], sizes = [1, 96], strides = [1, 1]} : vector<8x192xf32> to vector<1x96xf32>
    %208 = vector.extract_strided_slice %206 {offsets = [0, 0], sizes = [1, 96], strides = [1, 1]} : vector<1x192xf32> to vector<1x96xf32>
    %209 = vector.extract_strided_slice %207 {offsets = [0, 0], sizes = [1, 64], strides = [1, 1]} : vector<1x96xf32> to vector<1x64xf32>
    %210 = vector.extract_strided_slice %208 {offsets = [0, 0], sizes = [1, 64], strides = [1, 1]} : vector<1x96xf32> to vector<1x64xf32>
    %211 = arith.addf %209, %210 : vector<1x64xf32>
    %212 = arith.negf %211 : vector<1x64xf32>
    %213 = math.exp %212 : vector<1x64xf32>
    %cst_68 = arith.constant 1.000000e+00 : f32
    %214 = vector.broadcast %cst_68 : f32 to vector<1x64xf32>
    %215 = arith.addf %214, %213 : vector<1x64xf32>
    %216 = arith.divf %214, %215 : vector<1x64xf32>
    %217 = vector.extract_strided_slice %216 {offsets = [0, 0], sizes = [1, 32], strides = [1, 1]} : vector<1x64xf32> to vector<1x32xf32>
    %218 = vector.extract_strided_slice %216 {offsets = [0, 32], sizes = [1, 32], strides = [1, 1]} : vector<1x64xf32> to vector<1x32xf32>
    %219 = vector.extract_strided_slice %207 {offsets = [0, 64], sizes = [1, 32], strides = [1, 1]} : vector<1x96xf32> to vector<1x32xf32>
    %220 = vector.extract_strided_slice %208 {offsets = [0, 64], sizes = [1, 32], strides = [1, 1]} : vector<1x96xf32> to vector<1x32xf32>
    %221 = arith.mulf %217, %220 : vector<1x32xf32>
    %222 = arith.addf %219, %221 : vector<1x32xf32>
    %223 = math.tanh %222 : vector<1x32xf32>
    %cst_69 = arith.constant 1.000000e+00 : f32
    %224 = vector.broadcast %cst_69 : f32 to vector<1x32xf32>
    %225 = arith.subf %224, %218 : vector<1x32xf32>
    %226 = arith.mulf %225, %223 : vector<1x32xf32>
    %227 = arith.mulf %218, %202 : vector<1x32xf32>
    %228 = arith.addf %226, %227 : vector<1x32xf32>
    %229 = vector.extract_strided_slice %38 {offsets = [4, 96], sizes = [1, 96], strides = [1, 1]} : vector<8x192xf32> to vector<1x96xf32>
    %230 = vector.extract_strided_slice %206 {offsets = [0, 96], sizes = [1, 96], strides = [1, 1]} : vector<1x192xf32> to vector<1x96xf32>
    %231 = vector.extract_strided_slice %229 {offsets = [0, 0], sizes = [1, 64], strides = [1, 1]} : vector<1x96xf32> to vector<1x64xf32>
    %232 = vector.extract_strided_slice %230 {offsets = [0, 0], sizes = [1, 64], strides = [1, 1]} : vector<1x96xf32> to vector<1x64xf32>
    %233 = arith.addf %231, %232 : vector<1x64xf32>
    %234 = arith.negf %233 : vector<1x64xf32>
    %235 = math.exp %234 : vector<1x64xf32>
    %cst_70 = arith.constant 1.000000e+00 : f32
    %236 = vector.broadcast %cst_70 : f32 to vector<1x64xf32>
    %237 = arith.addf %236, %235 : vector<1x64xf32>
    %238 = arith.divf %236, %237 : vector<1x64xf32>
    %239 = vector.extract_strided_slice %238 {offsets = [0, 0], sizes = [1, 32], strides = [1, 1]} : vector<1x64xf32> to vector<1x32xf32>
    %240 = vector.extract_strided_slice %238 {offsets = [0, 32], sizes = [1, 32], strides = [1, 1]} : vector<1x64xf32> to vector<1x32xf32>
    %241 = vector.extract_strided_slice %229 {offsets = [0, 64], sizes = [1, 32], strides = [1, 1]} : vector<1x96xf32> to vector<1x32xf32>
    %242 = vector.extract_strided_slice %230 {offsets = [0, 64], sizes = [1, 32], strides = [1, 1]} : vector<1x96xf32> to vector<1x32xf32>
    %243 = arith.mulf %239, %242 : vector<1x32xf32>
    %244 = arith.addf %241, %243 : vector<1x32xf32>
    %245 = math.tanh %244 : vector<1x32xf32>
    %cst_71 = arith.constant 1.000000e+00 : f32
    %246 = vector.broadcast %cst_71 : f32 to vector<1x32xf32>
    %247 = arith.subf %246, %240 : vector<1x32xf32>
    %248 = arith.mulf %247, %245 : vector<1x32xf32>
    %249 = arith.mulf %240, %203 : vector<1x32xf32>
    %250 = arith.addf %248, %249 : vector<1x32xf32>
    %c3_72 = arith.constant 3 : index
    %c0_73 = arith.constant 0 : index
    %251 = vector.load %arg15[%c3_72, %c0_73] : memref<8x32xf32, #tpu.memory_space<vmem>>, vector<1x32xf32>
    tpu.vector_store %arg15[%c3_72, %c0_73], %228 {strides = array<i32>} : memref<8x32xf32, #tpu.memory_space<vmem>>, vector<1x32xf32>,
    %c4_74 = arith.constant 4 : index
    %c0_75 = arith.constant 0 : index
    %252 = vector.load %arg16[%c4_74, %c0_75] : memref<8x32xf32, #tpu.memory_space<vmem>>, vector<1x32xf32>
    tpu.vector_store %arg16[%c4_74, %c0_75], %250 {strides = array<i32>} : memref<8x32xf32, #tpu.memory_space<vmem>>, vector<1x32xf32>,
    %253 = tpu.concatenate %228, %250 in 1 : vector<1x32xf32>, vector<1x32xf32> -> vector<1x64xf32>
    %254 = vector.extract_strided_slice %253 {offsets = [0, 0], sizes = [1, 32], strides = [1, 1]} : vector<1x64xf32> to vector<1x32xf32>
    %255 = vector.extract_strided_slice %253 {offsets = [0, 32], sizes = [1, 32], strides = [1, 1]} : vector<1x64xf32> to vector<1x32xf32>
    %256 = arith.truncf %253 : vector<1x64xf32> to vector<1x64xbf16>
    %cst_76 = arith.constant dense<0.000000e+00> : vector<1x192xf32>
    %257 = tpu.matmul %256, %39, %cst_76 {dimension_numbers = #tpu.dot_dimension_numbers<[1], [0], [0], [1], [0, 0, 1, 1], [], []>} : vector<1x64xbf16>, vector<64x192xbf16>, vector<1x192xf32> -> vector<1x192xf32>
    %258 = arith.addf %257, %40 : vector<1x192xf32>
    %259 = vector.extract_strided_slice %38 {offsets = [4, 0], sizes = [1, 96], strides = [1, 1]} : vector<8x192xf32> to vector<1x96xf32>
    %260 = vector.extract_strided_slice %258 {offsets = [0, 0], sizes = [1, 96], strides = [1, 1]} : vector<1x192xf32> to vector<1x96xf32>
    %261 = vector.extract_strided_slice %259 {offsets = [0, 0], sizes = [1, 64], strides = [1, 1]} : vector<1x96xf32> to vector<1x64xf32>
    %262 = vector.extract_strided_slice %260 {offsets = [0, 0], sizes = [1, 64], strides = [1, 1]} : vector<1x96xf32> to vector<1x64xf32>
    %263 = arith.addf %261, %262 : vector<1x64xf32>
    %264 = arith.negf %263 : vector<1x64xf32>
    %265 = math.exp %264 : vector<1x64xf32>
    %cst_77 = arith.constant 1.000000e+00 : f32
    %266 = vector.broadcast %cst_77 : f32 to vector<1x64xf32>
    %267 = arith.addf %266, %265 : vector<1x64xf32>
    %268 = arith.divf %266, %267 : vector<1x64xf32>
    %269 = vector.extract_strided_slice %268 {offsets = [0, 0], sizes = [1, 32], strides = [1, 1]} : vector<1x64xf32> to vector<1x32xf32>
    %270 = vector.extract_strided_slice %268 {offsets = [0, 32], sizes = [1, 32], strides = [1, 1]} : vector<1x64xf32> to vector<1x32xf32>
    %271 = vector.extract_strided_slice %259 {offsets = [0, 64], sizes = [1, 32], strides = [1, 1]} : vector<1x96xf32> to vector<1x32xf32>
    %272 = vector.extract_strided_slice %260 {offsets = [0, 64], sizes = [1, 32], strides = [1, 1]} : vector<1x96xf32> to vector<1x32xf32>
    %273 = arith.mulf %269, %272 : vector<1x32xf32>
    %274 = arith.addf %271, %273 : vector<1x32xf32>
    %275 = math.tanh %274 : vector<1x32xf32>
    %cst_78 = arith.constant 1.000000e+00 : f32
    %276 = vector.broadcast %cst_78 : f32 to vector<1x32xf32>
    %277 = arith.subf %276, %270 : vector<1x32xf32>
    %278 = arith.mulf %277, %275 : vector<1x32xf32>
    %279 = arith.mulf %270, %254 : vector<1x32xf32>
    %280 = arith.addf %278, %279 : vector<1x32xf32>
    %281 = vector.extract_strided_slice %38 {offsets = [3, 96], sizes = [1, 96], strides = [1, 1]} : vector<8x192xf32> to vector<1x96xf32>
    %282 = vector.extract_strided_slice %258 {offsets = [0, 96], sizes = [1, 96], strides = [1, 1]} : vector<1x192xf32> to vector<1x96xf32>
    %283 = vector.extract_strided_slice %281 {offsets = [0, 0], sizes = [1, 64], strides = [1, 1]} : vector<1x96xf32> to vector<1x64xf32>
    %284 = vector.extract_strided_slice %282 {offsets = [0, 0], sizes = [1, 64], strides = [1, 1]} : vector<1x96xf32> to vector<1x64xf32>
    %285 = arith.addf %283, %284 : vector<1x64xf32>
    %286 = arith.negf %285 : vector<1x64xf32>
    %287 = math.exp %286 : vector<1x64xf32>
    %cst_79 = arith.constant 1.000000e+00 : f32
    %288 = vector.broadcast %cst_79 : f32 to vector<1x64xf32>
    %289 = arith.addf %288, %287 : vector<1x64xf32>
    %290 = arith.divf %288, %289 : vector<1x64xf32>
    %291 = vector.extract_strided_slice %290 {offsets = [0, 0], sizes = [1, 32], strides = [1, 1]} : vector<1x64xf32> to vector<1x32xf32>
    %292 = vector.extract_strided_slice %290 {offsets = [0, 32], sizes = [1, 32], strides = [1, 1]} : vector<1x64xf32> to vector<1x32xf32>
    %293 = vector.extract_strided_slice %281 {offsets = [0, 64], sizes = [1, 32], strides = [1, 1]} : vector<1x96xf32> to vector<1x32xf32>
    %294 = vector.extract_strided_slice %282 {offsets = [0, 64], sizes = [1, 32], strides = [1, 1]} : vector<1x96xf32> to vector<1x32xf32>
    %295 = arith.mulf %291, %294 : vector<1x32xf32>
    %296 = arith.addf %293, %295 : vector<1x32xf32>
    %297 = math.tanh %296 : vector<1x32xf32>
    %cst_80 = arith.constant 1.000000e+00 : f32
    %298 = vector.broadcast %cst_80 : f32 to vector<1x32xf32>
    %299 = arith.subf %298, %292 : vector<1x32xf32>
    %300 = arith.mulf %299, %297 : vector<1x32xf32>
    %301 = arith.mulf %292, %255 : vector<1x32xf32>
    %302 = arith.addf %300, %301 : vector<1x32xf32>
    %c4_81 = arith.constant 4 : index
    %c0_82 = arith.constant 0 : index
    %303 = vector.load %arg15[%c4_81, %c0_82] : memref<8x32xf32, #tpu.memory_space<vmem>>, vector<1x32xf32>
    tpu.vector_store %arg15[%c4_81, %c0_82], %280 {strides = array<i32>} : memref<8x32xf32, #tpu.memory_space<vmem>>, vector<1x32xf32>,
    %c3_83 = arith.constant 3 : index
    %c0_84 = arith.constant 0 : index
    %304 = vector.load %arg16[%c3_83, %c0_84] : memref<8x32xf32, #tpu.memory_space<vmem>>, vector<1x32xf32>
    tpu.vector_store %arg16[%c3_83, %c0_84], %302 {strides = array<i32>} : memref<8x32xf32, #tpu.memory_space<vmem>>, vector<1x32xf32>,
    %305 = tpu.concatenate %280, %302 in 1 : vector<1x32xf32>, vector<1x32xf32> -> vector<1x64xf32>
    %306 = vector.extract_strided_slice %305 {offsets = [0, 0], sizes = [1, 32], strides = [1, 1]} : vector<1x64xf32> to vector<1x32xf32>
    %307 = vector.extract_strided_slice %305 {offsets = [0, 32], sizes = [1, 32], strides = [1, 1]} : vector<1x64xf32> to vector<1x32xf32>
    %308 = arith.truncf %305 : vector<1x64xf32> to vector<1x64xbf16>
    %cst_85 = arith.constant dense<0.000000e+00> : vector<1x192xf32>
    %309 = tpu.matmul %308, %39, %cst_85 {dimension_numbers = #tpu.dot_dimension_numbers<[1], [0], [0], [1], [0, 0, 1, 1], [], []>} : vector<1x64xbf16>, vector<64x192xbf16>, vector<1x192xf32> -> vector<1x192xf32>
    %310 = arith.addf %309, %40 : vector<1x192xf32>
    %311 = vector.extract_strided_slice %38 {offsets = [5, 0], sizes = [1, 96], strides = [1, 1]} : vector<8x192xf32> to vector<1x96xf32>
    %312 = vector.extract_strided_slice %310 {offsets = [0, 0], sizes = [1, 96], strides = [1, 1]} : vector<1x192xf32> to vector<1x96xf32>
    %313 = vector.extract_strided_slice %311 {offsets = [0, 0], sizes = [1, 64], strides = [1, 1]} : vector<1x96xf32> to vector<1x64xf32>
    %314 = vector.extract_strided_slice %312 {offsets = [0, 0], sizes = [1, 64], strides = [1, 1]} : vector<1x96xf32> to vector<1x64xf32>
    %315 = arith.addf %313, %314 : vector<1x64xf32>
    %316 = arith.negf %315 : vector<1x64xf32>
    %317 = math.exp %316 : vector<1x64xf32>
    %cst_86 = arith.constant 1.000000e+00 : f32
    %318 = vector.broadcast %cst_86 : f32 to vector<1x64xf32>
    %319 = arith.addf %318, %317 : vector<1x64xf32>
    %320 = arith.divf %318, %319 : vector<1x64xf32>
    %321 = vector.extract_strided_slice %320 {offsets = [0, 0], sizes = [1, 32], strides = [1, 1]} : vector<1x64xf32> to vector<1x32xf32>
    %322 = vector.extract_strided_slice %320 {offsets = [0, 32], sizes = [1, 32], strides = [1, 1]} : vector<1x64xf32> to vector<1x32xf32>
    %323 = vector.extract_strided_slice %311 {offsets = [0, 64], sizes = [1, 32], strides = [1, 1]} : vector<1x96xf32> to vector<1x32xf32>
    %324 = vector.extract_strided_slice %312 {offsets = [0, 64], sizes = [1, 32], strides = [1, 1]} : vector<1x96xf32> to vector<1x32xf32>
    %325 = arith.mulf %321, %324 : vector<1x32xf32>
    %326 = arith.addf %323, %325 : vector<1x32xf32>
    %327 = math.tanh %326 : vector<1x32xf32>
    %cst_87 = arith.constant 1.000000e+00 : f32
    %328 = vector.broadcast %cst_87 : f32 to vector<1x32xf32>
    %329 = arith.subf %328, %322 : vector<1x32xf32>
    %330 = arith.mulf %329, %327 : vector<1x32xf32>
    %331 = arith.mulf %322, %306 : vector<1x32xf32>
    %332 = arith.addf %330, %331 : vector<1x32xf32>
    %333 = vector.extract_strided_slice %38 {offsets = [2, 96], sizes = [1, 96], strides = [1, 1]} : vector<8x192xf32> to vector<1x96xf32>
    %334 = vector.extract_strided_slice %310 {offsets = [0, 96], sizes = [1, 96], strides = [1, 1]} : vector<1x192xf32> to vector<1x96xf32>
    %335 = vector.extract_strided_slice %333 {offsets = [0, 0], sizes = [1, 64], strides = [1, 1]} : vector<1x96xf32> to vector<1x64xf32>
    %336 = vector.extract_strided_slice %334 {offsets = [0, 0], sizes = [1, 64], strides = [1, 1]} : vector<1x96xf32> to vector<1x64xf32>
    %337 = arith.addf %335, %336 : vector<1x64xf32>
    %338 = arith.negf %337 : vector<1x64xf32>
    %339 = math.exp %338 : vector<1x64xf32>
    %cst_88 = arith.constant 1.000000e+00 : f32
    %340 = vector.broadcast %cst_88 : f32 to vector<1x64xf32>
    %341 = arith.addf %340, %339 : vector<1x64xf32>
    %342 = arith.divf %340, %341 : vector<1x64xf32>
    %343 = vector.extract_strided_slice %342 {offsets = [0, 0], sizes = [1, 32], strides = [1, 1]} : vector<1x64xf32> to vector<1x32xf32>
    %344 = vector.extract_strided_slice %342 {offsets = [0, 32], sizes = [1, 32], strides = [1, 1]} : vector<1x64xf32> to vector<1x32xf32>
    %345 = vector.extract_strided_slice %333 {offsets = [0, 64], sizes = [1, 32], strides = [1, 1]} : vector<1x96xf32> to vector<1x32xf32>
    %346 = vector.extract_strided_slice %334 {offsets = [0, 64], sizes = [1, 32], strides = [1, 1]} : vector<1x96xf32> to vector<1x32xf32>
    %347 = arith.mulf %343, %346 : vector<1x32xf32>
    %348 = arith.addf %345, %347 : vector<1x32xf32>
    %349 = math.tanh %348 : vector<1x32xf32>
    %cst_89 = arith.constant 1.000000e+00 : f32
    %350 = vector.broadcast %cst_89 : f32 to vector<1x32xf32>
    %351 = arith.subf %350, %344 : vector<1x32xf32>
    %352 = arith.mulf %351, %349 : vector<1x32xf32>
    %353 = arith.mulf %344, %307 : vector<1x32xf32>
    %354 = arith.addf %352, %353 : vector<1x32xf32>
    %c5_90 = arith.constant 5 : index
    %c0_91 = arith.constant 0 : index
    %355 = vector.load %arg15[%c5_90, %c0_91] : memref<8x32xf32, #tpu.memory_space<vmem>>, vector<1x32xf32>
    tpu.vector_store %arg15[%c5_90, %c0_91], %332 {strides = array<i32>} : memref<8x32xf32, #tpu.memory_space<vmem>>, vector<1x32xf32>,
    %c2_92 = arith.constant 2 : index
    %c0_93 = arith.constant 0 : index
    %356 = vector.load %arg16[%c2_92, %c0_93] : memref<8x32xf32, #tpu.memory_space<vmem>>, vector<1x32xf32>
    tpu.vector_store %arg16[%c2_92, %c0_93], %354 {strides = array<i32>} : memref<8x32xf32, #tpu.memory_space<vmem>>, vector<1x32xf32>,
    %357 = tpu.concatenate %332, %354 in 1 : vector<1x32xf32>, vector<1x32xf32> -> vector<1x64xf32>
    %358 = vector.extract_strided_slice %357 {offsets = [0, 0], sizes = [1, 32], strides = [1, 1]} : vector<1x64xf32> to vector<1x32xf32>
    %359 = vector.extract_strided_slice %357 {offsets = [0, 32], sizes = [1, 32], strides = [1, 1]} : vector<1x64xf32> to vector<1x32xf32>
    %360 = arith.truncf %357 : vector<1x64xf32> to vector<1x64xbf16>
    %cst_94 = arith.constant dense<0.000000e+00> : vector<1x192xf32>
    %361 = tpu.matmul %360, %39, %cst_94 {dimension_numbers = #tpu.dot_dimension_numbers<[1], [0], [0], [1], [0, 0, 1, 1], [], []>} : vector<1x64xbf16>, vector<64x192xbf16>, vector<1x192xf32> -> vector<1x192xf32>
    %362 = arith.addf %361, %40 : vector<1x192xf32>
    %363 = vector.extract_strided_slice %38 {offsets = [6, 0], sizes = [1, 96], strides = [1, 1]} : vector<8x192xf32> to vector<1x96xf32>
    %364 = vector.extract_strided_slice %362 {offsets = [0, 0], sizes = [1, 96], strides = [1, 1]} : vector<1x192xf32> to vector<1x96xf32>
    %365 = vector.extract_strided_slice %363 {offsets = [0, 0], sizes = [1, 64], strides = [1, 1]} : vector<1x96xf32> to vector<1x64xf32>
    %366 = vector.extract_strided_slice %364 {offsets = [0, 0], sizes = [1, 64], strides = [1, 1]} : vector<1x96xf32> to vector<1x64xf32>
    %367 = arith.addf %365, %366 : vector<1x64xf32>
    %368 = arith.negf %367 : vector<1x64xf32>
    %369 = math.exp %368 : vector<1x64xf32>
    %cst_95 = arith.constant 1.000000e+00 : f32
    %370 = vector.broadcast %cst_95 : f32 to vector<1x64xf32>
    %371 = arith.addf %370, %369 : vector<1x64xf32>
    %372 = arith.divf %370, %371 : vector<1x64xf32>
    %373 = vector.extract_strided_slice %372 {offsets = [0, 0], sizes = [1, 32], strides = [1, 1]} : vector<1x64xf32> to vector<1x32xf32>
    %374 = vector.extract_strided_slice %372 {offsets = [0, 32], sizes = [1, 32], strides = [1, 1]} : vector<1x64xf32> to vector<1x32xf32>
    %375 = vector.extract_strided_slice %363 {offsets = [0, 64], sizes = [1, 32], strides = [1, 1]} : vector<1x96xf32> to vector<1x32xf32>
    %376 = vector.extract_strided_slice %364 {offsets = [0, 64], sizes = [1, 32], strides = [1, 1]} : vector<1x96xf32> to vector<1x32xf32>
    %377 = arith.mulf %373, %376 : vector<1x32xf32>
    %378 = arith.addf %375, %377 : vector<1x32xf32>
    %379 = math.tanh %378 : vector<1x32xf32>
    %cst_96 = arith.constant 1.000000e+00 : f32
    %380 = vector.broadcast %cst_96 : f32 to vector<1x32xf32>
    %381 = arith.subf %380, %374 : vector<1x32xf32>
    %382 = arith.mulf %381, %379 : vector<1x32xf32>
    %383 = arith.mulf %374, %358 : vector<1x32xf32>
    %384 = arith.addf %382, %383 : vector<1x32xf32>
    %385 = vector.extract_strided_slice %38 {offsets = [1, 96], sizes = [1, 96], strides = [1, 1]} : vector<8x192xf32> to vector<1x96xf32>
    %386 = vector.extract_strided_slice %362 {offsets = [0, 96], sizes = [1, 96], strides = [1, 1]} : vector<1x192xf32> to vector<1x96xf32>
    %387 = vector.extract_strided_slice %385 {offsets = [0, 0], sizes = [1, 64], strides = [1, 1]} : vector<1x96xf32> to vector<1x64xf32>
    %388 = vector.extract_strided_slice %386 {offsets = [0, 0], sizes = [1, 64], strides = [1, 1]} : vector<1x96xf32> to vector<1x64xf32>
    %389 = arith.addf %387, %388 : vector<1x64xf32>
    %390 = arith.negf %389 : vector<1x64xf32>
    %391 = math.exp %390 : vector<1x64xf32>
    %cst_97 = arith.constant 1.000000e+00 : f32
    %392 = vector.broadcast %cst_97 : f32 to vector<1x64xf32>
    %393 = arith.addf %392, %391 : vector<1x64xf32>
    %394 = arith.divf %392, %393 : vector<1x64xf32>
    %395 = vector.extract_strided_slice %394 {offsets = [0, 0], sizes = [1, 32], strides = [1, 1]} : vector<1x64xf32> to vector<1x32xf32>
    %396 = vector.extract_strided_slice %394 {offsets = [0, 32], sizes = [1, 32], strides = [1, 1]} : vector<1x64xf32> to vector<1x32xf32>
    %397 = vector.extract_strided_slice %385 {offsets = [0, 64], sizes = [1, 32], strides = [1, 1]} : vector<1x96xf32> to vector<1x32xf32>
    %398 = vector.extract_strided_slice %386 {offsets = [0, 64], sizes = [1, 32], strides = [1, 1]} : vector<1x96xf32> to vector<1x32xf32>
    %399 = arith.mulf %395, %398 : vector<1x32xf32>
    %400 = arith.addf %397, %399 : vector<1x32xf32>
    %401 = math.tanh %400 : vector<1x32xf32>
    %cst_98 = arith.constant 1.000000e+00 : f32
    %402 = vector.broadcast %cst_98 : f32 to vector<1x32xf32>
    %403 = arith.subf %402, %396 : vector<1x32xf32>
    %404 = arith.mulf %403, %401 : vector<1x32xf32>
    %405 = arith.mulf %396, %359 : vector<1x32xf32>
    %406 = arith.addf %404, %405 : vector<1x32xf32>
    %c6_99 = arith.constant 6 : index
    %c0_100 = arith.constant 0 : index
    %407 = vector.load %arg15[%c6_99, %c0_100] : memref<8x32xf32, #tpu.memory_space<vmem>>, vector<1x32xf32>
    tpu.vector_store %arg15[%c6_99, %c0_100], %384 {strides = array<i32>} : memref<8x32xf32, #tpu.memory_space<vmem>>, vector<1x32xf32>,
    %c1_101 = arith.constant 1 : index
    %c0_102 = arith.constant 0 : index
    %408 = vector.load %arg16[%c1_101, %c0_102] : memref<8x32xf32, #tpu.memory_space<vmem>>, vector<1x32xf32>
    tpu.vector_store %arg16[%c1_101, %c0_102], %406 {strides = array<i32>} : memref<8x32xf32, #tpu.memory_space<vmem>>, vector<1x32xf32>,
    %409 = tpu.concatenate %384, %406 in 1 : vector<1x32xf32>, vector<1x32xf32> -> vector<1x64xf32>
    %410 = vector.extract_strided_slice %409 {offsets = [0, 0], sizes = [1, 32], strides = [1, 1]} : vector<1x64xf32> to vector<1x32xf32>
    %411 = vector.extract_strided_slice %409 {offsets = [0, 32], sizes = [1, 32], strides = [1, 1]} : vector<1x64xf32> to vector<1x32xf32>
    %412 = arith.truncf %409 : vector<1x64xf32> to vector<1x64xbf16>
    %cst_103 = arith.constant dense<0.000000e+00> : vector<1x192xf32>
    %413 = tpu.matmul %412, %39, %cst_103 {dimension_numbers = #tpu.dot_dimension_numbers<[1], [0], [0], [1], [0, 0, 1, 1], [], []>} : vector<1x64xbf16>, vector<64x192xbf16>, vector<1x192xf32> -> vector<1x192xf32>
    %414 = arith.addf %413, %40 : vector<1x192xf32>
    %415 = vector.extract_strided_slice %38 {offsets = [7, 0], sizes = [1, 96], strides = [1, 1]} : vector<8x192xf32> to vector<1x96xf32>
    %416 = vector.extract_strided_slice %414 {offsets = [0, 0], sizes = [1, 96], strides = [1, 1]} : vector<1x192xf32> to vector<1x96xf32>
    %417 = vector.extract_strided_slice %415 {offsets = [0, 0], sizes = [1, 64], strides = [1, 1]} : vector<1x96xf32> to vector<1x64xf32>
    %418 = vector.extract_strided_slice %416 {offsets = [0, 0], sizes = [1, 64], strides = [1, 1]} : vector<1x96xf32> to vector<1x64xf32>
    %419 = arith.addf %417, %418 : vector<1x64xf32>
    %420 = arith.negf %419 : vector<1x64xf32>
    %421 = math.exp %420 : vector<1x64xf32>
    %cst_104 = arith.constant 1.000000e+00 : f32
    %422 = vector.broadcast %cst_104 : f32 to vector<1x64xf32>
    %423 = arith.addf %422, %421 : vector<1x64xf32>
    %424 = arith.divf %422, %423 : vector<1x64xf32>
    %425 = vector.extract_strided_slice %424 {offsets = [0, 0], sizes = [1, 32], strides = [1, 1]} : vector<1x64xf32> to vector<1x32xf32>
    %426 = vector.extract_strided_slice %424 {offsets = [0, 32], sizes = [1, 32], strides = [1, 1]} : vector<1x64xf32> to vector<1x32xf32>
    %427 = vector.extract_strided_slice %415 {offsets = [0, 64], sizes = [1, 32], strides = [1, 1]} : vector<1x96xf32> to vector<1x32xf32>
    %428 = vector.extract_strided_slice %416 {offsets = [0, 64], sizes = [1, 32], strides = [1, 1]} : vector<1x96xf32> to vector<1x32xf32>
    %429 = arith.mulf %425, %428 : vector<1x32xf32>
    %430 = arith.addf %427, %429 : vector<1x32xf32>
    %431 = math.tanh %430 : vector<1x32xf32>
    %cst_105 = arith.constant 1.000000e+00 : f32
    %432 = vector.broadcast %cst_105 : f32 to vector<1x32xf32>
    %433 = arith.subf %432, %426 : vector<1x32xf32>
    %434 = arith.mulf %433, %431 : vector<1x32xf32>
    %435 = arith.mulf %426, %410 : vector<1x32xf32>
    %436 = arith.addf %434, %435 : vector<1x32xf32>
    %437 = vector.extract_strided_slice %38 {offsets = [0, 96], sizes = [1, 96], strides = [1, 1]} : vector<8x192xf32> to vector<1x96xf32>
    %438 = vector.extract_strided_slice %414 {offsets = [0, 96], sizes = [1, 96], strides = [1, 1]} : vector<1x192xf32> to vector<1x96xf32>
    %439 = vector.extract_strided_slice %437 {offsets = [0, 0], sizes = [1, 64], strides = [1, 1]} : vector<1x96xf32> to vector<1x64xf32>
    %440 = vector.extract_strided_slice %438 {offsets = [0, 0], sizes = [1, 64], strides = [1, 1]} : vector<1x96xf32> to vector<1x64xf32>
    %441 = arith.addf %439, %440 : vector<1x64xf32>
    %442 = arith.negf %441 : vector<1x64xf32>
    %443 = math.exp %442 : vector<1x64xf32>
    %cst_106 = arith.constant 1.000000e+00 : f32
    %444 = vector.broadcast %cst_106 : f32 to vector<1x64xf32>
    %445 = arith.addf %444, %443 : vector<1x64xf32>
    %446 = arith.divf %444, %445 : vector<1x64xf32>
    %447 = vector.extract_strided_slice %446 {offsets = [0, 0], sizes = [1, 32], strides = [1, 1]} : vector<1x64xf32> to vector<1x32xf32>
    %448 = vector.extract_strided_slice %446 {offsets = [0, 32], sizes = [1, 32], strides = [1, 1]} : vector<1x64xf32> to vector<1x32xf32>
    %449 = vector.extract_strided_slice %437 {offsets = [0, 64], sizes = [1, 32], strides = [1, 1]} : vector<1x96xf32> to vector<1x32xf32>
    %450 = vector.extract_strided_slice %438 {offsets = [0, 64], sizes = [1, 32], strides = [1, 1]} : vector<1x96xf32> to vector<1x32xf32>
    %451 = arith.mulf %447, %450 : vector<1x32xf32>
    %452 = arith.addf %449, %451 : vector<1x32xf32>
    %453 = math.tanh %452 : vector<1x32xf32>
    %cst_107 = arith.constant 1.000000e+00 : f32
    %454 = vector.broadcast %cst_107 : f32 to vector<1x32xf32>
    %455 = arith.subf %454, %448 : vector<1x32xf32>
    %456 = arith.mulf %455, %453 : vector<1x32xf32>
    %457 = arith.mulf %448, %411 : vector<1x32xf32>
    %458 = arith.addf %456, %457 : vector<1x32xf32>
    %c7_108 = arith.constant 7 : index
    %c0_109 = arith.constant 0 : index
    %459 = vector.load %arg15[%c7_108, %c0_109] : memref<8x32xf32, #tpu.memory_space<vmem>>, vector<1x32xf32>
    tpu.vector_store %arg15[%c7_108, %c0_109], %436 {strides = array<i32>} : memref<8x32xf32, #tpu.memory_space<vmem>>, vector<1x32xf32>,
    %c0_110 = arith.constant 0 : index
    %c0_111 = arith.constant 0 : index
    %460 = vector.load %arg16[%c0_110, %c0_111] : memref<8x32xf32, #tpu.memory_space<vmem>>, vector<1x32xf32>
    tpu.vector_store %arg16[%c0_110, %c0_111], %458 {strides = array<i32>} : memref<8x32xf32, #tpu.memory_space<vmem>>, vector<1x32xf32>,
    %c0_112 = arith.constant 0 : index
    %c0_113 = arith.constant 0 : index
    %461 = vector.load %arg15[%c0_112, %c0_113] : memref<8x32xf32, #tpu.memory_space<vmem>>, vector<8x32xf32>
    %c0_114 = arith.constant 0 : index
    %c0_115 = arith.constant 0 : index
    %462 = vector.load %arg16[%c0_114, %c0_115] : memref<8x32xf32, #tpu.memory_space<vmem>>, vector<8x32xf32>
    %463 = tpu.concatenate %461, %462 in 1 : vector<8x32xf32>, vector<8x32xf32> -> vector<8x64xf32>
    %464 = arith.truncf %463 : vector<8x64xf32> to vector<8x64xbf16>
    %c0_116 = arith.constant 0 : index
    %c0_117 = arith.constant 0 : index
    %c0_118 = arith.constant 0 : index
    %465 = vector.load %arg7[%c0_116, %c0_117, %c0_118] : memref<2x64x96xbf16, #tpu.memory_space<vmem>>, vector<1x64x96xbf16>
    %466 = vector.shape_cast %465 : vector<1x64x96xbf16> to vector<64x96xbf16>
    %cst_119 = arith.constant dense<0.000000e+00> : vector<8x96xf32>
    %467 = tpu.matmul %464, %466, %cst_119 {dimension_numbers = #tpu.dot_dimension_numbers<[1], [0], [0], [1], [0, 0, 1, 1], [], []>} : vector<8x64xbf16>, vector<64x96xbf16>, vector<8x96xf32> -> vector<8x96xf32>
    %c0_120 = arith.constant 0 : index
    %c0_121 = arith.constant 0 : index
    %c0_122 = arith.constant 0 : index
    %468 = vector.load %arg9[%c0_120, %c0_121, %c0_122] : memref<2x1x96xf32, #tpu.memory_space<vmem>>, vector<1x1x96xf32>
    %469 = vector.shape_cast %468 : vector<1x1x96xf32> to vector<1x96xf32>
    %470 = vector.broadcast %469 : vector<1x96xf32> to vector<8x96xf32>
    %471 = arith.addf %467, %470 : vector<8x96xf32>
    %c0_123 = arith.constant 0 : index
    %c0_124 = arith.constant 0 : index
    %c0_125 = arith.constant 0 : index
    %472 = vector.load %arg8[%c0_123, %c0_124, %c0_125] : memref<2x32x96xbf16, #tpu.memory_space<vmem>>, vector<1x32x96xbf16>
    %473 = vector.shape_cast %472 : vector<1x32x96xbf16> to vector<32x96xbf16>
    %c0_126 = arith.constant 0 : index
    %c0_127 = arith.constant 0 : index
    %c0_128 = arith.constant 0 : index
    %474 = vector.load %arg10[%c0_126, %c0_127, %c0_128] : memref<2x1x96xf32, #tpu.memory_space<vmem>>, vector<1x1x96xf32>
    %475 = vector.shape_cast %474 : vector<1x1x96xf32> to vector<1x96xf32>
    %c2_129 = arith.constant 2 : index
    %c0_130 = arith.constant 0 : index
    %c0_131 = arith.constant 0 : index
    %476 = vector.load %arg2[%c2_129, %c0_130, %c0_131] : memref<4x1x32xf32, #tpu.memory_space<vmem>>, vector<1x1x32xf32>
    %477 = vector.shape_cast %476 : vector<1x1x32xf32> to vector<1x32xf32>
    %478 = arith.truncf %477 : vector<1x32xf32> to vector<1x32xbf16>
    %cst_132 = arith.constant dense<0.000000e+00> : vector<1x96xf32>
    %479 = tpu.matmul %478, %473, %cst_132 {dimension_numbers = #tpu.dot_dimension_numbers<[1], [0], [0], [1], [0, 0, 1, 1], [], []>} : vector<1x32xbf16>, vector<32x96xbf16>, vector<1x96xf32> -> vector<1x96xf32>
    %480 = arith.addf %479, %475 : vector<1x96xf32>
    %481 = vector.extract_strided_slice %471 {offsets = [0, 0], sizes = [1, 96], strides = [1, 1]} : vector<8x96xf32> to vector<1x96xf32>
    %482 = vector.extract_strided_slice %481 {offsets = [0, 0], sizes = [1, 64], strides = [1, 1]} : vector<1x96xf32> to vector<1x64xf32>
    %483 = vector.extract_strided_slice %480 {offsets = [0, 0], sizes = [1, 64], strides = [1, 1]} : vector<1x96xf32> to vector<1x64xf32>
    %484 = arith.addf %482, %483 : vector<1x64xf32>
    %485 = arith.negf %484 : vector<1x64xf32>
    %486 = math.exp %485 : vector<1x64xf32>
    %cst_133 = arith.constant 1.000000e+00 : f32
    %487 = vector.broadcast %cst_133 : f32 to vector<1x64xf32>
    %488 = arith.addf %487, %486 : vector<1x64xf32>
    %489 = arith.divf %487, %488 : vector<1x64xf32>
    %490 = vector.extract_strided_slice %489 {offsets = [0, 0], sizes = [1, 32], strides = [1, 1]} : vector<1x64xf32> to vector<1x32xf32>
    %491 = vector.extract_strided_slice %489 {offsets = [0, 32], sizes = [1, 32], strides = [1, 1]} : vector<1x64xf32> to vector<1x32xf32>
    %492 = vector.extract_strided_slice %481 {offsets = [0, 64], sizes = [1, 32], strides = [1, 1]} : vector<1x96xf32> to vector<1x32xf32>
    %493 = vector.extract_strided_slice %480 {offsets = [0, 64], sizes = [1, 32], strides = [1, 1]} : vector<1x96xf32> to vector<1x32xf32>
    %494 = arith.mulf %490, %493 : vector<1x32xf32>
    %495 = arith.addf %492, %494 : vector<1x32xf32>
    %496 = math.tanh %495 : vector<1x32xf32>
    %cst_134 = arith.constant 1.000000e+00 : f32
    %497 = vector.broadcast %cst_134 : f32 to vector<1x32xf32>
    %498 = arith.subf %497, %491 : vector<1x32xf32>
    %499 = arith.mulf %498, %496 : vector<1x32xf32>
    %500 = arith.mulf %491, %477 : vector<1x32xf32>
    %501 = arith.addf %499, %500 : vector<1x32xf32>
    %502 = arith.truncf %501 : vector<1x32xf32> to vector<1x32xbf16>
    %cst_135 = arith.constant dense<0.000000e+00> : vector<1x96xf32>
    %503 = tpu.matmul %502, %473, %cst_135 {dimension_numbers = #tpu.dot_dimension_numbers<[1], [0], [0], [1], [0, 0, 1, 1], [], []>} : vector<1x32xbf16>, vector<32x96xbf16>, vector<1x96xf32> -> vector<1x96xf32>
    %504 = arith.addf %503, %475 : vector<1x96xf32>
    %505 = vector.extract_strided_slice %471 {offsets = [1, 0], sizes = [1, 96], strides = [1, 1]} : vector<8x96xf32> to vector<1x96xf32>
    %506 = vector.extract_strided_slice %505 {offsets = [0, 0], sizes = [1, 64], strides = [1, 1]} : vector<1x96xf32> to vector<1x64xf32>
    %507 = vector.extract_strided_slice %504 {offsets = [0, 0], sizes = [1, 64], strides = [1, 1]} : vector<1x96xf32> to vector<1x64xf32>
    %508 = arith.addf %506, %507 : vector<1x64xf32>
    %509 = arith.negf %508 : vector<1x64xf32>
    %510 = math.exp %509 : vector<1x64xf32>
    %cst_136 = arith.constant 1.000000e+00 : f32
    %511 = vector.broadcast %cst_136 : f32 to vector<1x64xf32>
    %512 = arith.addf %511, %510 : vector<1x64xf32>
    %513 = arith.divf %511, %512 : vector<1x64xf32>
    %514 = vector.extract_strided_slice %513 {offsets = [0, 0], sizes = [1, 32], strides = [1, 1]} : vector<1x64xf32> to vector<1x32xf32>
    %515 = vector.extract_strided_slice %513 {offsets = [0, 32], sizes = [1, 32], strides = [1, 1]} : vector<1x64xf32> to vector<1x32xf32>
    %516 = vector.extract_strided_slice %505 {offsets = [0, 64], sizes = [1, 32], strides = [1, 1]} : vector<1x96xf32> to vector<1x32xf32>
    %517 = vector.extract_strided_slice %504 {offsets = [0, 64], sizes = [1, 32], strides = [1, 1]} : vector<1x96xf32> to vector<1x32xf32>
    %518 = arith.mulf %514, %517 : vector<1x32xf32>
    %519 = arith.addf %516, %518 : vector<1x32xf32>
    %520 = math.tanh %519 : vector<1x32xf32>
    %cst_137 = arith.constant 1.000000e+00 : f32
    %521 = vector.broadcast %cst_137 : f32 to vector<1x32xf32>
    %522 = arith.subf %521, %515 : vector<1x32xf32>
    %523 = arith.mulf %522, %520 : vector<1x32xf32>
    %524 = arith.mulf %515, %501 : vector<1x32xf32>
    %525 = arith.addf %523, %524 : vector<1x32xf32>
    %526 = arith.truncf %525 : vector<1x32xf32> to vector<1x32xbf16>
    %cst_138 = arith.constant dense<0.000000e+00> : vector<1x96xf32>
    %527 = tpu.matmul %526, %473, %cst_138 {dimension_numbers = #tpu.dot_dimension_numbers<[1], [0], [0], [1], [0, 0, 1, 1], [], []>} : vector<1x32xbf16>, vector<32x96xbf16>, vector<1x96xf32> -> vector<1x96xf32>
    %528 = arith.addf %527, %475 : vector<1x96xf32>
    %529 = vector.extract_strided_slice %471 {offsets = [2, 0], sizes = [1, 96], strides = [1, 1]} : vector<8x96xf32> to vector<1x96xf32>
    %530 = vector.extract_strided_slice %529 {offsets = [0, 0], sizes = [1, 64], strides = [1, 1]} : vector<1x96xf32> to vector<1x64xf32>
    %531 = vector.extract_strided_slice %528 {offsets = [0, 0], sizes = [1, 64], strides = [1, 1]} : vector<1x96xf32> to vector<1x64xf32>
    %532 = arith.addf %530, %531 : vector<1x64xf32>
    %533 = arith.negf %532 : vector<1x64xf32>
    %534 = math.exp %533 : vector<1x64xf32>
    %cst_139 = arith.constant 1.000000e+00 : f32
    %535 = vector.broadcast %cst_139 : f32 to vector<1x64xf32>
    %536 = arith.addf %535, %534 : vector<1x64xf32>
    %537 = arith.divf %535, %536 : vector<1x64xf32>
    %538 = vector.extract_strided_slice %537 {offsets = [0, 0], sizes = [1, 32], strides = [1, 1]} : vector<1x64xf32> to vector<1x32xf32>
    %539 = vector.extract_strided_slice %537 {offsets = [0, 32], sizes = [1, 32], strides = [1, 1]} : vector<1x64xf32> to vector<1x32xf32>
    %540 = vector.extract_strided_slice %529 {offsets = [0, 64], sizes = [1, 32], strides = [1, 1]} : vector<1x96xf32> to vector<1x32xf32>
    %541 = vector.extract_strided_slice %528 {offsets = [0, 64], sizes = [1, 32], strides = [1, 1]} : vector<1x96xf32> to vector<1x32xf32>
    %542 = arith.mulf %538, %541 : vector<1x32xf32>
    %543 = arith.addf %540, %542 : vector<1x32xf32>
    %544 = math.tanh %543 : vector<1x32xf32>
    %cst_140 = arith.constant 1.000000e+00 : f32
    %545 = vector.broadcast %cst_140 : f32 to vector<1x32xf32>
    %546 = arith.subf %545, %539 : vector<1x32xf32>
    %547 = arith.mulf %546, %544 : vector<1x32xf32>
    %548 = arith.mulf %539, %525 : vector<1x32xf32>
    %549 = arith.addf %547, %548 : vector<1x32xf32>
    %550 = arith.truncf %549 : vector<1x32xf32> to vector<1x32xbf16>
    %cst_141 = arith.constant dense<0.000000e+00> : vector<1x96xf32>
    %551 = tpu.matmul %550, %473, %cst_141 {dimension_numbers = #tpu.dot_dimension_numbers<[1], [0], [0], [1], [0, 0, 1, 1], [], []>} : vector<1x32xbf16>, vector<32x96xbf16>, vector<1x96xf32> -> vector<1x96xf32>
    %552 = arith.addf %551, %475 : vector<1x96xf32>
    %553 = vector.extract_strided_slice %471 {offsets = [3, 0], sizes = [1, 96], strides = [1, 1]} : vector<8x96xf32> to vector<1x96xf32>
    %554 = vector.extract_strided_slice %553 {offsets = [0, 0], sizes = [1, 64], strides = [1, 1]} : vector<1x96xf32> to vector<1x64xf32>
    %555 = vector.extract_strided_slice %552 {offsets = [0, 0], sizes = [1, 64], strides = [1, 1]} : vector<1x96xf32> to vector<1x64xf32>
    %556 = arith.addf %554, %555 : vector<1x64xf32>
    %557 = arith.negf %556 : vector<1x64xf32>
    %558 = math.exp %557 : vector<1x64xf32>
    %cst_142 = arith.constant 1.000000e+00 : f32
    %559 = vector.broadcast %cst_142 : f32 to vector<1x64xf32>
    %560 = arith.addf %559, %558 : vector<1x64xf32>
    %561 = arith.divf %559, %560 : vector<1x64xf32>
    %562 = vector.extract_strided_slice %561 {offsets = [0, 0], sizes = [1, 32], strides = [1, 1]} : vector<1x64xf32> to vector<1x32xf32>
    %563 = vector.extract_strided_slice %561 {offsets = [0, 32], sizes = [1, 32], strides = [1, 1]} : vector<1x64xf32> to vector<1x32xf32>
    %564 = vector.extract_strided_slice %553 {offsets = [0, 64], sizes = [1, 32], strides = [1, 1]} : vector<1x96xf32> to vector<1x32xf32>
    %565 = vector.extract_strided_slice %552 {offsets = [0, 64], sizes = [1, 32], strides = [1, 1]} : vector<1x96xf32> to vector<1x32xf32>
    %566 = arith.mulf %562, %565 : vector<1x32xf32>
    %567 = arith.addf %564, %566 : vector<1x32xf32>
    %568 = math.tanh %567 : vector<1x32xf32>
    %cst_143 = arith.constant 1.000000e+00 : f32
    %569 = vector.broadcast %cst_143 : f32 to vector<1x32xf32>
    %570 = arith.subf %569, %563 : vector<1x32xf32>
    %571 = arith.mulf %570, %568 : vector<1x32xf32>
    %572 = arith.mulf %563, %549 : vector<1x32xf32>
    %573 = arith.addf %571, %572 : vector<1x32xf32>
    %574 = arith.truncf %573 : vector<1x32xf32> to vector<1x32xbf16>
    %cst_144 = arith.constant dense<0.000000e+00> : vector<1x96xf32>
    %575 = tpu.matmul %574, %473, %cst_144 {dimension_numbers = #tpu.dot_dimension_numbers<[1], [0], [0], [1], [0, 0, 1, 1], [], []>} : vector<1x32xbf16>, vector<32x96xbf16>, vector<1x96xf32> -> vector<1x96xf32>
    %576 = arith.addf %575, %475 : vector<1x96xf32>
    %577 = vector.extract_strided_slice %471 {offsets = [4, 0], sizes = [1, 96], strides = [1, 1]} : vector<8x96xf32> to vector<1x96xf32>
    %578 = vector.extract_strided_slice %577 {offsets = [0, 0], sizes = [1, 64], strides = [1, 1]} : vector<1x96xf32> to vector<1x64xf32>
    %579 = vector.extract_strided_slice %576 {offsets = [0, 0], sizes = [1, 64], strides = [1, 1]} : vector<1x96xf32> to vector<1x64xf32>
    %580 = arith.addf %578, %579 : vector<1x64xf32>
    %581 = arith.negf %580 : vector<1x64xf32>
    %582 = math.exp %581 : vector<1x64xf32>
    %cst_145 = arith.constant 1.000000e+00 : f32
    %583 = vector.broadcast %cst_145 : f32 to vector<1x64xf32>
    %584 = arith.addf %583, %582 : vector<1x64xf32>
    %585 = arith.divf %583, %584 : vector<1x64xf32>
    %586 = vector.extract_strided_slice %585 {offsets = [0, 0], sizes = [1, 32], strides = [1, 1]} : vector<1x64xf32> to vector<1x32xf32>
    %587 = vector.extract_strided_slice %585 {offsets = [0, 32], sizes = [1, 32], strides = [1, 1]} : vector<1x64xf32> to vector<1x32xf32>
    %588 = vector.extract_strided_slice %577 {offsets = [0, 64], sizes = [1, 32], strides = [1, 1]} : vector<1x96xf32> to vector<1x32xf32>
    %589 = vector.extract_strided_slice %576 {offsets = [0, 64], sizes = [1, 32], strides = [1, 1]} : vector<1x96xf32> to vector<1x32xf32>
    %590 = arith.mulf %586, %589 : vector<1x32xf32>
    %591 = arith.addf %588, %590 : vector<1x32xf32>
    %592 = math.tanh %591 : vector<1x32xf32>
    %cst_146 = arith.constant 1.000000e+00 : f32
    %593 = vector.broadcast %cst_146 : f32 to vector<1x32xf32>
    %594 = arith.subf %593, %587 : vector<1x32xf32>
    %595 = arith.mulf %594, %592 : vector<1x32xf32>
    %596 = arith.mulf %587, %573 : vector<1x32xf32>
    %597 = arith.addf %595, %596 : vector<1x32xf32>
    %598 = arith.truncf %597 : vector<1x32xf32> to vector<1x32xbf16>
    %cst_147 = arith.constant dense<0.000000e+00> : vector<1x96xf32>
    %599 = tpu.matmul %598, %473, %cst_147 {dimension_numbers = #tpu.dot_dimension_numbers<[1], [0], [0], [1], [0, 0, 1, 1], [], []>} : vector<1x32xbf16>, vector<32x96xbf16>, vector<1x96xf32> -> vector<1x96xf32>
    %600 = arith.addf %599, %475 : vector<1x96xf32>
    %601 = vector.extract_strided_slice %471 {offsets = [5, 0], sizes = [1, 96], strides = [1, 1]} : vector<8x96xf32> to vector<1x96xf32>
    %602 = vector.extract_strided_slice %601 {offsets = [0, 0], sizes = [1, 64], strides = [1, 1]} : vector<1x96xf32> to vector<1x64xf32>
    %603 = vector.extract_strided_slice %600 {offsets = [0, 0], sizes = [1, 64], strides = [1, 1]} : vector<1x96xf32> to vector<1x64xf32>
    %604 = arith.addf %602, %603 : vector<1x64xf32>
    %605 = arith.negf %604 : vector<1x64xf32>
    %606 = math.exp %605 : vector<1x64xf32>
    %cst_148 = arith.constant 1.000000e+00 : f32
    %607 = vector.broadcast %cst_148 : f32 to vector<1x64xf32>
    %608 = arith.addf %607, %606 : vector<1x64xf32>
    %609 = arith.divf %607, %608 : vector<1x64xf32>
    %610 = vector.extract_strided_slice %609 {offsets = [0, 0], sizes = [1, 32], strides = [1, 1]} : vector<1x64xf32> to vector<1x32xf32>
    %611 = vector.extract_strided_slice %609 {offsets = [0, 32], sizes = [1, 32], strides = [1, 1]} : vector<1x64xf32> to vector<1x32xf32>
    %612 = vector.extract_strided_slice %601 {offsets = [0, 64], sizes = [1, 32], strides = [1, 1]} : vector<1x96xf32> to vector<1x32xf32>
    %613 = vector.extract_strided_slice %600 {offsets = [0, 64], sizes = [1, 32], strides = [1, 1]} : vector<1x96xf32> to vector<1x32xf32>
    %614 = arith.mulf %610, %613 : vector<1x32xf32>
    %615 = arith.addf %612, %614 : vector<1x32xf32>
    %616 = math.tanh %615 : vector<1x32xf32>
    %cst_149 = arith.constant 1.000000e+00 : f32
    %617 = vector.broadcast %cst_149 : f32 to vector<1x32xf32>
    %618 = arith.subf %617, %611 : vector<1x32xf32>
    %619 = arith.mulf %618, %616 : vector<1x32xf32>
    %620 = arith.mulf %611, %597 : vector<1x32xf32>
    %621 = arith.addf %619, %620 : vector<1x32xf32>
    %622 = arith.truncf %621 : vector<1x32xf32> to vector<1x32xbf16>
    %cst_150 = arith.constant dense<0.000000e+00> : vector<1x96xf32>
    %623 = tpu.matmul %622, %473, %cst_150 {dimension_numbers = #tpu.dot_dimension_numbers<[1], [0], [0], [1], [0, 0, 1, 1], [], []>} : vector<1x32xbf16>, vector<32x96xbf16>, vector<1x96xf32> -> vector<1x96xf32>
    %624 = arith.addf %623, %475 : vector<1x96xf32>
    %625 = vector.extract_strided_slice %471 {offsets = [6, 0], sizes = [1, 96], strides = [1, 1]} : vector<8x96xf32> to vector<1x96xf32>
    %626 = vector.extract_strided_slice %625 {offsets = [0, 0], sizes = [1, 64], strides = [1, 1]} : vector<1x96xf32> to vector<1x64xf32>
    %627 = vector.extract_strided_slice %624 {offsets = [0, 0], sizes = [1, 64], strides = [1, 1]} : vector<1x96xf32> to vector<1x64xf32>
    %628 = arith.addf %626, %627 : vector<1x64xf32>
    %629 = arith.negf %628 : vector<1x64xf32>
    %630 = math.exp %629 : vector<1x64xf32>
    %cst_151 = arith.constant 1.000000e+00 : f32
    %631 = vector.broadcast %cst_151 : f32 to vector<1x64xf32>
    %632 = arith.addf %631, %630 : vector<1x64xf32>
    %633 = arith.divf %631, %632 : vector<1x64xf32>
    %634 = vector.extract_strided_slice %633 {offsets = [0, 0], sizes = [1, 32], strides = [1, 1]} : vector<1x64xf32> to vector<1x32xf32>
    %635 = vector.extract_strided_slice %633 {offsets = [0, 32], sizes = [1, 32], strides = [1, 1]} : vector<1x64xf32> to vector<1x32xf32>
    %636 = vector.extract_strided_slice %625 {offsets = [0, 64], sizes = [1, 32], strides = [1, 1]} : vector<1x96xf32> to vector<1x32xf32>
    %637 = vector.extract_strided_slice %624 {offsets = [0, 64], sizes = [1, 32], strides = [1, 1]} : vector<1x96xf32> to vector<1x32xf32>
    %638 = arith.mulf %634, %637 : vector<1x32xf32>
    %639 = arith.addf %636, %638 : vector<1x32xf32>
    %640 = math.tanh %639 : vector<1x32xf32>
    %cst_152 = arith.constant 1.000000e+00 : f32
    %641 = vector.broadcast %cst_152 : f32 to vector<1x32xf32>
    %642 = arith.subf %641, %635 : vector<1x32xf32>
    %643 = arith.mulf %642, %640 : vector<1x32xf32>
    %644 = arith.mulf %635, %621 : vector<1x32xf32>
    %645 = arith.addf %643, %644 : vector<1x32xf32>
    %646 = arith.truncf %645 : vector<1x32xf32> to vector<1x32xbf16>
    %cst_153 = arith.constant dense<0.000000e+00> : vector<1x96xf32>
    %647 = tpu.matmul %646, %473, %cst_153 {dimension_numbers = #tpu.dot_dimension_numbers<[1], [0], [0], [1], [0, 0, 1, 1], [], []>} : vector<1x32xbf16>, vector<32x96xbf16>, vector<1x96xf32> -> vector<1x96xf32>
    %648 = arith.addf %647, %475 : vector<1x96xf32>
    %649 = vector.extract_strided_slice %471 {offsets = [7, 0], sizes = [1, 96], strides = [1, 1]} : vector<8x96xf32> to vector<1x96xf32>
    %650 = vector.extract_strided_slice %649 {offsets = [0, 0], sizes = [1, 64], strides = [1, 1]} : vector<1x96xf32> to vector<1x64xf32>
    %651 = vector.extract_strided_slice %648 {offsets = [0, 0], sizes = [1, 64], strides = [1, 1]} : vector<1x96xf32> to vector<1x64xf32>
    %652 = arith.addf %650, %651 : vector<1x64xf32>
    %653 = arith.negf %652 : vector<1x64xf32>
    %654 = math.exp %653 : vector<1x64xf32>
    %cst_154 = arith.constant 1.000000e+00 : f32
    %655 = vector.broadcast %cst_154 : f32 to vector<1x64xf32>
    %656 = arith.addf %655, %654 : vector<1x64xf32>
    %657 = arith.divf %655, %656 : vector<1x64xf32>
    %658 = vector.extract_strided_slice %657 {offsets = [0, 0], sizes = [1, 32], strides = [1, 1]} : vector<1x64xf32> to vector<1x32xf32>
    %659 = vector.extract_strided_slice %657 {offsets = [0, 32], sizes = [1, 32], strides = [1, 1]} : vector<1x64xf32> to vector<1x32xf32>
    %660 = vector.extract_strided_slice %649 {offsets = [0, 64], sizes = [1, 32], strides = [1, 1]} : vector<1x96xf32> to vector<1x32xf32>
    %661 = vector.extract_strided_slice %648 {offsets = [0, 64], sizes = [1, 32], strides = [1, 1]} : vector<1x96xf32> to vector<1x32xf32>
    %662 = arith.mulf %658, %661 : vector<1x32xf32>
    %663 = arith.addf %660, %662 : vector<1x32xf32>
    %664 = math.tanh %663 : vector<1x32xf32>
    %cst_155 = arith.constant 1.000000e+00 : f32
    %665 = vector.broadcast %cst_155 : f32 to vector<1x32xf32>
    %666 = arith.subf %665, %659 : vector<1x32xf32>
    %667 = arith.mulf %666, %664 : vector<1x32xf32>
    %668 = arith.mulf %659, %645 : vector<1x32xf32>
    %669 = arith.addf %667, %668 : vector<1x32xf32>
    %670 = vector.extract_strided_slice %464 {offsets = [7, 0], sizes = [1, 64], strides = [1, 1]} : vector<8x64xbf16> to vector<1x64xbf16>
    %c1_156 = arith.constant 1 : index
    %c0_157 = arith.constant 0 : index
    %c0_158 = arith.constant 0 : index
    %671 = vector.load %arg7[%c1_156, %c0_157, %c0_158] : memref<2x64x96xbf16, #tpu.memory_space<vmem>>, vector<1x64x96xbf16>
    %672 = vector.shape_cast %671 : vector<1x64x96xbf16> to vector<64x96xbf16>
    %cst_159 = arith.constant dense<0.000000e+00> : vector<1x96xf32>
    %673 = tpu.matmul %670, %672, %cst_159 {dimension_numbers = #tpu.dot_dimension_numbers<[1], [0], [0], [1], [0, 0, 1, 1], [], []>} : vector<1x64xbf16>, vector<64x96xbf16>, vector<1x96xf32> -> vector<1x96xf32>
    %c1_160 = arith.constant 1 : index
    %c0_161 = arith.constant 0 : index
    %c0_162 = arith.constant 0 : index
    %674 = vector.load %arg9[%c1_160, %c0_161, %c0_162] : memref<2x1x96xf32, #tpu.memory_space<vmem>>, vector<1x1x96xf32>
    %675 = vector.shape_cast %674 : vector<1x1x96xf32> to vector<1x96xf32>
    %676 = arith.addf %673, %675 : vector<1x96xf32>
    %c3_163 = arith.constant 3 : index
    %c0_164 = arith.constant 0 : index
    %c0_165 = arith.constant 0 : index
    %677 = vector.load %arg2[%c3_163, %c0_164, %c0_165] : memref<4x1x32xf32, #tpu.memory_space<vmem>>, vector<1x1x32xf32>
    %678 = vector.shape_cast %677 : vector<1x1x32xf32> to vector<1x32xf32>
    %679 = arith.truncf %678 : vector<1x32xf32> to vector<1x32xbf16>
    %c1_166 = arith.constant 1 : index
    %c0_167 = arith.constant 0 : index
    %c0_168 = arith.constant 0 : index
    %680 = vector.load %arg8[%c1_166, %c0_167, %c0_168] : memref<2x32x96xbf16, #tpu.memory_space<vmem>>, vector<1x32x96xbf16>
    %681 = vector.shape_cast %680 : vector<1x32x96xbf16> to vector<32x96xbf16>
    %cst_169 = arith.constant dense<0.000000e+00> : vector<1x96xf32>
    %682 = tpu.matmul %679, %681, %cst_169 {dimension_numbers = #tpu.dot_dimension_numbers<[1], [0], [0], [1], [0, 0, 1, 1], [], []>} : vector<1x32xbf16>, vector<32x96xbf16>, vector<1x96xf32> -> vector<1x96xf32>
    %c1_170 = arith.constant 1 : index
    %c0_171 = arith.constant 0 : index
    %c0_172 = arith.constant 0 : index
    %683 = vector.load %arg10[%c1_170, %c0_171, %c0_172] : memref<2x1x96xf32, #tpu.memory_space<vmem>>, vector<1x1x96xf32>
    %684 = vector.shape_cast %683 : vector<1x1x96xf32> to vector<1x96xf32>
    %685 = arith.addf %682, %684 : vector<1x96xf32>
    %686 = vector.extract_strided_slice %676 {offsets = [0, 0], sizes = [1, 64], strides = [1, 1]} : vector<1x96xf32> to vector<1x64xf32>
    %687 = vector.extract_strided_slice %685 {offsets = [0, 0], sizes = [1, 64], strides = [1, 1]} : vector<1x96xf32> to vector<1x64xf32>
    %688 = arith.addf %686, %687 : vector<1x64xf32>
    %689 = arith.negf %688 : vector<1x64xf32>
    %690 = math.exp %689 : vector<1x64xf32>
    %cst_173 = arith.constant 1.000000e+00 : f32
    %691 = vector.broadcast %cst_173 : f32 to vector<1x64xf32>
    %692 = arith.addf %691, %690 : vector<1x64xf32>
    %693 = arith.divf %691, %692 : vector<1x64xf32>
    %694 = vector.extract_strided_slice %693 {offsets = [0, 0], sizes = [1, 32], strides = [1, 1]} : vector<1x64xf32> to vector<1x32xf32>
    %695 = vector.extract_strided_slice %693 {offsets = [0, 32], sizes = [1, 32], strides = [1, 1]} : vector<1x64xf32> to vector<1x32xf32>
    %696 = vector.extract_strided_slice %676 {offsets = [0, 64], sizes = [1, 32], strides = [1, 1]} : vector<1x96xf32> to vector<1x32xf32>
    %697 = vector.extract_strided_slice %685 {offsets = [0, 64], sizes = [1, 32], strides = [1, 1]} : vector<1x96xf32> to vector<1x32xf32>
    %698 = arith.mulf %694, %697 : vector<1x32xf32>
    %699 = arith.addf %696, %698 : vector<1x32xf32>
    %700 = math.tanh %699 : vector<1x32xf32>
    %cst_174 = arith.constant 1.000000e+00 : f32
    %701 = vector.broadcast %cst_174 : f32 to vector<1x32xf32>
    %702 = arith.subf %701, %695 : vector<1x32xf32>
    %703 = arith.mulf %702, %700 : vector<1x32xf32>
    %704 = arith.mulf %695, %678 : vector<1x32xf32>
    %705 = arith.addf %703, %704 : vector<1x32xf32>
    %706 = tpu.concatenate %669, %705 in 1 : vector<1x32xf32>, vector<1x32xf32> -> vector<1x64xf32>
    %c0_175 = arith.constant 0 : index
    %c0_176 = arith.constant 0 : index
    %707 = vector.load %arg11[%c0_175, %c0_176] : memref<1x64xf32, #tpu.memory_space<vmem>>, vector<1x64xf32>
    %708 = arith.mulf %706, %707 : vector<1x64xf32>
    %cst_177 = arith.constant dense<0.000000e+00> : vector<1xf32>
    %709 = vector.multi_reduction <add>, %708, %cst_177 [1] : vector<1x64xf32> to vector<1xf32>
    %710 = vector.shape_cast %709 : vector<1xf32> to vector<1x1xf32>
    %c0_178 = arith.constant 0 : index
    %c0_179 = arith.constant 0 : index
    %711 = vector.load %arg12[%c0_178, %c0_179] : memref<1x1xf32, #tpu.memory_space<vmem>>, vector<1x1xf32>
    %712 = arith.addf %710, %711 : vector<1x1xf32>
    %c0_180 = arith.constant 0 : index
    %c0_181 = arith.constant 0 : index
    %713 = vector.load %arg13[%c0_180, %c0_181] : memref<1x1xf32, #tpu.memory_space<vmem>>, vector<1x1xf32>
    tpu.vector_store %arg13[%c0_180, %c0_181], %712 {strides = array<i32>} : memref<1x1xf32, #tpu.memory_space<vmem>>, vector<1x1xf32>,
    return
  }
}

</mosaic_0001>

<bundles_post_ra>
// kernel: tpu_custom_call.1
= control target key start
LH: loop header
LB: loop body
LE: loop exit
PB: predicated region body
PF: predicated region fallthrough
CT: control target
= control target key end

     0   :  { %s3537_s0 = inlined_call_operand.hbm [shape: s32[8], index: 0, kind: input, shape index: {}]   ;;  %s3538_s1 = inlined_call_operand.vmem [shape: f32[50,32], index: 1, kind: input, shape index: {}]   ;;  %s3539_s2 = inlined_call_operand.vmem [shape: f32[4,1,32], index: 2, kind: input, shape index: {}]   ;;  %s3540_s3 = inlined_call_operand.vmem [shape: bf16[32,192], index: 3, kind: input, shape index: {}]   ;;  %s3541_s4 = inlined_call_operand.vmem [shape: bf16[64,192], index: 4, kind: input, shape index: {}]   ;;  %s3542_s5 = inlined_call_operand.vmem [shape: f32[1,192], index: 5, kind: input, shape index: {}]   ;;  %s3543_s6 = inlined_call_operand.vmem [shape: f32[1,192], index: 6, kind: input, shape index: {}]   ;;  %s3544_s7 = inlined_call_operand.hbm [shape: bf16[2,64,96], index: 7, kind: input, shape index: {}]   ;;  %s3545_s8 = inlined_call_operand.hbm [shape: bf16[2,32,96], index: 8, kind: input, shape index: {}]   ;;  %s3546_s9 = inlined_call_operand.vmem [shape: f32[2,1,96], index: 9, kind: input, shape index: {}]   ;;  %s3547_s10 = inlined_call_operand.vmem [shape: f32[2,1,96], index: 10, kind: input, shape index: {}]   ;;  %s3548_s11 = inlined_call_operand.vmem [shape: f32[1,64], index: 11, kind: input, shape index: {}]   ;;  %s3549_s12 = inlined_call_operand.<no memory space> [shape: f32[1,1], index: 12, kind: input, shape index: {}]   ;;  %s3550_s13 = inlined_call_operand.hbm [shape: f32[1,1], index: 13, kind: output, shape index: {}]  }
   0x1   :  { %v18_v0 = vstv %s3549_s12 }
   0x2   :  { %19 = vst [vmem:[#allocation5] sm:$0x1] %v18_v0 }
   0x3   :  { %20 = vsyncpa [#allocation9], 0 }
   0x4   :  { %21 = vsyncpa [#allocation7], 0 }
   0x5   :  { %22 = vsyncpa [#allocation12], 0 }
   0x6   :  { %23 = vsyncpa [#allocation8], 0  ;;  %s2769_s29 = scalar_lea.hbm %s3537_s0, 16 }
   0x7   :  { %p2770_p0 = scmp.ne.s32.totalorder %s3537_s0, %s2769_s29  ;;  %p2773_p1 = scmp.lt.u32.totalorder %s2769_s29, %s3537_s0 }
   0x9   :  { %p2775_p2 = pnand %p2773_p1, %p2770_p0 }
   0xb   :  { %2778 = shalt.err (!%p2775_p2)
}
   0xc   :  { %s2853_s12 = smov [#allocation6]   ;;  %s2854_s19 = smov [#allocation10]  }
   0xd   :  { %31 = dma.hbm_to_smem %s3537_s0, 16, %s2853_s12, [#allocation9]  }
   0xe   :  { %s49_s20 = sshll.u32 %s2854_s19, 4  ;;  %s2779_s23 = scalar_lea.hbm %s3544_s7, 1024  ;;  %s50_s20 = int_to_ptr.vmem [resolvable:$true] %s49_s20 }
   0xf   :  { %p2780_p3 = scmp.ne.s32.totalorder %s3544_s7, %s2779_s23  ;;  %p2783_p4 = scmp.lt.u32.totalorder %s2779_s23, %s3544_s7 }
  0x11   :  { %p2785_p5 = pnand %p2783_p4, %p2780_p3 }
  0x13   :  { %2788 = shalt.err (!%p2785_p5)
}
  0x14   :  { %s2789_s28 = scalar_lea.vmem %s50_s20, 1024  ;;  %p2794_p7 = scmp.lt.s32.totalorder %s50_s20, %s50_s20 }
  0x15   :  { %p2790_p6 = scmp.ne.s32.totalorder %s50_s20, %s2789_s28  ;;  %p2795_p8 = scmp.lt.s32.totalorder %s2789_s28, %s2789_s28 }
  0x17   :  { %p2796_p9 = por %p2795_p8, %p2794_p7 }
  0x19   :  { %p2797_p10 = pnand %p2796_p9, %p2790_p6 }
  0x1b   :  { %2800 = shalt.err (!%p2797_p10)
}
  0x1c   :  { %s2855_s0 = smov 64   ;;  %s2856_s29 = smov 4  }
  0x1d   :  { %55 = dma.hbm_to_vmem [thread:$0]  %s3544_s7, 1024, %s50_s20, [#allocation7], %s2855_s0, %s2855_s0, %s2856_s29  }
  0x1e   :  { %s2857_s15 = smov [#allocation11]   ;;  %s2801_s18 = scalar_lea.hbm %s3545_s8, 512 }
  0x1f   :  { %s61_s16 = sshll.u32 %s2857_s15, 4  ;;  %p2802_p11 = scmp.ne.s32.totalorder %s3545_s8, %s2801_s18  ;;  %s62_s16 = int_to_ptr.vmem [resolvable:$true] %s61_s16 }
  0x20   :  { %p2805_p12 = scmp.lt.u32.totalorder %s2801_s18, %s3545_s8 }
  0x22   :  { %p2807_p13 = pnand %p2805_p12, %p2802_p11 }
  0x24   :  { %2810 = shalt.err (!%p2807_p13)
}
  0x25   :  { %s2811_s24 = scalar_lea.vmem %s62_s16, 512  ;;  %p2816_p1 = scmp.lt.s32.totalorder %s62_s16, %s62_s16 }
  0x26   :  { %p2812_p0 = scmp.ne.s32.totalorder %s62_s16, %s2811_s24  ;;  %p2817_p2 = scmp.lt.s32.totalorder %s2811_s24, %s2811_s24 }
  0x28   :  { %p2818_p3 = por %p2817_p2, %p2816_p1 }
  0x2a   :  { %p2819_p4 = pnand %p2818_p3, %p2812_p0 }
  0x2c   :  { %2822 = shalt.err (!%p2819_p4)
}
  0x2d   :  { %67 = dma.hbm_to_vmem [thread:$0]  %s3545_s8, 512, %s62_s16, [#allocation12], %s2855_s0, %s2855_s0, %s2856_s29  }
  0x2e   :  { %2845 = dma.done.wait [#allocation9], 16  }
  0x2f   :  { %2846 = vsyncadd [#allocation9], 4294967280 }
  0x30   :  { %2847 = dma.done.wait [#allocation7], 1024  }
  0x31   :  { %2848 = vsyncadd [#allocation7], 4294966272 }
  0x32   :  { %2849 = dma.done.wait [#allocation12], 512  }
  0x33   :  { %2850 = vsyncadd [#allocation12], 4294966784 }
  0x34   :  { %85 = sfence }
  0x35   :  { %v2326_v1 = vld [vmem:[%s3539_s2 + $0x1] ss:$0 sm:$0xff]  ;;  %s2858_s27 = smov 32   ;;  %v2984_v2 = vld [vmem:[%s3541_s4 + $0x4] ss:$8 sps:$4 sm:$0xff]   ;;  %v2859_v5 = vmov 0   ;;  %v128_v29 = vlaneseq }
  0x36   :  { %220 = vrot.lane.b32.xlu0 %v2326_v1, %s2858_s27  ;;  %v2989_v3 = vld [vmem:[%s3541_s4] ss:$8 sps:$4 sm:$0xff]   ;;  %v2994_v4 = vld [vmem:[%s3541_s4 + $0x14] ss:$8 sps:$4 sm:$0xff]   ;;  %194 = vmatprep.mubr.bf16.mxu0 %v2859_v5  ;;  %v2556_v6 = vld [vmem:[%s3540_s3 + $0x4] ss:$8 sps:$4 sm:$0xff]  }
  0x37   :  { %312 = vmatprep.mubr.bf16.mxu1 %v2859_v5  ;;  %280 = vmatprep.subr.bf16.mxu1 %v2984_v2  ;;  %s87_s17 = sld [smem:[#allocation6]]  ;;  %v3006_v7 = vld [vmem:[%s3541_s4 + $0x10] ss:$8 sps:$4 sm:$0xff]   ;;  %s2313_s21 = sld [smem:[#allocation6 + $0x1]]  ;;  %v3012_v8 = vld [vmem:[%s3541_s4 + $0x24] ss:$8 sps:$4 sm:$0xff]  }
  0x38   :  { %281 = vmatpush1.bf16.msra.mxu1 %v2989_v3  ;;  %162 = vmatprep.subr.bf16.mxu0 %v2556_v6  ;;  %v2560_v9 = vld [vmem:[%s3540_s3] ss:$8 sps:$4 sm:$0xff]   ;;  %v2562_v10 = vld [vmem:[%s3540_s3 + $0x14] ss:$8 sps:$4 sm:$0xff]   ;;  %s2314_s26 = sld [smem:[#allocation6 + $0x2]]  ;;  %vm90_vm0 = vcmask 253952  }
  0x39   :  { %282 = vmatprep.subr.bf16.mxu1 %v2994_v4  ;;  %163 = vmatpush1.bf16.msra.mxu0 %v2560_v9  ;;  %s2315_s28 = sld [smem:[#allocation6 + $0x3]]  ;;  %v3024_v11 = vld [vmem:[%s3541_s4 + $0x20] ss:$8 sps:$4 sm:$0xff]   ;;  %v2566_v12 = vld [vmem:[%s3540_s3 + $0x10] ss:$8 sps:$4 sm:$0xff]   ;;  %s2316_s15 = sld [smem:[#allocation6 + $0x4]] }
  0x3a   :  { %164 = vmatprep.subr.bf16.mxu0 %v2562_v10  ;;  %v3033_v13 = vld [vmem:[%s3541_s4 + $0x34] ss:$8 sps:$4 sm:$0xff]   ;;  %s2317_s23 = sld [smem:[#allocation6 + $0x5]]  ;;  %s2318_s25 = sld [smem:[#allocation6 + $0x6]]  ;;  %v3044_v15 = vld [vmem:[%s3541_s4 + $0x30] ss:$8 sps:$4 sm:$0xff]  }
  0x3b   :  { %s2319_s8 = sld [smem:[#allocation6 + $0x7]]  ;;  %vm158_vm1 = vcmask 261120   ;;  %v212_v25 = vld [vmem:[%s3539_s2] sm:$0x1]  ;;  %vm276_vm2 = vcmask 523264   ;;  %v129_v30 = vshrl.u32 %v128_v29, 7 }
  0x3c   :  { %283 = vmatpush1.bf16.msra.mxu1 %v3006_v7  ;;  %v126_v32 = vld [vmem:[%s3542_s5] sm:$0x3]  ;;  %s2860_s5 = smov 96   ;;  %vm397_vm3 = vcmask 261127   ;;  %vm530_vm4 = vcmask 260102   ;;  %vm528_vm5 = vcmask 254977  }
  0x3d   :  { %284 = vmatprep.subr.bf16.mxu1 %v3012_v8  ;;  %s88_s22 = scalar_lea.vmem %s3538_s1, %s87_s17  ;;  %s93_s20 = scalar_lea.vmem %s3538_s1, %s2313_s21  ;;  %165 = vmatpush1.bf16.msra.mxu0 %v2566_v12  ;;  %v134_v31 = vsub.s32 1, %v129_v30  ;;  %v3106_v39 = vsub.s32 0, %v129_v30  ;;  %v211_v40 = vld [vmem:[%s3543_s6] sm:$0x3]  ;;  %vm666_vm6 = vcmask 259077   ;;  %vm664_vm7 = vcmask 256002  }
  0x3e   :  { %v89_v14 = vld [vmem:[%s88_s22] sm:$0x1]  ;;  %s97_s14 = scalar_lea.vmem %s3538_s1, %s2314_s26  ;;  %409 = vmatprep.subr.bf16.mxu0 %v2984_v2  ;;  %vm801_vm8 = vcmask 258052   ;;  %vm799_vm9 = vcmask 257027   ;;  %vm2862_vm10 = vmmov 0   ;;  %vm2274_vm11 = vcmask 523271  }
  0x3f   :  { %91 = vst.msk [vmem:[#allocation2] sm:$0x1] %vm90_vm0, %v89_v14  ;;  %v94_v16 = vld [vmem:[%s93_s20] sm:$0x1]  ;;  %s101_s12 = scalar_lea.vmem %s3538_s1, %s2315_s28  ;;  %s105_s22 = scalar_lea.vmem %s3538_s1, %s2316_s15  ;;  %v135_v33 = vrot.slane %v126_v32, %v134_v31  ;;  %v3112_v41 = vrot.slane %v211_v40, %v3106_v39  ;;  %v3114_v42 = vrot.slane %v211_v40, %v134_v31  ;;  %v131_v50 = vrot.slane %v126_v32, %v3106_v39 }
  0x40   :  { %285 = vmatpush1.bf16.msra.mxu1 %v3024_v11  ;;  %95 = vst.msk [vmem:[#allocation2 + $0x1] sm:$0x1] %vm90_vm0, %v94_v16  ;;  %v98_v17 = vld [vmem:[%s97_s14] sm:$0x1]  ;;  %s109_s7 = scalar_lea.vmem %s3538_s1, %s2317_s23  ;;  %s113_s3 = scalar_lea.vmem %s3538_s1, %s2318_s25  ;;  %vm2286_vm12 = vcmask 7175  }
  0x41   :  { %286 = vmatprep.subr.bf16.mxu1 %v3033_v13  ;;  %99 = vst.msk [vmem:[#allocation2 + $0x2] sm:$0x1] %vm90_vm0, %v98_v17  ;;  %v102_v18 = vld [vmem:[%s101_s12] sm:$0x1]  ;;  %s117_s17 = scalar_lea.vmem %s3538_s1, %s2319_s8 }
  0x42   :  { %103 = vst.msk [vmem:[#allocation2 + $0x3] sm:$0x1] %vm90_vm0, %v102_v18  ;;  %v106_v19 = vld [vmem:[%s105_s22] sm:$0x1] }
  0x43   :  { %107 = vst.msk [vmem:[#allocation2 + $0x4] sm:$0x1] %vm90_vm0, %v106_v19  ;;  %v110_v20 = vld [vmem:[%s109_s7] sm:$0x1] }
  0x44   :  { %287 = vmatpush1.bf16.msra.mxu1 %v3044_v15  ;;  %111 = vst.msk [vmem:[#allocation2 + $0x5] sm:$0x1] %vm90_vm0, %v110_v20  ;;  %v114_v21 = vld [vmem:[%s113_s3] sm:$0x1] }
  0x45   :  { %545 = vmatprep.subr.bf16.mxu1 %v2984_v2  ;;  %115 = vst.msk [vmem:[#allocation2 + $0x6] sm:$0x1] %vm90_vm0, %v114_v21  ;;  %v118_v22 = vld [vmem:[%s117_s17] sm:$0x1] }
  0x46   :  { %119 = vst.msk [vmem:[#allocation2 + $0x7] sm:$0x1] %vm90_vm0, %v118_v22 }
  0x4d   :  { %v120_v23 = vld [vmem:[#allocation2] sm:$0xff] }
  0x4e   :  { %v121_v24 = vpack.c.bf16 %v120_v23, %v120_v23 }
  0x50   :  { %2324 = vmatmul.mubr.msk.bf16.vlgmr.msra.gmra.mrb[0].mxu0 %vm158_vm1, %v121_v24 }
  0x51   :  { %410 = vmatpush1.bf16.msra.mxu0 %v2989_v3  ;;  %441 = vmatprep.mubr.bf16.mxu0 %v2859_v5 }
  0x52   :  { %411 = vmatprep.subr.bf16.mxu0 %v2994_v4 }
  0x55   :  { %412 = vmatpush1.bf16.msra.mxu0 %v3006_v7 }
  0x56   :  { %413 = vmatprep.subr.bf16.mxu0 %v3012_v8 }
  0x59   :  { %414 = vmatpush1.bf16.msra.mxu0 %v3024_v11 }
  0x5a   :  { %415 = vmatprep.subr.bf16.mxu0 %v3033_v13 }
  0x5d   :  { %416 = vmatpush1.bf16.msra.mxu0 %v3044_v15 }
  0x5e   :  { %680 = vmatprep.subr.bf16.mxu0 %v2984_v2 }
  0xa8   :  { %v221_v26 = vpop.permute.xlu0 %220 }
  0xa9   :  { %v223_v27 = vsel %vm158_vm1, %v212_v25, %v221_v26 }
  0xaa   :  { %v224_v28 = vpack.c.bf16 %v223_v27, %v223_v27  ;;  %v386_v9 = vrot.slane %v223_v27, 1 }
  0xac   :  { %2335 = vmatmul.mubr.msk.bf16.vlgmr.msra.gmra.mrb[0].mxu1 %vm276_vm2, %v224_v28 }
  0xad   :  { %546 = vmatpush1.bf16.msra.mxu1 %v2989_v3  ;;  %577 = vmatprep.mubr.bf16.mxu1 %v2859_v5 }
  0xae   :  { %547 = vmatprep.subr.bf16.mxu1 %v2994_v4 }
  0xb1   :  { %548 = vmatpush1.bf16.msra.mxu1 %v3006_v7 }
  0xb2   :  { %549 = vmatprep.subr.bf16.mxu1 %v3012_v8 }
  0xb5   :  { %550 = vmatpush1.bf16.msra.mxu1 %v3024_v11 }
  0xb6   :  { %551 = vmatprep.subr.bf16.mxu1 %v3033_v13 }
  0xb9   :  { %552 = vmatpush1.bf16.msra.mxu1 %v3044_v15 }
  0xba   :  { %817 = vmatprep.subr.bf16.mxu1 %v2984_v2 }
 0x123   :  { %v196_v34 = vpop.f32.mrb[0].mxu0 }
 0x124   :  { %v198_v35 = vpop.f32.mrb[1].mxu0  ;;  %v3121_v51 = vadd.f32 %v196_v34, %v131_v50 }
 0x125   :  { %v3104_v36 = vadd.f32 %v198_v35, %v135_v33  ;;  %v200_v37 = vpop.f32.mrb[2].mxu0 }
 0x126   :  { %v201_v38 = vpop.f32.mrb[3].mxu0 }
 0x17f   :  { %v314_v43 = vpop.f32.mrb[0].mxu1 }
 0x180   :  { %v315_v44 = vadd.f32 %v314_v43, %v3112_v41  ;;  %v316_v45 = vpop.f32.mrb[1].mxu1 }
 0x181   :  { %v317_v46 = vadd.f32 %v316_v45, %v3114_v42  ;;  %v318_v47 = vpop.f32.mrb[2].mxu1 }
 0x182   :  { %v319_v48 = vpop.f32.mrb[3].mxu1  ;;  %329 = vrot.lane.b32.xlu1 %v315_v44, %s2855_s0  ;;  %v352_v52 = vrot.slane %v315_v44, 1  ;;  %v321_v53 = vadd.f32 %v315_v44, %v3121_v51 }
 0x183   :  { %v353_v49 = vrot.slane %v317_v46, 1 }
 0x184   :  { %v356_v54 = vadd.f32 %v352_v52, %v3121_v51  ;;  %v2336_v55 = vmul.f32 -1.442695, %v321_v53 }
 0x185   :  { %370 = vrot.lane.b32.xlu0 %v353_v49, %s2855_s0  ;;  %v357_v19 = vadd.f32 %v353_v49, %v3104_v36 }
 0x186   :  { %v2337_v56 = vmul.f32 -1.442695, %v356_v54  ;;  %2580 = vpow2.f32 %v2336_v55 }
 0x187   :  { %v2338_v20 = vmul.f32 -1.442695, %v357_v19 }
 0x188   :  { %2582 = vpow2.f32 %v2337_v56 }
 0x190   :  { %v2581_v57 = vpop.eup %2580 }
 0x191   :  { %v325_v59 = vadd.f32 1.0, %v2581_v57 }
 0x192   :  { %v2583_v58 = vpop.eup %2582 }
 0x193   :  { %v364_v60 = vadd.f32 1.0, %v2583_v58  ;;  %2584 = vrcp.f32 %v325_v59 }
 0x195   :  { %2586 = vrcp.f32 %v364_v60 }
 0x19d   :  { %v2585_v61 = vpop.eup %2584 }
 0x19e   :  { %v339_v31 = vsub.f32 1.0, %v2585_v61 }
 0x19f   :  { %v2587_v0 = vpop.eup %2586 }
 0x1f4   :  { %v330_v62 = vpop.permute.xlu1 %329 }
 0x1f5   :  { %v332_v63 = vmul.f32 %v2585_v61, %v330_v62 }
 0x1f7   :  { %v371_v1 = vpop.permute.xlu0 %370  ;;  %334 = vrot.lane.b32.xlu0 %v332_v63, %s2855_s0 }
 0x1f8   :  { %v373_v6 = vmul.f32 %v2587_v0, %v371_v1 }
 0x1fa   :  { %375 = vrot.lane.b32.xlu1 %v373_v6, %s2855_s0 }
 0x1fb   :  { %387 = vrot.lane.b32.xlu0 %v386_v9, %s2860_s5 }
 0x1ff   :  { %346 = vrot.lane.b32.xlu0 %v223_v27, %s2858_s27 }
 0x269   :  { %v335_v10 = vpop.permute.xlu0 %334 }
 0x26a   :  { %v337_v16 = vadd.f32 %v335_v10, %v3121_v51 }
 0x26c   :  { %v376_v12 = vpop.permute.xlu1 %375 }
 0x26d   :  { %v378_v14 = vadd.f32 %v376_v12, %v3104_v36  ;;  %v388_v24 = vpop.permute.xlu0 %387 }
 0x26f   :  { %2588 = vtanh.f32 %v378_v14 }
 0x270   :  { %2590 = vtanh.f32 %v337_v16 }
 0x271   :  { %2592 = vpow2.f32 %v2338_v20  ;;  %v347_v29 = vpop.permute.xlu0 %346 }
 0x272   :  { %v349_v33 = vmul.f32 %v2585_v61, %v347_v29 }
 0x279   :  { %v2589_v17 = vpop.eup %2588 }
 0x27a   :  { %382 = vrot.lane.b32.xlu1 %v2589_v17, %s2860_s5  ;;  %v2591_v18 = vpop.eup %2590 }
 0x27b   :  { %v2593_v21 = vpop.eup %2592 }
 0x27c   :  { %v365_v22 = vadd.f32 1.0, %v2593_v21 }
 0x27e   :  { %341 = vrot.lane.b32.xlu1 %v2591_v18, %s2860_s5  ;;  %2594 = vrcp.f32 %v365_v22 }
 0x288   :  { %v2595_v23 = vpop.eup %2594 }
 0x289   :  { %v380_v25 = vsub.f32 1.0, %v2595_v23  ;;  %v390_v27 = vmul.f32 %v2595_v23, %v388_v24 }
 0x2ec   :  { %v383_v26 = vpop.permute.xlu1 %382 }
 0x2ed   :  { %v385_v28 = vmul.f32 %v383_v26, %v380_v25 }
 0x2ef   :  { %v391_v30 = vadd.f32 %v390_v27, %v385_v28 }
 0x2f0   :  { %v342_v32 = vpop.permute.xlu1 %341 }
 0x2f1   :  { %398 = vst.msk [vmem:[#allocation4] sm:$0x80] %vm397_vm3, %v391_v30  ;;  %v344_v34 = vmul.f32 %v342_v32, %v339_v31  ;;  %v400_v35 = vrot.slane %v391_v30, 7 }
 0x2f3   :  { %v350_v37 = vadd.f32 %v349_v33, %v344_v34  ;;  %401 = vrot.lane.b32.xlu0 %v400_v35, %s2858_s27 }
 0x2f5   :  { %393 = vrot.lane.b32.xlu1 %v350_v37, %s2860_s5 }
 0x365   :  { %v402_v38 = vpop.permute.xlu0 %401 }
 0x367   :  { %v394_v40 = vpop.permute.xlu1 %393 }
 0x368   :  { %396 = vst.msk [vmem:[#allocation3] sm:$0x1] %vm90_vm0, %v394_v40  ;;  %v404_v43 = vsel %vm158_vm1, %v394_v40, %v402_v38 }
 0x369   :  { %v405_v44 = vpack.c.bf16 %v404_v43, %v404_v43  ;;  %v518_v12 = vrot.slane %v404_v43, 2  ;;  %v477_v14 = vrot.slane %v404_v43, 7 }
 0x36b   :  { %2339 = vmatmul.mubr.msk.bf16.vlgmr.msra.gmra.mrb[4].mxu0 %vm276_vm2, %v405_v44 }
 0x36c   :  { %681 = vmatpush1.bf16.msra.mxu0 %v2989_v3  ;;  %712 = vmatprep.mubr.bf16.mxu0 %v2859_v5 }
 0x36d   :  { %682 = vmatprep.subr.bf16.mxu0 %v2994_v4 }
 0x370   :  { %683 = vmatpush1.bf16.msra.mxu0 %v3006_v7 }
 0x371   :  { %684 = vmatprep.subr.bf16.mxu0 %v3012_v8 }
 0x374   :  { %685 = vmatpush1.bf16.msra.mxu0 %v3024_v11 }
 0x375   :  { %686 = vmatprep.subr.bf16.mxu0 %v3033_v13 }
 0x378   :  { %687 = vmatpush1.bf16.msra.mxu0 %v3044_v15 }
 0x379   :  { %949 = vmatprep.subr.bf16.mxu0 %v2984_v2 }
 0x43e   :  { %v443_v45 = vpop.f32.mrb[4].mxu0 }
 0x43f   :  { %v444_v46 = vadd.f32 %v443_v45, %v3112_v41  ;;  %v445_v47 = vpop.f32.mrb[5].mxu0 }
 0x440   :  { %v446_v48 = vadd.f32 %v445_v47, %v3114_v42  ;;  %v447_v49 = vpop.f32.mrb[6].mxu0 }
 0x441   :  { %v448_v50 = vpop.f32.mrb[7].mxu0  ;;  %v451_v52 = vrot.slane %v444_v46, 7  ;;  %v484_v54 = vrot.slane %v444_v46, 2 }
 0x442   :  { %v485_v53 = vrot.slane %v446_v48, 2 }
 0x443   :  { %460 = vrot.lane.b32.xlu0 %v451_v52, %s2855_s0  ;;  %v453_v55 = vadd.f32 %v451_v52, %v3121_v51  ;;  %v488_v56 = vadd.f32 %v484_v54, %v3121_v51 }
 0x444   :  { %502 = vrot.lane.b32.xlu1 %v485_v53, %s2855_s0  ;;  %v489_v22 = vadd.f32 %v485_v53, %v3104_v36 }
 0x445   :  { %v2340_v57 = vmul.f32 -1.442695, %v453_v55  ;;  %v2341_v58 = vmul.f32 -1.442695, %v488_v56 }
 0x446   :  { %v2342_v23 = vmul.f32 -1.442695, %v489_v22 }
 0x447   :  { %2596 = vpow2.f32 %v2340_v57 }
 0x448   :  { %2598 = vpow2.f32 %v2341_v58 }
 0x451   :  { %v2597_v59 = vpop.eup %2596 }
 0x452   :  { %v2599_v60 = vpop.eup %2598  ;;  %v457_v61 = vadd.f32 1.0, %v2597_v59 }
 0x453   :  { %v496_v62 = vadd.f32 1.0, %v2599_v60 }
 0x454   :  { %2600 = vrcp.f32 %v457_v61 }
 0x455   :  { %2602 = vrcp.f32 %v496_v62 }
 0x45e   :  { %v2601_v63 = vpop.eup %2600 }
 0x45f   :  { %v2603_v1 = vpop.eup %2602  ;;  %v470_v34 = vsub.f32 1.0, %v2601_v63 }
 0x4b5   :  { %v461_v0 = vpop.permute.xlu0 %460 }
 0x4b6   :  { %v503_v6 = vpop.permute.xlu1 %502  ;;  %v463_v9 = vmul.f32 %v2601_v63, %v461_v0 }
 0x4b7   :  { %v505_v10 = vmul.f32 %v2603_v1, %v503_v6 }
 0x4b8   :  { %465 = vrot.lane.b32.xlu0 %v463_v9, %s2855_s0 }
 0x4b9   :  { %507 = vrot.lane.b32.xlu1 %v505_v10, %s2855_s0 }
 0x4bc   :  { %519 = vrot.lane.b32.xlu0 %v518_v12, %s2860_s5 }
 0x4c0   :  { %478 = vrot.lane.b32.xlu0 %v477_v14, %s2858_s27 }
 0x52a   :  { %v466_v16 = vpop.permute.xlu0 %465 }
 0x52b   :  { %v508_v17 = vpop.permute.xlu1 %507  ;;  %v468_v19 = vadd.f32 %v466_v16, %v3121_v51 }
 0x52c   :  { %v510_v18 = vadd.f32 %v508_v17, %v3104_v36 }
 0x52e   :  { %2604 = vtanh.f32 %v510_v18  ;;  %v520_v27 = vpop.permute.xlu0 %519 }
 0x52f   :  { %2606 = vtanh.f32 %v468_v19 }
 0x530   :  { %2608 = vpow2.f32 %v2342_v23 }
 0x532   :  { %v479_v32 = vpop.permute.xlu0 %478 }
 0x533   :  { %v481_v37 = vmul.f32 %v2601_v63, %v479_v32 }
 0x538   :  { %v2605_v20 = vpop.eup %2604 }
 0x539   :  { %514 = vrot.lane.b32.xlu1 %v2605_v20, %s2860_s5  ;;  %v2607_v21 = vpop.eup %2606 }
 0x53a   :  { %v2609_v24 = vpop.eup %2608 }
 0x53b   :  { %v497_v25 = vadd.f32 1.0, %v2609_v24 }
 0x53d   :  { %472 = vrot.lane.b32.xlu1 %v2607_v21, %s2860_s5  ;;  %2610 = vrcp.f32 %v497_v25 }
 0x547   :  { %v2611_v26 = vpop.eup %2610 }
 0x548   :  { %v512_v28 = vsub.f32 1.0, %v2611_v26  ;;  %v522_v30 = vmul.f32 %v2611_v26, %v520_v27 }
 0x5ab   :  { %v515_v29 = vpop.permute.xlu1 %514 }
 0x5ac   :  { %v517_v31 = vmul.f32 %v515_v29, %v512_v28 }
 0x5ae   :  { %v523_v33 = vadd.f32 %v522_v30, %v517_v31 }
 0x5af   :  { %v473_v35 = vpop.permute.xlu1 %472 }
 0x5b0   :  { %v475_v38 = vmul.f32 %v473_v35, %v470_v34  ;;  %v533_v40 = vrot.slane %v523_v33, 5  ;;  %531 = vst.msk [vmem:[#allocation4] sm:$0x40] %vm530_vm4, %v523_v33 }
 0x5b2   :  { %v482_v43 = vadd.f32 %v481_v37, %v475_v38  ;;  %534 = vrot.lane.b32.xlu0 %v533_v40, %s2858_s27 }
 0x5b4   :  { %525 = vrot.lane.b32.xlu1 %v482_v43, %s2860_s5 }
 0x624   :  { %v535_v44 = vpop.permute.xlu0 %534 }
 0x626   :  { %v526_v45 = vpop.permute.xlu1 %525 }
 0x627   :  { %529 = vst.msk [vmem:[#allocation3] sm:$0x2] %vm528_vm5, %v526_v45  ;;  %v537_v46 = vsel %vm158_vm1, %v526_v45, %v535_v44 }
 0x628   :  { %v538_v47 = vpack.c.bf16 %v537_v46, %v537_v46  ;;  %v654_v18 = vrot.slane %v537_v46, 4  ;;  %v613_v19 = vrot.slane %v537_v46, 7 }
 0x62a   :  { %v540_v48 = vshrl.u32 %v538_v47, 16 }
 0x62c   :  { %2343 = vmatmul.mubr.msk.bf16.vlgmr.msra.gmra.mrb[4].mxu1 %vm276_vm2, %v540_v48 }
 0x62d   :  { %818 = vmatpush1.bf16.msra.mxu1 %v2989_v3  ;;  %849 = vmatprep.mubr.bf16.mxu1 %v2859_v5 }
 0x62e   :  { %819 = vmatprep.subr.bf16.mxu1 %v2994_v4 }
 0x631   :  { %820 = vmatpush1.bf16.msra.mxu1 %v3006_v7 }
 0x632   :  { %821 = vmatprep.subr.bf16.mxu1 %v3012_v8 }
 0x635   :  { %822 = vmatpush1.bf16.msra.mxu1 %v3024_v11 }
 0x636   :  { %823 = vmatprep.subr.bf16.mxu1 %v3033_v13 }
 0x639   :  { %824 = vmatpush1.bf16.msra.mxu1 %v3044_v15 }
 0x63a   :  { %1084 = vmatprep.subr.bf16.mxu1 %v2984_v2 }
 0x6ff   :  { %v579_v49 = vpop.f32.mrb[4].mxu1 }
 0x700   :  { %v580_v50 = vadd.f32 %v579_v49, %v3112_v41  ;;  %v581_v52 = vpop.f32.mrb[5].mxu1 }
 0x701   :  { %v582_v53 = vadd.f32 %v581_v52, %v3114_v42  ;;  %v583_v54 = vpop.f32.mrb[6].mxu1 }
 0x702   :  { %v584_v55 = vpop.f32.mrb[7].mxu1  ;;  %v587_v56 = vrot.slane %v580_v50, 6  ;;  %v620_v58 = vrot.slane %v580_v50, 3 }
 0x703   :  { %v621_v57 = vrot.slane %v582_v53, 3 }
 0x704   :  { %596 = vrot.lane.b32.xlu0 %v587_v56, %s2855_s0  ;;  %v589_v59 = vadd.f32 %v587_v56, %v3121_v51  ;;  %v624_v60 = vadd.f32 %v620_v58, %v3121_v51 }
 0x705   :  { %638 = vrot.lane.b32.xlu1 %v621_v57, %s2855_s0  ;;  %v625_v26 = vadd.f32 %v621_v57, %v3104_v36 }
 0x706   :  { %v2344_v61 = vmul.f32 -1.442695, %v589_v59  ;;  %v2345_v62 = vmul.f32 -1.442695, %v624_v60 }
 0x707   :  { %v2346_v27 = vmul.f32 -1.442695, %v625_v26 }
 0x708   :  { %2612 = vpow2.f32 %v2344_v61 }
 0x709   :  { %2614 = vpow2.f32 %v2345_v62 }
 0x712   :  { %v2613_v63 = vpop.eup %2612 }
 0x713   :  { %v2615_v0 = vpop.eup %2614  ;;  %v593_v1 = vadd.f32 1.0, %v2613_v63 }
 0x714   :  { %v632_v6 = vadd.f32 1.0, %v2615_v0 }
 0x715   :  { %2616 = vrcp.f32 %v593_v1 }
 0x716   :  { %2618 = vrcp.f32 %v632_v6 }
 0x71f   :  { %v2617_v9 = vpop.eup %2616 }
 0x720   :  { %v2619_v12 = vpop.eup %2618  ;;  %v606_v40 = vsub.f32 1.0, %v2617_v9 }
 0x776   :  { %v597_v10 = vpop.permute.xlu0 %596 }
 0x777   :  { %v599_v14 = vmul.f32 %v2617_v9, %v597_v10  ;;  %v639_v16 = vpop.permute.xlu1 %638 }
 0x778   :  { %v641_v17 = vmul.f32 %v2619_v12, %v639_v16 }
 0x779   :  { %601 = vrot.lane.b32.xlu0 %v599_v14, %s2855_s0 }
 0x77a   :  { %643 = vrot.lane.b32.xlu1 %v641_v17, %s2855_s0 }
 0x77d   :  { %655 = vrot.lane.b32.xlu0 %v654_v18, %s2860_s5 }
 0x781   :  { %614 = vrot.lane.b32.xlu0 %v613_v19, %s2858_s27 }
 0x7eb   :  { %v602_v20 = vpop.permute.xlu0 %601 }
 0x7ec   :  { %v644_v21 = vpop.permute.xlu1 %643  ;;  %v604_v23 = vadd.f32 %v602_v20, %v3121_v51 }
 0x7ed   :  { %v646_v22 = vadd.f32 %v644_v21, %v3104_v36 }
 0x7ef   :  { %2620 = vtanh.f32 %v646_v22  ;;  %v656_v31 = vpop.permute.xlu0 %655 }
 0x7f0   :  { %2622 = vtanh.f32 %v604_v23 }
 0x7f1   :  { %2624 = vpow2.f32 %v2346_v27 }
 0x7f3   :  { %v615_v37 = vpop.permute.xlu0 %614 }
 0x7f4   :  { %v617_v44 = vmul.f32 %v2617_v9, %v615_v37 }
 0x7f9   :  { %v2621_v24 = vpop.eup %2620 }
 0x7fa   :  { %650 = vrot.lane.b32.xlu1 %v2621_v24, %s2860_s5  ;;  %v2623_v25 = vpop.eup %2622 }
 0x7fb   :  { %v2625_v28 = vpop.eup %2624 }
 0x7fc   :  { %v633_v29 = vadd.f32 1.0, %v2625_v28 }
 0x7fe   :  { %608 = vrot.lane.b32.xlu1 %v2623_v25, %s2860_s5  ;;  %2626 = vrcp.f32 %v633_v29 }
 0x808   :  { %v2627_v30 = vpop.eup %2626 }
 0x809   :  { %v648_v32 = vsub.f32 1.0, %v2627_v30  ;;  %v658_v34 = vmul.f32 %v2627_v30, %v656_v31 }
 0x86c   :  { %v651_v33 = vpop.permute.xlu1 %650 }
 0x86d   :  { %v653_v35 = vmul.f32 %v651_v33, %v648_v32 }
 0x86f   :  { %v659_v38 = vadd.f32 %v658_v34, %v653_v35 }
 0x870   :  { %v609_v43 = vpop.permute.xlu1 %608 }
 0x871   :  { %v611_v45 = vmul.f32 %v609_v43, %v606_v40  ;;  %v669_v46 = vrot.slane %v659_v38, 3  ;;  %667 = vst.msk [vmem:[#allocation4] sm:$0x20] %vm666_vm6, %v659_v38 }
 0x873   :  { %v618_v47 = vadd.f32 %v617_v44, %v611_v45  ;;  %670 = vrot.lane.b32.xlu0 %v669_v46, %s2858_s27 }
 0x875   :  { %661 = vrot.lane.b32.xlu1 %v618_v47, %s2860_s5 }
 0x8e5   :  { %v671_v48 = vpop.permute.xlu0 %670 }
 0x8e7   :  { %v662_v49 = vpop.permute.xlu1 %661 }
 0x8e8   :  { %665 = vst.msk [vmem:[#allocation3] sm:$0x4] %vm664_vm7, %v662_v49  ;;  %v673_v50 = vsel %vm158_vm1, %v662_v49, %v671_v48 }
 0x8e9   :  { %v674_v52 = vpack.c.bf16 %v673_v50, %v673_v50  ;;  %v789_v21 = vrot.slane %v673_v50, 6  ;;  %v748_v22 = vrot.slane %v673_v50, 7 }
 0x8eb   :  { %v676_v53 = vrot.slane %v674_v52, 1 }
 0x8ed   :  { %2347 = vmatmul.mubr.msk.bf16.vlgmr.msra.gmra.mrb[8].mxu0 %vm276_vm2, %v676_v53 }
 0x8ee   :  { %950 = vmatpush1.bf16.msra.mxu0 %v2989_v3  ;;  %981 = vmatprep.mubr.bf16.mxu0 %v2859_v5 }
 0x8ef   :  { %951 = vmatprep.subr.bf16.mxu0 %v2994_v4 }
 0x8f2   :  { %952 = vmatpush1.bf16.msra.mxu0 %v3006_v7 }
 0x8f3   :  { %953 = vmatprep.subr.bf16.mxu0 %v3012_v8 }
 0x8f6   :  { %954 = vmatpush1.bf16.msra.mxu0 %v3024_v11 }
 0x8f7   :  { %955 = vmatprep.subr.bf16.mxu0 %v3033_v13 }
 0x8fa   :  { %956 = vmatpush1.bf16.msra.mxu0 %v3044_v15 }
 0x8fb   :  { %1217 = vmatprep.subr.bf16.mxu0 %v2984_v2 }
 0x9c0   :  { %v714_v54 = vpop.f32.mrb[8].mxu0 }
 0x9c1   :  { %v715_v55 = vadd.f32 %v714_v54, %v3112_v41  ;;  %v716_v56 = vpop.f32.mrb[9].mxu0 }
 0x9c2   :  { %v717_v57 = vadd.f32 %v716_v56, %v3114_v42  ;;  %v718_v58 = vpop.f32.mrb[10].mxu0 }
 0x9c3   :  { %v719_v59 = vpop.f32.mrb[11].mxu0  ;;  %v722_v60 = vrot.slane %v715_v55, 5  ;;  %v755_v62 = vrot.slane %v715_v55, 4 }
 0x9c4   :  { %v756_v61 = vrot.slane %v717_v57, 4 }
 0x9c5   :  { %731 = vrot.lane.b32.xlu0 %v722_v60, %s2855_s0  ;;  %v724_v63 = vadd.f32 %v722_v60, %v3121_v51  ;;  %v759_v0 = vadd.f32 %v755_v62, %v3121_v51 }
 0x9c6   :  { %773 = vrot.lane.b32.xlu1 %v756_v61, %s2855_s0  ;;  %v760_v29 = vadd.f32 %v756_v61, %v3104_v36 }
 0x9c7   :  { %v2348_v2 = vmul.f32 -1.442695, %v724_v63  ;;  %v2349_v1 = vmul.f32 -1.442695, %v759_v0 }
 0x9c8   :  { %v2350_v30 = vmul.f32 -1.442695, %v760_v29 }
 0x9c9   :  { %2628 = vpow2.f32 %v2348_v2 }
 0x9ca   :  { %2630 = vpow2.f32 %v2349_v1 }
 0x9d3   :  { %v2629_v6 = vpop.eup %2628 }
 0x9d4   :  { %v2631_v9 = vpop.eup %2630  ;;  %v728_v10 = vadd.f32 1.0, %v2629_v6 }
 0x9d5   :  { %v767_v12 = vadd.f32 1.0, %v2631_v9 }
 0x9d6   :  { %2632 = vrcp.f32 %v728_v10 }
 0x9d7   :  { %2634 = vrcp.f32 %v767_v12 }
 0x9e0   :  { %v2633_v14 = vpop.eup %2632 }
 0x9e1   :  { %v2635_v17 = vpop.eup %2634  ;;  %v741_v45 = vsub.f32 1.0, %v2633_v14 }
 0xa37   :  { %v732_v16 = vpop.permute.xlu0 %731 }
 0xa38   :  { %v734_v18 = vmul.f32 %v2633_v14, %v732_v16  ;;  %v774_v19 = vpop.permute.xlu1 %773 }
 0xa39   :  { %v776_v20 = vmul.f32 %v2635_v17, %v774_v19 }
 0xa3a   :  { %736 = vrot.lane.b32.xlu0 %v734_v18, %s2855_s0 }
 0xa3b   :  { %778 = vrot.lane.b32.xlu1 %v776_v20, %s2855_s0 }
 0xa3e   :  { %790 = vrot.lane.b32.xlu0 %v789_v21, %s2860_s5 }
 0xa42   :  { %749 = vrot.lane.b32.xlu0 %v748_v22, %s2858_s27 }
 0xaac   :  { %v737_v23 = vpop.permute.xlu0 %736 }
 0xaad   :  { %v779_v24 = vpop.permute.xlu1 %778  ;;  %v739_v26 = vadd.f32 %v737_v23, %v3121_v51 }
 0xaae   :  { %v781_v25 = vadd.f32 %v779_v24, %v3104_v36 }
 0xab0   :  { %2636 = vtanh.f32 %v781_v25  ;;  %v791_v34 = vpop.permute.xlu0 %790 }
 0xab1   :  { %2638 = vtanh.f32 %v739_v26 }
 0xab2   :  { %2640 = vpow2.f32 %v2350_v30 }
 0xab4   :  { %v750_v43 = vpop.permute.xlu0 %749 }
 0xab5   :  { %v752_v47 = vmul.f32 %v2633_v14, %v750_v43 }
 0xaba   :  { %v2637_v27 = vpop.eup %2636 }
 0xabb   :  { %785 = vrot.lane.b32.xlu1 %v2637_v27, %s2860_s5  ;;  %v2639_v28 = vpop.eup %2638 }
 0xabc   :  { %v2641_v31 = vpop.eup %2640 }
 0xabd   :  { %v768_v32 = vadd.f32 1.0, %v2641_v31 }
 0xabf   :  { %743 = vrot.lane.b32.xlu1 %v2639_v28, %s2860_s5  ;;  %2642 = vrcp.f32 %v768_v32 }
 0xac9   :  { %v2643_v33 = vpop.eup %2642 }
 0xaca   :  { %v783_v35 = vsub.f32 1.0, %v2643_v33  ;;  %v793_v38 = vmul.f32 %v2643_v33, %v791_v34 }
 0xb2d   :  { %v786_v37 = vpop.permute.xlu1 %785 }
 0xb2e   :  { %v788_v40 = vmul.f32 %v786_v37, %v783_v35 }
 0xb30   :  { %v794_v44 = vadd.f32 %v793_v38, %v788_v40 }
 0xb31   :  { %v744_v46 = vpop.permute.xlu1 %743 }
 0xb32   :  { %v746_v48 = vmul.f32 %v744_v46, %v741_v45  ;;  %v804_v49 = vrot.slane %v794_v44, 1  ;;  %802 = vst.msk [vmem:[#allocation4] sm:$0x10] %vm801_vm8, %v794_v44 }
 0xb34   :  { %v753_v50 = vadd.f32 %v752_v47, %v746_v48  ;;  %805 = vrot.lane.b32.xlu0 %v804_v49, %s2858_s27 }
 0xb36   :  { %796 = vrot.lane.b32.xlu1 %v753_v50, %s2860_s5 }
 0xba6   :  { %v806_v52 = vpop.permute.xlu0 %805 }
 0xba8   :  { %v797_v53 = vpop.permute.xlu1 %796 }
 0xba9   :  { %800 = vst.msk [vmem:[#allocation3] sm:$0x8] %vm799_vm9, %v797_v53  ;;  %v808_v54 = vsel %vm158_vm1, %v797_v53, %v806_v52  ;;  %v2762_v53 = vld [vmem:[%s3541_s4] ss:$8 sps:$4 sm:$0xff]  }
 0xbaa   :  { %v809_v55 = vpack.c.bf16 %v808_v54, %v808_v54  ;;  %v885_v18 = vrot.slane %v808_v54, 7 }
 0xbac   :  { %v811_v56 = vshrl.u32 %v809_v55, 16  ;;  %v2764_v55 = vld [vmem:[%s3541_s4 + $0x10] ss:$8 sps:$4 sm:$0xff]  }
 0xbae   :  { %v813_v57 = vrot.slane %v811_v56, 1  ;;  %v2765_v56 = vld [vmem:[%s3541_s4 + $0x24] ss:$8 sps:$4 sm:$0xff]  }
 0xbb0   :  { %2351 = vmatmul.mubr.msk.bf16.vlgmr.msra.gmra.mrb[8].mxu1 %vm276_vm2, %v813_v57  ;;  %v2766_v57 = vld [vmem:[%s3541_s4 + $0x20] ss:$8 sps:$4 sm:$0xff]  }
 0xbb1   :  { %1085 = vmatpush1.bf16.msra.mxu1 %v2989_v3  ;;  %1116 = vmatprep.mubr.bf16.mxu1 %v2859_v5 }
 0xbb2   :  { %1086 = vmatprep.subr.bf16.mxu1 %v2994_v4 }
 0xbb5   :  { %1087 = vmatpush1.bf16.msra.mxu1 %v3006_v7 }
 0xbb6   :  { %1088 = vmatprep.subr.bf16.mxu1 %v3012_v8 }
 0xbb9   :  { %1089 = vmatpush1.bf16.msra.mxu1 %v3024_v11 }
 0xbba   :  { %1090 = vmatprep.subr.bf16.mxu1 %v3033_v13 }
 0xbbd   :  { %1091 = vmatpush1.bf16.msra.mxu1 %v3044_v15 }
 0xc83   :  { %v851_v58 = vpop.f32.mrb[8].mxu1 }
 0xc84   :  { %v852_v59 = vadd.f32 %v851_v58, %v3112_v41  ;;  %v853_v60 = vpop.f32.mrb[9].mxu1  ;;  %v2768_v58 = vld [vmem:[%s3541_s4 + $0x30] ss:$8 sps:$4 sm:$0xff]  }
 0xc85   :  { %v854_v3 = vadd.f32 %v853_v60, %v3114_v42  ;;  %v855_v61 = vpop.f32.mrb[10].mxu1 }
 0xc86   :  { %v856_v62 = vpop.f32.mrb[11].mxu1  ;;  %v859_v63 = vrot.slane %v852_v59, 4  ;;  %v892_v7 = vrot.slane %v852_v59, 5 }
 0xc87   :  { %v893_v4 = vrot.slane %v854_v3, 5 }
 0xc88   :  { %868 = vrot.lane.b32.xlu0 %v859_v63, %s2855_s0  ;;  %v861_v8 = vadd.f32 %v859_v63, %v3121_v51  ;;  %v896_v11 = vadd.f32 %v892_v7, %v3121_v51 }
 0xc89   :  { %910 = vrot.lane.b32.xlu1 %v893_v4, %s2855_s0  ;;  %v897_v25 = vadd.f32 %v893_v4, %v3104_v36 }
 0xc8a   :  { %v2352_v13 = vmul.f32 -1.442695, %v861_v8  ;;  %v2353_v15 = vmul.f32 -1.442695, %v896_v11 }
 0xc8b   :  { %v2354_v26 = vmul.f32 -1.442695, %v897_v25 }
 0xc8c   :  { %2644 = vpow2.f32 %v2352_v13 }
 0xc8d   :  { %2646 = vpow2.f32 %v2353_v15 }
 0xc96   :  { %v2645_v0 = vpop.eup %2644 }
 0xc97   :  { %v2647_v2 = vpop.eup %2646  ;;  %v865_v1 = vadd.f32 1.0, %v2645_v0 }
 0xc98   :  { %v904_v6 = vadd.f32 1.0, %v2647_v2 }
 0xc99   :  { %2648 = vrcp.f32 %v865_v1 }
 0xc9a   :  { %2650 = vrcp.f32 %v904_v6 }
 0xca3   :  { %v2649_v9 = vpop.eup %2648 }
 0xca4   :  { %v2651_v12 = vpop.eup %2650  ;;  %v878_v38 = vsub.f32 1.0, %v2649_v9 }
 0xcfa   :  { %v869_v10 = vpop.permute.xlu0 %868 }
 0xcfb   :  { %v871_v14 = vmul.f32 %v2649_v9, %v869_v10  ;;  %v911_v16 = vpop.permute.xlu1 %910 }
 0xcfc   :  { %v913_v17 = vmul.f32 %v2651_v12, %v911_v16 }
 0xcfd   :  { %873 = vrot.lane.b32.xlu0 %v871_v14, %s2855_s0 }
 0xcfe   :  { %915 = vrot.lane.b32.xlu1 %v913_v17, %s2855_s0 }
 0xd01   :  { %926 = vrot.lane.b32.xlu0 %v808_v54, %s2860_s5  ;;  %v2763_v54 = vld [vmem:[%s3541_s4 + $0x14] ss:$8 sps:$4 sm:$0xff]  }
 0xd05   :  { %886 = vrot.lane.b32.xlu0 %v885_v18, %s2858_s27 }
 0xd6f   :  { %v874_v19 = vpop.permute.xlu0 %873 }
 0xd70   :  { %v916_v20 = vpop.permute.xlu1 %915  ;;  %v876_v22 = vadd.f32 %v874_v19, %v3121_v51 }
 0xd71   :  { %v918_v21 = vadd.f32 %v916_v20, %v3104_v36 }
 0xd73   :  { %2652 = vtanh.f32 %v918_v21  ;;  %v927_v30 = vpop.permute.xlu0 %926 }
 0xd74   :  { %2654 = vtanh.f32 %v876_v22 }
 0xd75   :  { %2656 = vpow2.f32 %v2354_v26 }
 0xd77   :  { %v887_v35 = vpop.permute.xlu0 %886 }
 0xd78   :  { %v889_v43 = vmul.f32 %v2649_v9, %v887_v35 }
 0xd7d   :  { %v2653_v23 = vpop.eup %2652 }
 0xd7e   :  { %922 = vrot.lane.b32.xlu1 %v2653_v23, %s2860_s5  ;;  %v2655_v24 = vpop.eup %2654 }
 0xd7f   :  { %v2657_v27 = vpop.eup %2656 }
 0xd80   :  { %v905_v28 = vadd.f32 1.0, %v2657_v27 }
 0xd82   :  { %880 = vrot.lane.b32.xlu1 %v2655_v24, %s2860_s5  ;;  %2658 = vrcp.f32 %v905_v28 }
 0xd8c   :  { %v2659_v29 = vpop.eup %2658 }
 0xd8d   :  { %v920_v31 = vsub.f32 1.0, %v2659_v29  ;;  %v929_v33 = vmul.f32 %v2659_v29, %v927_v30 }
 0xdf0   :  { %v923_v32 = vpop.permute.xlu1 %922 }
 0xdf1   :  { %v925_v34 = vmul.f32 %v923_v32, %v920_v31 }
 0xdf3   :  { %v930_v37 = vadd.f32 %v929_v33, %v925_v34 }
 0xdf4   :  { %v881_v40 = vpop.permute.xlu1 %880 }
 0xdf5   :  { %936 = vst.msk [vmem:[#allocation4] sm:$0x8] %vm799_vm9, %v930_v37  ;;  %v883_v44 = vmul.f32 %v881_v40, %v878_v38  ;;  %v938_v45 = vrot.slane %v930_v37, 7 }
 0xdf7   :  { %v890_v46 = vadd.f32 %v889_v43, %v883_v44  ;;  %939 = vrot.lane.b32.xlu0 %v938_v45, %s2858_s27 }
 0xdf9   :  { %932 = vrot.lane.b32.xlu1 %v890_v46, %s2860_s5 }
 0xe69   :  { %v940_v47 = vpop.permute.xlu0 %939 }
 0xe6b   :  { %v933_v48 = vpop.permute.xlu1 %932 }
 0xe6c   :  { %935 = vst.msk [vmem:[#allocation3] sm:$0x10] %vm801_vm8, %v933_v48  ;;  %v942_v49 = vsel %vm158_vm1, %v933_v48, %v940_v47 }
 0xe6d   :  { %v943_v50 = vpack.c.bf16 %v942_v49, %v942_v49  ;;  %v1058_v19 = vrot.slane %v942_v49, 2  ;;  %v1017_v20 = vrot.slane %v942_v49, 7 }
 0xe6f   :  { %v945_v52 = vrot.slane %v943_v50, 2 }
 0xe71   :  { %2355 = vmatmul.mubr.msk.bf16.vlgmr.msra.gmra.mrb[12].mxu0 %vm276_vm2, %v945_v52 }
 0xe72   :  { %1218 = vmatpush1.bf16.msra.mxu0 %v2762_v53  ;;  %1249 = vmatprep.mubr.bf16.mxu0 %v2859_v5  ;;  %v2767_v5 = vld [vmem:[%s3541_s4 + $0x34] ss:$8 sps:$4 sm:$0xff]  }
 0xe73   :  { %1219 = vmatprep.subr.bf16.mxu0 %v2763_v54 }
 0xe76   :  { %1220 = vmatpush1.bf16.msra.mxu0 %v2764_v55 }
 0xe77   :  { %1221 = vmatprep.subr.bf16.mxu0 %v2765_v56 }
 0xe7a   :  { %1222 = vmatpush1.bf16.msra.mxu0 %v2766_v57 }
 0xe7b   :  { %1223 = vmatprep.subr.bf16.mxu0 %v2767_v5 }
 0xe7e   :  { %1224 = vmatpush1.bf16.msra.mxu0 %v2768_v58 }
 0xf44   :  { %v983_v59 = vpop.f32.mrb[12].mxu0 }
 0xf45   :  { %v984_v60 = vadd.f32 %v983_v59, %v3112_v41  ;;  %v985_v3 = vpop.f32.mrb[13].mxu0 }
 0xf46   :  { %v986_v61 = vadd.f32 %v985_v3, %v3114_v42  ;;  %v987_v62 = vpop.f32.mrb[14].mxu0 }
 0xf47   :  { %v988_v63 = vpop.f32.mrb[15].mxu0  ;;  %v991_v4 = vrot.slane %v984_v60, 3  ;;  %v1024_v8 = vrot.slane %v984_v60, 6 }
 0xf48   :  { %v1025_v7 = vrot.slane %v986_v61, 6 }
 0xf49   :  { %1000 = vrot.lane.b32.xlu0 %v991_v4, %s2855_s0  ;;  %v993_v11 = vadd.f32 %v991_v4, %v3121_v51  ;;  %v1028_v13 = vadd.f32 %v1024_v8, %v3121_v51 }
 0xf4a   :  { %1042 = vrot.lane.b32.xlu1 %v1025_v7, %s2855_s0  ;;  %v1029_v27 = vadd.f32 %v1025_v7, %v3104_v36 }
 0xf4b   :  { %v2356_v15 = vmul.f32 -1.442695, %v993_v11  ;;  %v2357_v0 = vmul.f32 -1.442695, %v1028_v13 }
 0xf4c   :  { %v2358_v28 = vmul.f32 -1.442695, %v1029_v27 }
 0xf4d   :  { %2660 = vpow2.f32 %v2356_v15 }
 0xf4e   :  { %2662 = vpow2.f32 %v2357_v0 }
 0xf57   :  { %v2661_v2 = vpop.eup %2660 }
 0xf58   :  { %v2663_v1 = vpop.eup %2662  ;;  %v997_v6 = vadd.f32 1.0, %v2661_v2 }
 0xf59   :  { %v1036_v9 = vadd.f32 1.0, %v2663_v1 }
 0xf5a   :  { %2664 = vrcp.f32 %v997_v6 }
 0xf5b   :  { %2666 = vrcp.f32 %v1036_v9 }
 0xf64   :  { %v2665_v10 = vpop.eup %2664 }
 0xf65   :  { %v2667_v14 = vpop.eup %2666  ;;  %v1010_v43 = vsub.f32 1.0, %v2665_v10 }
 0xfbb   :  { %v1001_v12 = vpop.permute.xlu0 %1000 }
 0xfbc   :  { %v1003_v16 = vmul.f32 %v2665_v10, %v1001_v12  ;;  %v1043_v17 = vpop.permute.xlu1 %1042 }
 0xfbd   :  { %v1045_v18 = vmul.f32 %v2667_v14, %v1043_v17 }
 0xfbe   :  { %1005 = vrot.lane.b32.xlu0 %v1003_v16, %s2855_s0 }
 0xfbf   :  { %1047 = vrot.lane.b32.xlu1 %v1045_v18, %s2855_s0 }
 0xfc2   :  { %1059 = vrot.lane.b32.xlu0 %v1058_v19, %s2860_s5 }
 0xfc6   :  { %1018 = vrot.lane.b32.xlu0 %v1017_v20, %s2858_s27 }
0x1030   :  { %v1006_v21 = vpop.permute.xlu0 %1005 }
0x1031   :  { %v1048_v22 = vpop.permute.xlu1 %1047  ;;  %v1008_v24 = vadd.f32 %v1006_v21, %v3121_v51 }
0x1032   :  { %v1050_v23 = vadd.f32 %v1048_v22, %v3104_v36 }
0x1034   :  { %2668 = vtanh.f32 %v1050_v23  ;;  %v1060_v32 = vpop.permute.xlu0 %1059 }
0x1035   :  { %2670 = vtanh.f32 %v1008_v24 }
0x1036   :  { %2672 = vpow2.f32 %v2358_v28 }
0x1038   :  { %v1019_v38 = vpop.permute.xlu0 %1018 }
0x1039   :  { %v1021_v45 = vmul.f32 %v2665_v10, %v1019_v38 }
0x103e   :  { %v2669_v25 = vpop.eup %2668 }
0x103f   :  { %1054 = vrot.lane.b32.xlu1 %v2669_v25, %s2860_s5  ;;  %v2671_v26 = vpop.eup %2670 }
0x1040   :  { %v2673_v29 = vpop.eup %2672 }
0x1041   :  { %v1037_v30 = vadd.f32 1.0, %v2673_v29 }
0x1043   :  { %1012 = vrot.lane.b32.xlu1 %v2671_v26, %s2860_s5  ;;  %2674 = vrcp.f32 %v1037_v30 }
0x104d   :  { %v2675_v31 = vpop.eup %2674 }
0x104e   :  { %v1052_v33 = vsub.f32 1.0, %v2675_v31  ;;  %v1062_v35 = vmul.f32 %v2675_v31, %v1060_v32 }
0x10b1   :  { %v1055_v34 = vpop.permute.xlu1 %1054 }
0x10b2   :  { %v1057_v37 = vmul.f32 %v1055_v34, %v1052_v33 }
0x10b4   :  { %v1063_v40 = vadd.f32 %v1062_v35, %v1057_v37 }
0x10b5   :  { %v1013_v44 = vpop.permute.xlu1 %1012 }
0x10b6   :  { %1069 = vst.msk [vmem:[#allocation4] sm:$0x4] %vm664_vm7, %v1063_v40  ;;  %v1015_v46 = vmul.f32 %v1013_v44, %v1010_v43  ;;  %v1071_v47 = vrot.slane %v1063_v40, 5 }
0x10b8   :  { %v1022_v48 = vadd.f32 %v1021_v45, %v1015_v46  ;;  %1072 = vrot.lane.b32.xlu0 %v1071_v47, %s2858_s27 }
0x10ba   :  { %1065 = vrot.lane.b32.xlu1 %v1022_v48, %s2860_s5 }
0x112a   :  { %v1073_v49 = vpop.permute.xlu0 %1072 }
0x112c   :  { %v1066_v50 = vpop.permute.xlu1 %1065 }
0x112d   :  { %1068 = vst.msk [vmem:[#allocation3] sm:$0x20] %vm666_vm6, %v1066_v50  ;;  %v1075_v52 = vsel %vm158_vm1, %v1066_v50, %v1073_v49 }
0x112e   :  { %v1076_v53 = vpack.c.bf16 %v1075_v52, %v1075_v52  ;;  %v1193_v14 = vrot.slane %v1075_v52, 4  ;;  %v1152_v16 = vrot.slane %v1075_v52, 7 }
0x1130   :  { %v1078_v54 = vshrl.u32 %v1076_v53, 16 }
0x1132   :  { %v1080_v55 = vrot.slane %v1078_v54, 2 }
0x1134   :  { %2359 = vmatmul.mubr.msk.bf16.vlgmr.msra.gmra.mrb[12].mxu1 %vm276_vm2, %v1080_v55 }
0x1207   :  { %v1118_v56 = vpop.f32.mrb[12].mxu1 }
0x1208   :  { %v1119_v57 = vadd.f32 %v1118_v56, %v3112_v41  ;;  %v1120_v5 = vpop.f32.mrb[13].mxu1 }
0x1209   :  { %v1121_v58 = vadd.f32 %v1120_v5, %v3114_v42  ;;  %v1122_v59 = vpop.f32.mrb[14].mxu1 }
0x120a   :  { %v1123_v60 = vpop.f32.mrb[15].mxu1  ;;  %v1126_v3 = vrot.slane %v1119_v57, 2  ;;  %v1159_v62 = vrot.slane %v1119_v57, 7 }
0x120b   :  { %v1160_v61 = vrot.slane %v1121_v58, 7 }
0x120c   :  { %1135 = vrot.lane.b32.xlu0 %v1126_v3, %s2855_s0  ;;  %v1128_v63 = vadd.f32 %v1126_v3, %v3121_v51  ;;  %v1163_v4 = vadd.f32 %v1159_v62, %v3121_v51 }
0x120d   :  { %1177 = vrot.lane.b32.xlu1 %v1160_v61, %s2855_s0  ;;  %v1164_v23 = vadd.f32 %v1160_v61, %v3104_v36 }
0x120e   :  { %v2360_v7 = vmul.f32 -1.442695, %v1128_v63  ;;  %v2361_v8 = vmul.f32 -1.442695, %v1163_v4 }
0x120f   :  { %v2362_v24 = vmul.f32 -1.442695, %v1164_v23  ;;  %v2571_v23 = vld [vmem:[#allocation10 + $0x8] sm:$0xff]  }
0x1210   :  { %2676 = vpow2.f32 %v2360_v7 }
0x1211   :  { %2678 = vpow2.f32 %v2361_v8 }
0x121a   :  { %v2677_v11 = vpop.eup %2676 }
0x121b   :  { %v2679_v13 = vpop.eup %2678  ;;  %v1132_v15 = vadd.f32 1.0, %v2677_v11 }
0x121c   :  { %v1171_v0 = vadd.f32 1.0, %v2679_v13 }
0x121d   :  { %2680 = vrcp.f32 %v1132_v15 }
0x121e   :  { %2682 = vrcp.f32 %v1171_v0 }
0x1227   :  { %v2681_v2 = vpop.eup %2680 }
0x1228   :  { %v2683_v6 = vpop.eup %2682  ;;  %v1145_v35 = vsub.f32 1.0, %v2681_v2 }
0x127e   :  { %v1136_v1 = vpop.permute.xlu0 %1135 }
0x127f   :  { %v1138_v9 = vmul.f32 %v2681_v2, %v1136_v1  ;;  %v1178_v10 = vpop.permute.xlu1 %1177 }
0x1280   :  { %v1180_v12 = vmul.f32 %v2683_v6, %v1178_v10 }
0x1281   :  { %1140 = vrot.lane.b32.xlu0 %v1138_v9, %s2855_s0 }
0x1282   :  { %1182 = vrot.lane.b32.xlu1 %v1180_v12, %s2855_s0  ;;  %v3336_v12 = vld [vmem:[#allocation11] sm:$0xff]  }
0x1285   :  { %1194 = vrot.lane.b32.xlu0 %v1193_v14, %s2860_s5  ;;  %v2861_v14 = vmov 0.0  }
0x1286   :  { %2455 = vmatprep.subr.bf16.mxu0 %v2861_v14  ;;  %2443 = vmatprep.subr.bf16.mxu1 %v2861_v14 }
0x1287   :  { %2451 = vmatprep.mubr.msk.bf16.mxu1 %vm2862_vm10, %v2861_v14 }
0x1289   :  { %1153 = vrot.lane.b32.xlu0 %v1152_v16, %s2858_s27  ;;  %v3341_v16 = vld [vmem:[#allocation11 + $0x8] sm:$0xff]  }
0x12f3   :  { %v1141_v17 = vpop.permute.xlu0 %1140 }
0x12f4   :  { %v1183_v18 = vpop.permute.xlu1 %1182  ;;  %v1143_v20 = vadd.f32 %v1141_v17, %v3121_v51 }
0x12f5   :  { %v1185_v19 = vadd.f32 %v1183_v18, %v3104_v36 }
0x12f7   :  { %2684 = vtanh.f32 %v1185_v19  ;;  %v1195_v28 = vpop.permute.xlu0 %1194 }
0x12f8   :  { %2686 = vtanh.f32 %v1143_v20 }
0x12f9   :  { %2688 = vpow2.f32 %v2362_v24 }
0x12fb   :  { %v1154_v33 = vpop.permute.xlu0 %1153 }
0x12fc   :  { %v1156_v38 = vmul.f32 %v2681_v2, %v1154_v33 }
0x1301   :  { %v2685_v21 = vpop.eup %2684 }
0x1302   :  { %1189 = vrot.lane.b32.xlu1 %v2685_v21, %s2860_s5  ;;  %v2687_v22 = vpop.eup %2686 }
0x1303   :  { %v2689_v25 = vpop.eup %2688 }
0x1304   :  { %v1172_v26 = vadd.f32 1.0, %v2689_v25  ;;  %v2572_v25 = vld [vmem:[#allocation10 + $0x10] sm:$0xff]  }
0x1306   :  { %1147 = vrot.lane.b32.xlu1 %v2687_v22, %s2860_s5  ;;  %2690 = vrcp.f32 %v1172_v26  ;;  %v2570_v22 = vld [vmem:[#allocation10] sm:$0xff]  }
0x1307   :  { %2444 = vmatpush3.bf16.msra.mxu1 %v2570_v22 }
0x1308   :  { %2445 = vmatprep.subr.bf16.mxu1 %v2861_v14 }
0x130b   :  { %2446 = vmatpush3.bf16.msra.mxu1 %v2571_v23 }
0x130c   :  { %2447 = vmatprep.subr.bf16.mxu1 %v2861_v14 }
0x130f   :  { %2448 = vmatpush3.bf16.msra.mxu1 %v2572_v25 }
0x1310   :  { %v2691_v27 = vpop.eup %2690  ;;  %2449 = vmatprep.subr.bf16.mxu1 %v2861_v14 }
0x1311   :  { %v1187_v29 = vsub.f32 1.0, %v2691_v27  ;;  %v1197_v31 = vmul.f32 %v2691_v27, %v1195_v28 }
0x1374   :  { %v1190_v30 = vpop.permute.xlu1 %1189 }
0x1375   :  { %v1192_v32 = vmul.f32 %v1190_v30, %v1187_v29 }
0x1377   :  { %v1198_v34 = vadd.f32 %v1197_v31, %v1192_v32 }
0x1378   :  { %v1148_v37 = vpop.permute.xlu1 %1147 }
0x1379   :  { %1204 = vst.msk [vmem:[#allocation4] sm:$0x2] %vm528_vm5, %v1198_v34  ;;  %v1150_v40 = vmul.f32 %v1148_v37, %v1145_v35  ;;  %v1206_v43 = vrot.slane %v1198_v34, 3  ;;  %v2573_v34 = vld [vmem:[#allocation10 + $0x18] sm:$0xff]  }
0x137a   :  { %2450 = vmatpush3.bf16.msra.mxu1 %v2573_v34 }
0x137b   :  { %v1157_v44 = vadd.f32 %v1156_v38, %v1150_v40  ;;  %1207 = vrot.lane.b32.xlu0 %v1206_v43, %s2858_s27  ;;  %2471 = vmatprep.subr.bf16.mxu1 %v2861_v14  ;;  %v3376_v43 = vld [vmem:[%s3547_s10] sm:$0x1] }
0x137d   :  { %1200 = vrot.lane.b32.xlu1 %v1157_v44, %s2860_s5 }
0x13ed   :  { %v1208_v45 = vpop.permute.xlu0 %1207 }
0x13ef   :  { %v1201_v46 = vpop.permute.xlu1 %1200 }
0x13f0   :  { %1203 = vst.msk [vmem:[#allocation3] sm:$0x40] %vm530_vm4, %v1201_v46  ;;  %v1210_v47 = vsel %vm158_vm1, %v1201_v46, %v1208_v45 }
0x13f1   :  { %v1211_v48 = vpack.c.bf16 %v1210_v47, %v1210_v47  ;;  %v1285_v13 = vrot.slane %v1210_v47, 7  ;;  %v1322_v15 = vrot.slane %v1210_v47, 6 }
0x13f3   :  { %v1213_v49 = vrot.slane %v1211_v48, 3 }
0x13f5   :  { %2363 = vmatmul.mubr.msk.bf16.vlgmr.msra.gmra.mrb[16].mxu0 %vm276_vm2, %v1213_v49 }
0x13f6   :  { %2456 = vmatpush3.bf16.msra.mxu0 %v3336_v12  ;;  %2459 = vmatprep.mubr.msk.bf16.mxu0 %vm2862_vm10, %v2861_v14 }
0x13f7   :  { %2457 = vmatprep.subr.bf16.mxu0 %v2861_v14 }
0x13fa   :  { %2458 = vmatpush3.bf16.msra.mxu0 %v3341_v16 }
0x13fb   :  { %2463 = vmatprep.subr.bf16.mxu0 %v2861_v14 }
0x14c8   :  { %v1251_v50 = vpop.f32.mrb[16].mxu0 }
0x14c9   :  { %v1252_v52 = vadd.f32 %v1251_v50, %v3112_v41  ;;  %v1253_v53 = vpop.f32.mrb[17].mxu0 }
0x14ca   :  { %v1254_v54 = vadd.f32 %v1253_v53, %v3114_v42  ;;  %v1255_v55 = vpop.f32.mrb[18].mxu0 }
0x14cb   :  { %v1256_v56 = vpop.f32.mrb[19].mxu0  ;;  %v1259_v57 = vrot.slane %v1252_v52, 1  ;;  %v1291_v5 = vadd.f32 %v1252_v52, %v3121_v51  ;;  %v2367_v55 = vld [vmem:[%s3546_s9] ss:$0 sm:$0xff] }
0x14cc   :  { %1306 = vrot.lane.b32.xlu0 %v1254_v54, %s2855_s0  ;;  %v1292_v18 = vadd.f32 %v1254_v54, %v3104_v36 }
0x14cd   :  { %1268 = vrot.lane.b32.xlu1 %v1259_v57, %s2855_s0  ;;  %v1261_v58 = vadd.f32 %v1259_v57, %v3121_v51  ;;  %v2365_v59 = vmul.f32 -1.442695, %v1291_v5 }
0x14ce   :  { %v2366_v19 = vmul.f32 -1.442695, %v1292_v18 }
0x14cf   :  { %v2364_v60 = vmul.f32 -1.442695, %v1261_v58  ;;  %2692 = vpow2.f32 %v2365_v59 }
0x14d1   :  { %2694 = vpow2.f32 %v2364_v60 }
0x14d9   :  { %v2693_v3 = vpop.eup %2692 }
0x14da   :  { %v1299_v61 = vadd.f32 1.0, %v2693_v3 }
0x14db   :  { %v2695_v41 = vpop.eup %2694 }
0x14dc   :  { %v1265_v62 = vadd.f32 1.0, %v2695_v41  ;;  %2696 = vrcp.f32 %v1299_v61 }
0x14de   :  { %2698 = vrcp.f32 %v1265_v62 }
0x14e6   :  { %v2697_v42 = vpop.eup %2696 }
0x14e8   :  { %v2699_v4 = vpop.eup %2698 }
0x14e9   :  { %v1278_v26 = vsub.f32 1.0, %v2699_v4 }
0x153e   :  { %v1307_v63 = vpop.permute.xlu0 %1306 }
0x153f   :  { %v1309_v7 = vmul.f32 %v2697_v42, %v1307_v63  ;;  %v1269_v8 = vpop.permute.xlu1 %1268 }
0x1540   :  { %v1271_v11 = vmul.f32 %v2699_v4, %v1269_v8 }
0x1541   :  { %1311 = vrot.lane.b32.xlu0 %v1309_v7, %s2855_s0 }
0x1542   :  { %1273 = vrot.lane.b32.xlu1 %v1271_v11, %s2855_s0 }
0x1545   :  { %1286 = vrot.lane.b32.xlu0 %v1285_v13, %s2858_s27 }
0x1549   :  { %1323 = vrot.lane.b32.xlu0 %v1322_v15, %s2860_s5 }
0x15b3   :  { %v1312_v0 = vpop.permute.xlu0 %1311 }
0x15b4   :  { %v1274_v2 = vpop.permute.xlu1 %1273  ;;  %v1314_v6 = vadd.f32 %v1312_v0, %v3104_v36 }
0x15b5   :  { %v1276_v1 = vadd.f32 %v1274_v2, %v3121_v51  ;;  %v3348_v51 = vld [vmem:[%s3539_s2 + $0x2] sm:$0x1] }
0x15b6   :  { %v1431_v17 = vpack.c.bf16 %v3348_v51, %v3348_v51 }
0x15b7   :  { %2700 = vtanh.f32 %v1276_v1  ;;  %v1287_v24 = vpop.permute.xlu0 %1286 }
0x15b8   :  { %2702 = vtanh.f32 %v1314_v6  ;;  %2460 = vmatmul.mubr.msk.bf16.vlgmr.msra.gmra.mrb[20].mxu0 %vm158_vm1, %v1431_v17  ;;  %v1289_v29 = vmul.f32 %v2699_v4, %v1287_v24  ;;  %v1515_v4 = vrot.slane %v3348_v51, %v3106_v39 }
0x15b9   :  { %2464 = vmatpush3.bf16.msra.mxu0 %v3336_v12  ;;  %2467 = vmatprep.mubr.msk.bf16.mxu0 %vm2862_vm10, %v2861_v14  ;;  %2704 = vpow2.f32 %v2366_v19 }
0x15ba   :  { %2465 = vmatprep.subr.bf16.mxu0 %v2861_v14 }
0x15bb   :  { %v1324_v30 = vpop.permute.xlu0 %1323 }
0x15bd   :  { %2466 = vmatpush3.bf16.msra.mxu0 %v3341_v16 }
0x15be   :  { %2479 = vmatprep.subr.bf16.mxu0 %v2861_v14 }
0x15c1   :  { %v2701_v9 = vpop.eup %2700 }
0x15c2   :  { %1280 = vrot.lane.b32.xlu1 %v2701_v9, %s2860_s5  ;;  %v2703_v10 = vpop.eup %2702 }
0x15c3   :  { %v2705_v20 = vpop.eup %2704 }
0x15c4   :  { %v1300_v21 = vadd.f32 1.0, %v2705_v20 }
0x15c6   :  { %1318 = vrot.lane.b32.xlu1 %v2703_v10, %s2860_s5  ;;  %2706 = vrcp.f32 %v1300_v21 }
0x15d0   :  { %v2707_v27 = vpop.eup %2706 }
0x15d1   :  { %v1316_v32 = vsub.f32 1.0, %v2707_v27  ;;  %v1326_v35 = vmul.f32 %v2707_v27, %v1324_v30 }
0x1634   :  { %v1281_v28 = vpop.permute.xlu1 %1280 }
0x1635   :  { %v1283_v36 = vmul.f32 %v1281_v28, %v1278_v26 }
0x1637   :  { %v1290_v31 = vadd.f32 %v1289_v29, %v1283_v36 }
0x1638   :  { %v1319_v33 = vpop.permute.xlu1 %1318 }
0x1639   :  { %v1321_v37 = vmul.f32 %v1319_v33, %v1316_v32  ;;  %1329 = vrot.lane.b32.xlu1 %v1290_v31, %s2860_s5 }
0x163b   :  { %v1327_v38 = vadd.f32 %v1326_v35, %v1321_v37 }
0x163d   :  { %1333 = vst.msk [vmem:[#allocation4] sm:$0x1] %vm90_vm0, %v1327_v38 }
0x1644   :  { %v1335_v40 = vld [vmem:[#allocation4] sm:$0xff] }
0x1645   :  { %1337 = vrot.lane.b32.xlu0 %v1335_v40, %s2858_s27 }
0x168b   :  { %v1481_v44 = vpop.f32.mrb[20].mxu0 }
0x168c   :  { %v1482_v45 = vadd.f32 %v1481_v44, %v3376_v43  ;;  %v2461_v46 = vpop.f32.mrb[21].mxu0 }
0x168d   :  { %v1484_v47 = vpop.f32.mrb[22].mxu0 }
0x168e   :  { %v2462_v48 = vpop.f32.mrb[23].mxu0  ;;  %1495 = vrot.lane.b32.xlu1 %v1482_v45, %s2855_s0 }
0x16ab   :  { %v1330_v49 = vpop.permute.xlu1 %1329 }
0x16ac   :  { %1332 = vst.msk [vmem:[#allocation3] sm:$0x80] %vm397_vm3, %v1330_v49 }
0x16b3   :  { %v1334_v52 = vld [vmem:[#allocation3] sm:$0xff] }
0x16b7   :  { %v1338_v50 = vpop.permute.xlu0 %1337 }
0x16b8   :  { %v1340_v53 = vsel %vm158_vm1, %v1334_v52, %v1338_v50 }
0x16b9   :  { %v3382_v54 = vpack.c.bf16 %v1340_v53, %v1340_v53 }
0x16bb   :  { %2452 = vmatmul.mubr.msk.bf16.vlgmr.msra.gmra.mrb[16].mxu1 %vm276_vm2, %v3382_v54 }
0x16bc   :  { %2472 = vmatpush3.bf16.msra.mxu1 %v3336_v12  ;;  %2475 = vmatprep.mubr.msk.bf16.mxu1 %vm2862_vm10, %v2861_v14 }
0x16bd   :  { %2473 = vmatprep.subr.bf16.mxu1 %v2861_v14 }
0x16c0   :  { %2474 = vmatpush3.bf16.msra.mxu1 %v3341_v16 }
0x16c1   :  { %2487 = vmatprep.subr.bf16.mxu1 %v2861_v14 }
0x1700   :  { %v1496_v62 = vpop.permute.xlu1 %1495 }
0x178e   :  { %v1418_v56 = vpop.f32.mrb[16].mxu1 }
0x178f   :  { %v3395_v57 = vadd.f32 %v2367_v55, %v1418_v56  ;;  %v2453_v5 = vpop.f32.mrb[17].mxu1 }
0x1790   :  { %v1421_v58 = vpop.f32.mrb[18].mxu1 }
0x1791   :  { %v2454_v59 = vpop.f32.mrb[19].mxu1  ;;  %v1487_v60 = vadd.f32 %v1482_v45, %v3395_v57 }
0x1793   :  { %v2377_v3 = vmul.f32 -1.442695, %v1487_v60 }
0x1795   :  { %2708 = vpow2.f32 %v2377_v3 }
0x179f   :  { %v2709_v41 = vpop.eup %2708 }
0x17a0   :  { %v1491_v61 = vadd.f32 1.0, %v2709_v41 }
0x17a2   :  { %2710 = vrcp.f32 %v1491_v61 }
0x17ac   :  { %v2711_v42 = vpop.eup %2710 }
0x17ad   :  { %v1498_v63 = vmul.f32 %v2711_v42, %v1496_v62  ;;  %v1505_v15 = vsub.f32 1.0, %v2711_v42 }
0x17af   :  { %1500 = vrot.lane.b32.xlu0 %v1498_v63, %s2855_s0 }
0x17b3   :  { %1516 = vrot.lane.b32.xlu0 %v1515_v4, %s2858_s27 }
0x1821   :  { %v1501_v7 = vpop.permute.xlu0 %1500 }
0x1822   :  { %v1503_v8 = vadd.f32 %v1501_v7, %v3395_v57 }
0x1824   :  { %2712 = vtanh.f32 %v1503_v8 }
0x1825   :  { %v1517_v13 = vpop.permute.xlu0 %1516 }
0x1826   :  { %v1519_v2 = vmul.f32 %v2711_v42, %v1517_v13 }
0x182e   :  { %v2713_v11 = vpop.eup %2712 }
0x182f   :  { %1507 = vrot.lane.b32.xlu1 %v2713_v11, %s2860_s5 }
0x18a1   :  { %v1508_v0 = vpop.permute.xlu1 %1507 }
0x18a2   :  { %v1510_v1 = vmul.f32 %v1508_v0, %v1505_v15 }
0x18a4   :  { %v1520_v6 = vadd.f32 %v1519_v2, %v1510_v1 }
0x18a6   :  { %v1521_v9 = vpack.c.bf16 %v1520_v6, %v1520_v6  ;;  %v1595_v31 = vrot.slane %v1520_v6, 7 }
0x18a8   :  { %1523 = vrot.lane.b32.xlu1 %v1521_v9, %s2860_s5 }
0x191a   :  { %v1524_v10 = vpop.permute.xlu1 %1523 }
0x191b   :  { %2468 = vmatmul.mubr.msk.bf16.vlgmr.msra.gmra.mrb[24].mxu0 %vm158_vm1, %v1524_v10 }
0x191c   :  { %2480 = vmatpush3.bf16.msra.mxu0 %v3336_v12  ;;  %2483 = vmatprep.mubr.msk.bf16.mxu0 %vm2862_vm10, %v2861_v14 }
0x191d   :  { %2481 = vmatprep.subr.bf16.mxu0 %v2861_v14 }
0x1920   :  { %2482 = vmatpush3.bf16.msra.mxu0 %v3341_v16 }
0x1921   :  { %2495 = vmatprep.subr.bf16.mxu0 %v2861_v14 }
0x19ee   :  { %v1562_v51 = vpop.f32.mrb[24].mxu0 }
0x19ef   :  { %v1563_v17 = vadd.f32 %v1562_v51, %v3376_v43  ;;  %v2469_v18 = vpop.f32.mrb[25].mxu0 }
0x19f0   :  { %v1565_v19 = vpop.f32.mrb[26].mxu0 }
0x19f1   :  { %v1569_v20 = vrot.slane %v1563_v17, 7  ;;  %v2470_v21 = vpop.f32.mrb[27].mxu0 }
0x19f3   :  { %1578 = vrot.lane.b32.xlu0 %v1569_v20, %s2855_s0  ;;  %v1571_v22 = vadd.f32 %v1569_v20, %v3395_v57 }
0x19f5   :  { %v2379_v23 = vmul.f32 -1.442695, %v1571_v22 }
0x19f7   :  { %2714 = vpow2.f32 %v2379_v23 }
0x1a01   :  { %v2715_v24 = vpop.eup %2714 }
0x1a02   :  { %v1575_v25 = vadd.f32 1.0, %v2715_v24 }
0x1a04   :  { %2716 = vrcp.f32 %v1575_v25 }
0x1a0e   :  { %v2717_v26 = vpop.eup %2716 }
0x1a0f   :  { %v1588_v32 = vsub.f32 1.0, %v2717_v26  ;;  %v1597_v34 = vmul.f32 %v2717_v26, %v1595_v31 }
0x1a65   :  { %v1579_v27 = vpop.permute.xlu0 %1578 }
0x1a66   :  { %v1581_v28 = vmul.f32 %v2717_v26, %v1579_v27 }
0x1a68   :  { %1583 = vrot.lane.b32.xlu1 %v1581_v28, %s2855_s0 }
0x1ada   :  { %v1584_v29 = vpop.permute.xlu1 %1583 }
0x1adb   :  { %v1586_v36 = vadd.f32 %v1584_v29, %v3395_v57 }
0x1add   :  { %2718 = vtanh.f32 %v1586_v36 }
0x1ae7   :  { %v2719_v30 = vpop.eup %2718 }
0x1ae8   :  { %1590 = vrot.lane.b32.xlu0 %v2719_v30, %s2860_s5 }
0x1b5a   :  { %v1591_v33 = vpop.permute.xlu0 %1590 }
0x1b5b   :  { %v1593_v35 = vmul.f32 %v1591_v33, %v1588_v32 }
0x1b5d   :  { %v1598_v37 = vadd.f32 %v1597_v34, %v1593_v35 }
0x1b5f   :  { %v1599_v38 = vpack.c.bf16 %v1598_v37, %v1598_v37  ;;  %v1675_v61 = vrot.slane %v1598_v37, 7 }
0x1b61   :  { %v1601_v40 = vshrl.u32 %v1599_v38, 16 }
0x1b63   :  { %1603 = vrot.lane.b32.xlu1 %v1601_v40, %s2860_s5 }
0x1bd5   :  { %v1604_v44 = vpop.permute.xlu1 %1603 }
0x1bd6   :  { %2476 = vmatmul.mubr.msk.bf16.vlgmr.msra.gmra.mrb[20].mxu1 %vm158_vm1, %v1604_v44 }
0x1bd7   :  { %2488 = vmatpush3.bf16.msra.mxu1 %v3336_v12  ;;  %2491 = vmatprep.mubr.msk.bf16.mxu1 %vm2862_vm10, %v2861_v14 }
0x1bd8   :  { %2489 = vmatprep.subr.bf16.mxu1 %v2861_v14 }
0x1bdb   :  { %2490 = vmatpush3.bf16.msra.mxu1 %v3341_v16 }
0x1bdc   :  { %2503 = vmatprep.subr.bf16.mxu1 %v2861_v14 }
0x1ca9   :  { %v1642_v45 = vpop.f32.mrb[20].mxu1 }
0x1caa   :  { %v1643_v46 = vadd.f32 %v1642_v45, %v3376_v43  ;;  %v2477_v47 = vpop.f32.mrb[21].mxu1 }
0x1cab   :  { %v1645_v48 = vpop.f32.mrb[22].mxu1 }
0x1cac   :  { %v1649_v49 = vrot.slane %v1643_v46, 6  ;;  %v2478_v50 = vpop.f32.mrb[23].mxu1 }
0x1cae   :  { %1658 = vrot.lane.b32.xlu0 %v1649_v49, %s2855_s0  ;;  %v1651_v52 = vadd.f32 %v1649_v49, %v3395_v57 }
0x1cb0   :  { %v2381_v53 = vmul.f32 -1.442695, %v1651_v52 }
0x1cb2   :  { %2720 = vpow2.f32 %v2381_v53 }
0x1cbc   :  { %v2721_v55 = vpop.eup %2720 }
0x1cbd   :  { %v1655_v56 = vadd.f32 1.0, %v2721_v55 }
0x1cbf   :  { %2722 = vrcp.f32 %v1655_v56 }
0x1cc9   :  { %v2723_v5 = vpop.eup %2722 }
0x1cca   :  { %v1668_v62 = vsub.f32 1.0, %v2723_v5  ;;  %v1677_v63 = vmul.f32 %v2723_v5, %v1675_v61 }
0x1d20   :  { %v1659_v58 = vpop.permute.xlu0 %1658 }
0x1d21   :  { %v1661_v59 = vmul.f32 %v2723_v5, %v1659_v58 }
0x1d23   :  { %1663 = vrot.lane.b32.xlu1 %v1661_v59, %s2855_s0 }
0x1d95   :  { %v1664_v60 = vpop.permute.xlu1 %1663 }
0x1d96   :  { %v1666_v3 = vadd.f32 %v1664_v60, %v3395_v57 }
0x1d98   :  { %2724 = vtanh.f32 %v1666_v3 }
0x1da2   :  { %v2725_v41 = vpop.eup %2724 }
0x1da3   :  { %1670 = vrot.lane.b32.xlu0 %v2725_v41, %s2860_s5 }
0x1e15   :  { %v1671_v42 = vpop.permute.xlu0 %1670 }
0x1e16   :  { %v1673_v4 = vmul.f32 %v1671_v42, %v1668_v62 }
0x1e18   :  { %v1678_v7 = vadd.f32 %v1677_v63, %v1673_v4 }
0x1e1a   :  { %v1679_v8 = vpack.c.bf16 %v1678_v7, %v1678_v7  ;;  %v1754_v25 = vrot.slane %v1678_v7, 7 }
0x1e1c   :  { %v1681_v11 = vrot.slane %v1679_v8, 1 }
0x1e1e   :  { %1682 = vrot.lane.b32.xlu1 %v1681_v11, %s2860_s5 }
0x1e90   :  { %v1683_v13 = vpop.permute.xlu1 %1682 }
0x1e91   :  { %2484 = vmatmul.mubr.msk.bf16.vlgmr.msra.gmra.mrb[28].mxu0 %vm158_vm1, %v1683_v13 }
0x1e92   :  { %2496 = vmatpush3.bf16.msra.mxu0 %v3336_v12  ;;  %2499 = vmatprep.mubr.msk.bf16.mxu0 %vm2862_vm10, %v2861_v14 }
0x1e93   :  { %2497 = vmatprep.subr.bf16.mxu0 %v2861_v14 }
0x1e96   :  { %2498 = vmatpush3.bf16.msra.mxu0 %v3341_v16 }
0x1e97   :  { %2511 = vmatprep.subr.bf16.mxu0 %v2861_v14 }
0x1f64   :  { %v1721_v15 = vpop.f32.mrb[28].mxu0 }
0x1f65   :  { %v1722_v0 = vadd.f32 %v1721_v15, %v3376_v43  ;;  %v2485_v2 = vpop.f32.mrb[29].mxu0 }
0x1f66   :  { %v1724_v1 = vpop.f32.mrb[30].mxu0 }
0x1f67   :  { %v1728_v6 = vrot.slane %v1722_v0, 5  ;;  %v2486_v9 = vpop.f32.mrb[31].mxu0 }
0x1f69   :  { %1737 = vrot.lane.b32.xlu0 %v1728_v6, %s2855_s0  ;;  %v1730_v10 = vadd.f32 %v1728_v6, %v3395_v57 }
0x1f6b   :  { %v2383_v51 = vmul.f32 -1.442695, %v1730_v10 }
0x1f6d   :  { %2726 = vpow2.f32 %v2383_v51 }
0x1f77   :  { %v2727_v17 = vpop.eup %2726 }
0x1f78   :  { %v1734_v18 = vadd.f32 1.0, %v2727_v17 }
0x1f7a   :  { %2728 = vrcp.f32 %v1734_v18 }
0x1f84   :  { %v2729_v19 = vpop.eup %2728 }
0x1f85   :  { %v1747_v26 = vsub.f32 1.0, %v2729_v19  ;;  %v1756_v28 = vmul.f32 %v2729_v19, %v1754_v25 }
0x1fdb   :  { %v1738_v20 = vpop.permute.xlu0 %1737 }
0x1fdc   :  { %v1740_v21 = vmul.f32 %v2729_v19, %v1738_v20 }
0x1fde   :  { %1742 = vrot.lane.b32.xlu1 %v1740_v21, %s2855_s0 }
0x2050   :  { %v1743_v22 = vpop.permute.xlu1 %1742 }
0x2051   :  { %v1745_v23 = vadd.f32 %v1743_v22, %v3395_v57 }
0x2053   :  { %2730 = vtanh.f32 %v1745_v23 }
0x205d   :  { %v2731_v24 = vpop.eup %2730 }
0x205e   :  { %1749 = vrot.lane.b32.xlu0 %v2731_v24, %s2860_s5 }
0x20d0   :  { %v1750_v27 = vpop.permute.xlu0 %1749 }
0x20d1   :  { %v1752_v29 = vmul.f32 %v1750_v27, %v1747_v26  ;;  %v2574_v26 = vld [vmem:[#allocation10 + $0x20] sm:$0xff]  }
0x20d3   :  { %v1757_v36 = vadd.f32 %v1756_v28, %v1752_v29  ;;  %v2575_v28 = vld [vmem:[#allocation10 + $0x28] sm:$0xff]   ;;  %v2576_v29 = vld [vmem:[#allocation10 + $0x30] sm:$0xff]  }
0x20d5   :  { %v1758_v30 = vpack.c.bf16 %v1757_v36, %v1757_v36  ;;  %v1835_v5 = vrot.slane %v1757_v36, 7  ;;  %v2577_v36 = vld [vmem:[#allocation10 + $0x38] sm:$0xff]  }
0x20d7   :  { %v1760_v31 = vshrl.u32 %v1758_v30, 16  ;;  %v2089_v30 = vshrl.u32 %v3382_v54, 16 }
0x20d9   :  { %v1762_v32 = vrot.slane %v1760_v31, 1  ;;  %v2091_v31 = vrot.slane %v2089_v30, 3 }
0x20db   :  { %1763 = vrot.lane.b32.xlu1 %v1762_v32, %s2860_s5 }
0x214d   :  { %v1764_v33 = vpop.permute.xlu1 %1763 }
0x214e   :  { %2492 = vmatmul.mubr.msk.bf16.vlgmr.msra.gmra.mrb[24].mxu1 %vm158_vm1, %v1764_v33 }
0x214f   :  { %2504 = vmatpush3.bf16.msra.mxu1 %v3336_v12  ;;  %2507 = vmatprep.mubr.msk.bf16.mxu1 %vm2862_vm10, %v2861_v14 }
0x2150   :  { %2505 = vmatprep.subr.bf16.mxu1 %v2861_v14 }
0x2153   :  { %2506 = vmatpush3.bf16.msra.mxu1 %v3341_v16 }
0x2154   :  { %2519 = vmatprep.subr.bf16.mxu1 %v2861_v14 }
0x2221   :  { %v1802_v34 = vpop.f32.mrb[24].mxu1 }
0x2222   :  { %v1803_v35 = vadd.f32 %v1802_v34, %v3376_v43  ;;  %v2493_v37 = vpop.f32.mrb[25].mxu1 }
0x2223   :  { %v1805_v38 = vpop.f32.mrb[26].mxu1 }
0x2224   :  { %v1809_v40 = vrot.slane %v1803_v35, 4  ;;  %v2494_v44 = vpop.f32.mrb[27].mxu1 }
0x2226   :  { %1818 = vrot.lane.b32.xlu0 %v1809_v40, %s2855_s0  ;;  %v1811_v45 = vadd.f32 %v1809_v40, %v3395_v57 }
0x2228   :  { %v2385_v46 = vmul.f32 -1.442695, %v1811_v45 }
0x222a   :  { %2732 = vpow2.f32 %v2385_v46 }
0x2234   :  { %v2733_v47 = vpop.eup %2732 }
0x2235   :  { %v1815_v48 = vadd.f32 1.0, %v2733_v47 }
0x2237   :  { %2734 = vrcp.f32 %v1815_v48 }
0x2241   :  { %v2735_v49 = vpop.eup %2734 }
0x2242   :  { %v1828_v58 = vsub.f32 1.0, %v2735_v49  ;;  %v1837_v60 = vmul.f32 %v2735_v49, %v1835_v5 }
0x2298   :  { %v1819_v50 = vpop.permute.xlu0 %1818 }
0x2299   :  { %v1821_v52 = vmul.f32 %v2735_v49, %v1819_v50 }
0x229b   :  { %1823 = vrot.lane.b32.xlu1 %v1821_v52, %s2855_s0 }
0x230d   :  { %v1824_v53 = vpop.permute.xlu1 %1823 }
0x230e   :  { %v1826_v55 = vadd.f32 %v1824_v53, %v3395_v57 }
0x2310   :  { %2736 = vtanh.f32 %v1826_v55 }
0x231a   :  { %v2737_v56 = vpop.eup %2736 }
0x231b   :  { %1830 = vrot.lane.b32.xlu0 %v2737_v56, %s2860_s5 }
0x238d   :  { %v1831_v59 = vpop.permute.xlu0 %1830 }
0x238e   :  { %v1833_v3 = vmul.f32 %v1831_v59, %v1828_v58 }
0x2390   :  { %v1838_v41 = vadd.f32 %v1837_v60, %v1833_v3 }
0x2392   :  { %v1839_v61 = vpack.c.bf16 %v1838_v41, %v1838_v41  ;;  %v1914_v17 = vrot.slane %v1838_v41, 7 }
0x2394   :  { %v1841_v62 = vrot.slane %v1839_v61, 2 }
0x2396   :  { %1842 = vrot.lane.b32.xlu1 %v1841_v62, %s2860_s5 }
0x2408   :  { %v1843_v42 = vpop.permute.xlu1 %1842 }
0x2409   :  { %2500 = vmatmul.mubr.msk.bf16.vlgmr.msra.gmra.mrb[32].mxu0 %vm158_vm1, %v1843_v42 }
0x240a   :  { %2512 = vmatpush3.bf16.msra.mxu0 %v3336_v12  ;;  %2515 = vmatprep.mubr.msk.bf16.mxu0 %vm2862_vm10, %v2861_v14 }
0x240b   :  { %2513 = vmatprep.subr.bf16.mxu0 %v2861_v14 }
0x240e   :  { %2514 = vmatpush3.bf16.msra.mxu0 %v3341_v16 }
0x240f   :  { %2531 = vmatprep.subr.bf16.mxu0 %v2861_v14 }
0x24dc   :  { %v1881_v63 = vpop.f32.mrb[32].mxu0 }
0x24dd   :  { %v1882_v4 = vadd.f32 %v1881_v63, %v3376_v43  ;;  %v2501_v7 = vpop.f32.mrb[33].mxu0  ;;  %v2578_v63 = vld [vmem:[#allocation11 + $0x10] sm:$0xff]  }
0x24de   :  { %v1884_v8 = vpop.f32.mrb[34].mxu0  ;;  %v2579_v7 = vld [vmem:[#allocation11 + $0x18] sm:$0xff]  }
0x24df   :  { %v1888_v11 = vrot.slane %v1882_v4, 3  ;;  %v2502_v13 = vpop.f32.mrb[35].mxu0  ;;  %v2398_v8 = vld [vmem:[%s3539_s2 + $0x3] sm:$0x1] }
0x24e1   :  { %1897 = vrot.lane.b32.xlu0 %v1888_v11, %s2855_s0  ;;  %v1890_v12 = vadd.f32 %v1888_v11, %v3395_v57  ;;  %v2161_v11 = vpack.c.bf16 %v2398_v8, %v2398_v8 }
0x24e3   :  { %v2387_v15 = vmul.f32 -1.442695, %v1890_v12 }
0x24e5   :  { %2738 = vpow2.f32 %v2387_v15 }
0x24ef   :  { %v2739_v0 = vpop.eup %2738 }
0x24f0   :  { %v1894_v2 = vadd.f32 1.0, %v2739_v0 }
0x24f2   :  { %2740 = vrcp.f32 %v1894_v2 }
0x24fc   :  { %v2741_v1 = vpop.eup %2740 }
0x24fd   :  { %v1907_v18 = vsub.f32 1.0, %v2741_v1  ;;  %v1916_v20 = vmul.f32 %v2741_v1, %v1914_v17 }
0x2553   :  { %v1898_v16 = vpop.permute.xlu0 %1897 }
0x2554   :  { %v1900_v6 = vmul.f32 %v2741_v1, %v1898_v16  ;;  %v2399_v16 = vld [vmem:[%s3547_s10 + $0x1] sm:$0x1] }
0x2556   :  { %1902 = vrot.lane.b32.xlu1 %v1900_v6, %s2855_s0 }
0x25c8   :  { %v1903_v9 = vpop.permute.xlu1 %1902 }
0x25c9   :  { %v1905_v10 = vadd.f32 %v1903_v9, %v3395_v57 }
0x25cb   :  { %2742 = vtanh.f32 %v1905_v10 }
0x25d5   :  { %v2743_v51 = vpop.eup %2742 }
0x25d6   :  { %1909 = vrot.lane.b32.xlu0 %v2743_v51, %s2860_s5 }
0x2648   :  { %v1910_v19 = vpop.permute.xlu0 %1909 }
0x2649   :  { %v1912_v21 = vmul.f32 %v1910_v19, %v1907_v18 }
0x264b   :  { %v1917_v22 = vadd.f32 %v1916_v20, %v1912_v21 }
0x264d   :  { %v1918_v23 = vpack.c.bf16 %v1917_v22, %v1917_v22  ;;  %v1995_v58 = vrot.slane %v1917_v22, 7 }
0x264f   :  { %v1920_v24 = vshrl.u32 %v1918_v23, 16 }
0x2651   :  { %v1922_v25 = vrot.slane %v1920_v24, 2 }
0x2653   :  { %1923 = vrot.lane.b32.xlu1 %v1922_v25, %s2860_s5 }
0x26c5   :  { %v1924_v27 = vpop.permute.xlu1 %1923 }
0x26c6   :  { %2508 = vmatmul.mubr.msk.bf16.vlgmr.msra.gmra.mrb[28].mxu1 %vm158_vm1, %v1924_v27 }
0x26c7   :  { %2520 = vmatpush3.bf16.msra.mxu1 %v2574_v26  ;;  %2527 = vmatprep.mubr.msk.bf16.mxu1 %vm2862_vm10, %v2861_v14 }
0x26c8   :  { %2521 = vmatprep.subr.bf16.mxu1 %v2861_v14 }
0x26cb   :  { %2522 = vmatpush3.bf16.msra.mxu1 %v2575_v28 }
0x26cc   :  { %2523 = vmatprep.subr.bf16.mxu1 %v2861_v14 }
0x26cf   :  { %2524 = vmatpush3.bf16.msra.mxu1 %v2576_v29 }
0x26d0   :  { %2525 = vmatprep.subr.bf16.mxu1 %v2861_v14 }
0x26d3   :  { %2526 = vmatpush3.bf16.msra.mxu1 %v2577_v36 }
0x26d6   :  { %2528 = vmatmul.mubr.msk.bf16.vlgmr.msra.gmra.mrb[32].mxu1 %vm276_vm2, %v2091_v31 }
0x2799   :  { %v1962_v32 = vpop.f32.mrb[28].mxu1 }
0x279a   :  { %v1963_v33 = vadd.f32 %v1962_v32, %v3376_v43  ;;  %v2509_v34 = vpop.f32.mrb[29].mxu1 }
0x279b   :  { %v1965_v35 = vpop.f32.mrb[30].mxu1 }
0x279c   :  { %v1969_v37 = vrot.slane %v1963_v33, 2  ;;  %v2510_v38 = vpop.f32.mrb[31].mxu1 }
0x279e   :  { %1978 = vrot.lane.b32.xlu0 %v1969_v37, %s2855_s0  ;;  %v1971_v54 = vadd.f32 %v1969_v37, %v3395_v57  ;;  %v2252_v37 = vrot.slane %v2398_v8, %v3106_v39 }
0x27a0   :  { %v2389_v47 = vmul.f32 -1.442695, %v1971_v54 }
0x27a2   :  { %2744 = vpow2.f32 %v2389_v47 }
0x27a9   :  { %v2153_v40 = vpop.f32.mrb[32].mxu1 }
0x27aa   :  { %v2529_v44 = vpop.f32.mrb[33].mxu1 }
0x27ab   :  { %v2156_v45 = vpop.f32.mrb[34].mxu1 }
0x27ac   :  { %v2530_v46 = vpop.f32.mrb[35].mxu1  ;;  %v2745_v48 = vpop.eup %2744 }
0x27ad   :  { %v1975_v49 = vadd.f32 1.0, %v2745_v48 }
0x27af   :  { %2746 = vrcp.f32 %v1975_v49 }
0x27b9   :  { %v2747_v50 = vpop.eup %2746 }
0x27ba   :  { %v1988_v59 = vsub.f32 1.0, %v2747_v50  ;;  %v1997_v3 = vmul.f32 %v2747_v50, %v1995_v58 }
0x2810   :  { %v1979_v52 = vpop.permute.xlu0 %1978 }
0x2811   :  { %v1981_v53 = vmul.f32 %v2747_v50, %v1979_v52 }
0x2813   :  { %1983 = vrot.lane.b32.xlu1 %v1981_v53, %s2855_s0 }
0x2885   :  { %v1984_v55 = vpop.permute.xlu1 %1983 }
0x2886   :  { %v1986_v56 = vadd.f32 %v1984_v55, %v3395_v57  ;;  %v2404_v55 = vld [vmem:[%s3548_s11] ss:$0 sm:$0xff] }
0x2888   :  { %2748 = vtanh.f32 %v1986_v56 }
0x2892   :  { %v2749_v5 = vpop.eup %2748 }
0x2893   :  { %1990 = vrot.lane.b32.xlu0 %v2749_v5, %s2860_s5 }
0x2905   :  { %v1991_v60 = vpop.permute.xlu0 %1990 }
0x2906   :  { %v1993_v41 = vmul.f32 %v1991_v60, %v1988_v59  ;;  %v2405_v60 = vld [vmem:[#allocation5] ss:$0 sm:$0xff] }
0x2908   :  { %v3489_v61 = vadd.f32 %v1997_v3, %v1993_v41 }
0x290a   :  { %v1999_v62 = vpack.c.bf16 %v3489_v61, %v3489_v61 }
0x290c   :  { %v2001_v42 = vrot.slane %v1999_v62, 3 }
0x290e   :  { %2002 = vrot.lane.b32.xlu1 %v2001_v42, %s2860_s5 }
0x2980   :  { %v2003_v4 = vpop.permute.xlu1 %2002 }
0x2981   :  { %2516 = vmatmul.mubr.msk.bf16.vlgmr.msra.gmra.mrb[36].mxu0 %vm158_vm1, %v2003_v4 }
0x2982   :  { %2532 = vmatpush3.bf16.msra.mxu0 %v2578_v63  ;;  %2535 = vmatprep.mubr.msk.bf16.mxu0 %vm2862_vm10, %v2861_v14 }
0x2983   :  { %2533 = vmatprep.subr.bf16.mxu0 %v2861_v14 }
0x2986   :  { %2534 = vmatpush3.bf16.msra.mxu0 %v2579_v7 }
0x2989   :  { %2536 = vmatmul.mubr.msk.bf16.vlgmr.msra.gmra.mrb[40].mxu0 %vm158_vm1, %v2161_v11 }
0x2a54   :  { %v2041_v13 = vpop.f32.mrb[36].mxu0 }
0x2a55   :  { %v2042_v12 = vadd.f32 %v2041_v13, %v3376_v43  ;;  %v2517_v15 = vpop.f32.mrb[37].mxu0  ;;  %v2392_v43 = vld [vmem:[%s3546_s9 + $0x1] sm:$0x1] }
0x2a56   :  { %v2044_v0 = vpop.f32.mrb[38].mxu0  ;;  %v2154_v18 = vadd.f32 %v2392_v43, %v2153_v40  ;;  %v2074_v40 = vrot.slane %v3489_v61, 7 }
0x2a57   :  { %v2048_v2 = vrot.slane %v2042_v12, 1  ;;  %v2518_v1 = vpop.f32.mrb[39].mxu0 }
0x2a59   :  { %2057 = vrot.lane.b32.xlu0 %v2048_v2, %s2855_s0  ;;  %v2050_v17 = vadd.f32 %v2048_v2, %v3395_v57 }
0x2a5b   :  { %v2391_v19 = vmul.f32 -1.442695, %v2050_v17 }
0x2a5c   :  { %v2218_v6 = vpop.f32.mrb[40].mxu0 }
0x2a5d   :  { %v2219_v9 = vadd.f32 %v2399_v16, %v2218_v6  ;;  %v2537_v14 = vpop.f32.mrb[41].mxu0  ;;  %2750 = vpow2.f32 %v2391_v19 }
0x2a5e   :  { %v2221_v10 = vpop.f32.mrb[42].mxu0 }
0x2a5f   :  { %2232 = vrot.lane.b32.xlu1 %v2219_v9, %s2855_s0  ;;  %v2538_v51 = vpop.f32.mrb[43].mxu0  ;;  %v2224_v20 = vadd.f32 %v2219_v9, %v2154_v18 }
0x2a61   :  { %v2403_v21 = vmul.f32 -1.442695, %v2224_v20 }
0x2a63   :  { %2752 = vpow2.f32 %v2403_v21 }
0x2a67   :  { %v2751_v22 = vpop.eup %2750 }
0x2a68   :  { %v2054_v23 = vadd.f32 1.0, %v2751_v22 }
0x2a6a   :  { %2754 = vrcp.f32 %v2054_v23 }
0x2a6d   :  { %v2753_v24 = vpop.eup %2752 }
0x2a6e   :  { %v2228_v25 = vadd.f32 1.0, %v2753_v24 }
0x2a70   :  { %2756 = vrcp.f32 %v2228_v25 }
0x2a74   :  { %v2755_v26 = vpop.eup %2754 }
0x2a75   :  { %v2067_v44 = vsub.f32 1.0, %v2755_v26  ;;  %v2076_v46 = vmul.f32 %v2755_v26, %v2074_v40 }
0x2a7a   :  { %v2757_v29 = vpop.eup %2756 }
0x2a7b   :  { %v2242_v48 = vsub.f32 1.0, %v2757_v29 }
0x2acb   :  { %v2058_v27 = vpop.permute.xlu0 %2057 }
0x2acc   :  { %v2060_v28 = vmul.f32 %v2755_v26, %v2058_v27 }
0x2ace   :  { %2062 = vrot.lane.b32.xlu0 %v2060_v28, %s2855_s0 }
0x2ad1   :  { %v2233_v36 = vpop.permute.xlu1 %2232 }
0x2ad2   :  { %v2235_v30 = vmul.f32 %v2757_v29, %v2233_v36 }
0x2ad4   :  { %2237 = vrot.lane.b32.xlu1 %v2235_v30, %s2855_s0  ;;  %s2863_s0 = smov [#allocation13]  }
0x2b40   :  { %v2063_v31 = vpop.permute.xlu0 %2062 }
0x2b41   :  { %v2065_v32 = vadd.f32 %v2063_v31, %v3395_v57 }
0x2b43   :  { %2758 = vtanh.f32 %v2065_v32 }
0x2b46   :  { %v2238_v33 = vpop.permute.xlu1 %2237 }
0x2b47   :  { %v2240_v34 = vadd.f32 %v2238_v33, %v2154_v18 }
0x2b49   :  { %2760 = vtanh.f32 %v2240_v34 }
0x2b4d   :  { %v2759_v35 = vpop.eup %2758 }
0x2b4e   :  { %2069 = vrot.lane.b32.xlu0 %v2759_v35, %s2860_s5 }
0x2b52   :  { %2253 = vrot.lane.b32.xlu0 %v2252_v37, %s2858_s27  ;;  %s2294_s27 = sshll.u32 %s2863_s0, 4  ;;  %s2295_s27 = int_to_ptr.vmem [resolvable:$true] %s2294_s27 }
0x2b53   :  { %v2761_v38 = vpop.eup %2760  ;;  %s2827_s16 = scalar_lea.vmem %s2295_s27, 32  ;;  %p2828_p6 = scmp.lt.s32.totalorder %s2295_s27, %s2295_s27 }
0x2b54   :  { %2244 = vrot.lane.b32.xlu1 %v2761_v38, %s2860_s5 }
0x2bc0   :  { %v2070_v45 = vpop.permute.xlu0 %2069 }
0x2bc1   :  { %v2072_v57 = vmul.f32 %v2070_v45, %v2067_v44 }
0x2bc3   :  { %v2077_v54 = vadd.f32 %v2076_v46, %v2072_v57 }
0x2bc4   :  { %v2254_v49 = vpop.permute.xlu0 %2253 }
0x2bc5   :  { %2259 = vrot.lane.b32.xlu1 %v2077_v54, %s2860_s5  ;;  %v2256_v52 = vmul.f32 %v2757_v29, %v2254_v49  ;;  %s2823_s5 = scalar_lea.vmem %s2295_s27, 16 }
0x2bc6   :  { %v2245_v47 = vpop.permute.xlu1 %2244  ;;  %p2824_p5 = scmp.ne.s32.totalorder %s2295_s27, %s2823_s5  ;;  %p2829_p7 = scmp.lt.s32.totalorder %s2827_s16, %s2823_s5 }
0x2bc7   :  { %v2247_v50 = vmul.f32 %v2245_v47, %v2242_v48 }
0x2bc8   :  { %p2830_p8 = por %p2829_p7, %p2828_p6 }
0x2bc9   :  { %v2257_v39 = vadd.f32 %v2256_v52, %v2247_v50 }
0x2bca   :  { %p2831_p9 = pnand %p2830_p8, %p2824_p5 }
0x2bcb   :  { %v2263_v53 = vrot.slane %v2257_v39, 1 }
0x2c37   :  { %v2260_v56 = vpop.permute.xlu1 %2259 }
0x2c38   :  { %v2265_v5 = vsel %vm158_vm1, %v2260_v56, %v2263_v53 }
0x2c39   :  { %v2273_v58 = vmul.f32 %v2404_v55, %v2265_v5 }
0x2c3b   :  { %v2275_v59 = vsel %vm2274_vm11, %v2273_v58, 0.0 }
0x2c3c   :  { %2276 = vadd.xlane.f32.xlu0 %v2275_v59 }
0x2cc9   :  { %v2277_v3 = vpop.xlane.xlu0 %2276 }
0x2cca   :  { %v2285_v41 = vadd.f32 %v2405_v60, %v2277_v3 }
0x2ccc   :  { %2287 = vst.msk [vmem:[#allocation13 - $0x7] sm:$0x80] %vm2286_vm12, %v2285_v41 }
0x2ccd   :  { %2834 = shalt.err (!%p2831_p9)
}
0x2cce   :  { %s2835_s18 = scalar_lea.hbm %s3550_s13, 16 }
0x2ccf   :  { %p2836_p10 = scmp.ne.s32.totalorder %s3550_s13, %s2835_s18  ;;  %p2839_p11 = scmp.lt.u32.totalorder %s2835_s18, %s3550_s13 }
0x2cd1   :  { %p2841_p12 = pnand %p2839_p11, %p2836_p10 }
0x2cd3   :  { %2844 = shalt.err (!%p2841_p12)
}
0x2cd4   :  { %2297 = dma.vmem_to_hbm [thread:$0]  %s2295_s27, 16, %s3550_s13, [#allocation8]  }
0x2cd5   :  { %2851 = dma.done.wait [#allocation8], 16  }
0x2cd6   :  { %2852 = vsyncadd [#allocation8], 4294967280 }
0x2cd7   :  { %2301 = vsyncpa [#allocation7], 1 }
0x2cd8   :  { %2302 = vsyncpa [#allocation12], 1 }
0x2cd9   :  { %2303 = vsyncpa [#allocation8], 1 }
0x2cda   :  { %2304 = vsyncpa [#allocation9], 1 }

</bundles_post_ra>
